<compile_context>
chip_gen: v6e
topology: v6e:2x2x1
jax: 0.10.0
libtpu: 0.0.40
codegen_flags: <defaults>
</compile_context>

<pallas_src>
import functools

import jax
import jax.numpy as jnp
from jax import lax
from jax.experimental import pallas as pl
from jax.experimental.pallas import tpu as pltpu


# ------------------------------ Pallas kernel -------------------------------

def _down2d_kernel(xp_ref, w1_ref, b1_ref, g1_ref, t1_ref,
                   w2_ref, b2_ref, g2_ref, t2_ref,
                   o_ref, xpad, zpad):
    # xp_ref : (4, h, w, Cin)        four 2x2 pooling phases of one sample
    # w1_ref : (2, 9, Cin, G)        conv1 weights, [parity, tap, cin, group]
    # b1/g1/t1 : (2, 1, G)           conv1 bias, GN1 gamma, GN1 beta
    # w2_ref : (2, 2, 9, G, G)       conv2 weights, [in_par, out_par, tap, gi, go]
    # b2/g2/t2 : (2, 1, G)           conv2 bias, GN2 gamma, GN2 beta
    # o_ref  : (2, h*w, G)           output, [parity, pixel, group]
    # xpad   : VMEM (h+2, w+2, Cin)  zero-padded pooled image
    # zpad   : VMEM (2, h+2, w+2, G) zero-padded stage-1 activation (2 halves)
    Hp, Wp, Cin = xpad.shape
    h, w = Hp - 2, Wp - 2
    M = h * w
    G1 = w1_ref.shape[-1]
    G2 = w2_ref.shape[-1]
    eps = 1e-5
    inv_n = 1.0 / (2.0 * M)   # GroupNorm group size = 2 channels * h * w

    def gn_relu(ya, yb, gam_ref, bet_ref):
        # GroupNorm with 2 channels per group: group g = (even[:, g], odd[:, g]).
        # Two-pass (subtract-mean-then-square) variance for numerical safety.
        mu = (jnp.sum(ya, axis=0, keepdims=True)
              + jnp.sum(yb, axis=0, keepdims=True)) * inv_n          # (1, G)
        da, db = ya - mu, yb - mu
        var = (jnp.sum(da * da, axis=0, keepdims=True)
               + jnp.sum(db * db, axis=0, keepdims=True)) * inv_n    # (1, G)
        inv = lax.rsqrt(var + eps)
        za = jnp.maximum(da * inv * gam_ref[0] + bet_ref[0], 0.0)
        zb = jnp.maximum(db * inv * gam_ref[1] + bet_ref[1], 0.0)
        return za, zb

    # ---- AvgPool2d(2): mean of the four 2x2 phase images (pure VPU) --------
    pooled = 0.25 * (xp_ref[0] + xp_ref[1] + xp_ref[2] + xp_ref[3])  # (h,w,Cin)

    # zero-padded copy in VMEM (padding=1 of the 3x3 "same" convs)
    xpad[...] = jnp.zeros(xpad.shape, jnp.float32)
    xpad[1:h + 1, 1:w + 1, :] = pooled

    # ---- Conv1: 9 accumulating dots on shifted windows (fused im2col) ------
    acc_a = jnp.zeros((M, G1), jnp.float32)   # even output channels
    acc_b = jnp.zeros((M, G1), jnp.float32)   # odd  output channels
    for k in range(9):
        dy, dx = divmod(k, 3)
        xk = xpad[dy:dy + h, dx:dx + w, :].reshape(M, Cin)
        acc_a = acc_a + jnp.dot(xk, w1_ref[0, k], preferred_element_type=jnp.float32)
        acc_b = acc_b + jnp.dot(xk, w1_ref[1, k], preferred_element_type=jnp.float32)
    y1a = acc_a + b1_ref[0]
    y1b = acc_b + b1_ref[1]

    z1a, z1b = gn_relu(y1a, y1b, g1_ref, t1_ref)

    # ---- Conv2: same scheme, input split into the two channel halves -------
    zpad[...] = jnp.zeros(zpad.shape, jnp.float32)
    zpad[0, 1:h + 1, 1:w + 1, :] = z1a.reshape(h, w, G1)
    zpad[1, 1:h + 1, 1:w + 1, :] = z1b.reshape(h, w, G1)

    acc_a = jnp.zeros((M, G2), jnp.float32)
    acc_b = jnp.zeros((M, G2), jnp.float32)
    for k in range(9):
        dy, dx = divmod(k, 3)
        zak = zpad[0, dy:dy + h, dx:dx + w, :].reshape(M, G1)
        zbk = zpad[1, dy:dy + h, dx:dx + w, :].reshape(M, G1)
        acc_a = acc_a + jnp.dot(zak, w2_ref[0, 0, k], preferred_element_type=jnp.float32)
        acc_a = acc_a + jnp.dot(zbk, w2_ref[1, 0, k], preferred_element_type=jnp.float32)
        acc_b = acc_b + jnp.dot(zak, w2_ref[0, 1, k], preferred_element_type=jnp.float32)
        acc_b = acc_b + jnp.dot(zbk, w2_ref[1, 1, k], preferred_element_type=jnp.float32)
    y2a = acc_a + b2_ref[0]
    y2b = acc_b + b2_ref[1]

    z2a, z2b = gn_relu(y2a, y2b, g2_ref, t2_ref)

    o_ref[0] = z2a
    o_ref[1] = z2b


# -------------------------------- wrapper ------------------------------------

def down2d_pallas(x, params):
    """Down2d forward.  x: (B, Cin, H, W) f32, returns (B, Cout, H//2, W//2)."""
    B, Cin, H, W = x.shape
    assert H % 2 == 0 and W % 2 == 0
    oh, ow = H // 2, W // 2
    M = oh * ow

    Cout = params["w1"].shape[0]
    assert Cout % 2 == 0, "GroupNorm(Cout//2) requires an even channel count"
    G = Cout // 2

    # --- split parameters into even/odd output-channel halves (trace-time,
    #     constant-folded under jit) so in-kernel GN needs no lane shuffles ---
    def split_conv1(wt):  # (Cout, Cin, 3, 3) -> (2, 9, Cin, G)
        t = jnp.transpose(wt, (2, 3, 1, 0)).reshape(9, Cin, Cout)
        return jnp.stack([t[:, :, 0::2], t[:, :, 1::2]], axis=0)

    def split_conv2(wt):  # (Cout, Cout, 3, 3) -> (2, 2, 9, G, G)  [in_par, out_par]
        t = jnp.transpose(wt, (2, 3, 1, 0)).reshape(9, Cout, Cout)
        return jnp.stack([
            jnp.stack([t[:, 0::2, 0::2], t[:, 0::2, 1::2]], axis=0),
            jnp.stack([t[:, 1::2, 0::2], t[:, 1::2, 1::2]], axis=0)], axis=0)

    def split_vec(v):     # (Cout,) -> (2, 1, G)
        return jnp.stack([v[0::2], v[1::2]], axis=0).reshape(2, 1, G)

    w1k = split_conv1(params["w1"])
    w2k = split_conv2(params["w2"])
    b1k, g1k, t1k = split_vec(params["b1"]), split_vec(params["g1"]), split_vec(params["t1"])
    b2k, g2k, t2k = split_vec(params["b2"]), split_vec(params["g2"]), split_vec(params["t2"])

    # Fold NCHW -> channels-last and the 2x2 pooling-phase split into ONE XLA
    # transpose feeding the kernel (replaces the old avg-pool glue op).
    xp = x.reshape(B, Cin, oh, 2, ow, 2).transpose(0, 3, 5, 2, 4, 1)
    xp = xp.reshape(B, 4, oh, ow, Cin)

    full = lambda shape: pl.BlockSpec(shape, lambda b: (0,) * len(shape))

    out = pl.pallas_call(
        _down2d_kernel,
        out_shape=jax.ShapeDtypeStruct((B, 2, M, G), jnp.float32),
        grid=(B,),
        in_specs=[
            pl.BlockSpec((None, 4, oh, ow, Cin), lambda b: (b, 0, 0, 0, 0)),
            full(w1k.shape), full(b1k.shape), full(g1k.shape), full(t1k.shape),
            full(w2k.shape), full(b2k.shape), full(g2k.shape), full(t2k.shape),
        ],
        out_specs=pl.BlockSpec((None, 2, M, G), lambda b: (b, 0, 0, 0)),
        scratch_shapes=[
            pltpu.VMEM((oh + 2, ow + 2, Cin), jnp.float32),
            pltpu.VMEM((2, oh + 2, ow + 2, G), jnp.float32),
        ],
        compiler_params=pltpu.CompilerParams(
            dimension_semantics=("parallel",),       # v7x: one sample per core
            vmem_limit_bytes=32 * 1024 * 1024,
        ),
    )(xp, w1k, b1k, g1k, t1k, w2k, b2k, g2k, t2k)

    # (B, 2, M, G): channel = 2*group + parity  ->  NCHW
    y = out.transpose(0, 3, 1, 2).reshape(B, Cout, oh, ow)
    return y


# -------------------------- pure-JAX reference -------------------------------

def down2d_reference(x, params):
    def conv3x3(h, wt, b):
        y = lax.conv_general_dilated(h, wt, window_strides=(1, 1), padding="SAME",
                                     dimension_numbers=("NCHW", "OIHW", "NCHW"))
        return y + b[None, :, None, None]

    def gn_relu(h, gamma, beta):
        B, C, H, W = h.shape
        hg = h.reshape(B, C // 2, 2 * H * W)
        mu = hg.mean(axis=2, keepdims=True)
        var = ((hg - mu) ** 2).mean(axis=2, keepdims=True)
        hn = ((hg - mu) / jnp.sqrt(var + 1e-5)).reshape(B, C, H, W)
        return jnp.maximum(hn * gamma[None, :, None, None] + beta[None, :, None, None], 0.0)

    B, C, H, W = x.shape
    xp = x.reshape(B, C, H // 2, 2, W // 2, 2).mean(axis=(3, 5))   # AvgPool2d(2)
    h1 = gn_relu(conv3x3(xp, params["w1"], params["b1"]), params["g1"], params["t1"])
    h2 = gn_relu(conv3x3(h1, params["w2"], params["b2"]), params["g2"], params["t2"])
    return h2


# --------------------------- deterministic params ----------------------------

def init_params(key, cin, cout):
    ks = jax.random.split(key, 8)
    return {
        "w1": jax.random.normal(ks[0], (cout, cin, 3, 3), jnp.float32) * 0.2,
        "b1": jax.random.normal(ks[1], (cout,), jnp.float32) * 0.05,
        "g1": 1.0 + 0.1 * jax.random.normal(ks[2], (cout,), jnp.float32),
        "t1": 0.1 * jax.random.normal(ks[3], (cout,), jnp.float32),
        "w2": jax.random.normal(ks[4], (cout, cout, 3, 3), jnp.float32) * 0.2,
        "b2": jax.random.normal(ks[5], (cout,), jnp.float32) * 0.05,
        "g2": 1.0 + 0.1 * jax.random.normal(ks[6], (cout,), jnp.float32),
        "t2": 0.1 * jax.random.normal(ks[7], (cout,), jnp.float32),
    }


# ----------------------------------- main -------------------------------------

if __name__ == "__main__":
    key = jax.random.PRNGKey(0)
    kx, kp = jax.random.split(key)
    B, Cin, Cout, H, W = 2, 4, 8, 16, 16
    x = jax.random.normal(kx, (B, Cin, H, W), jnp.float32)
    params = init_params(kp, Cin, Cout)

    fwd = jax.jit(functools.partial(down2d_pallas, params=params))
    y = fwd(x)
    jax.block_until_ready(y)
    assert y.shape == (B, Cout, H // 2, W // 2), y.shape
    assert bool(jnp.all(jnp.isfinite(y)))

    y_ref = jax.jit(functools.partial(down2d_reference, params=params))(x)
    err = float(jnp.max(jnp.abs(y - y_ref)))
    assert err < 5e-2, f"mismatch vs reference: max abs err = {err}"

    print("KERNEL_OK")
</pallas_src>

<mosaic_0001>
module attributes {stable_mosaic.version = 11 : i64} {
  func.func @_down2d_kernel(%arg0: i32, %arg1: memref<1x4x8x8x4xf32, #tpu.memory_space<vmem>>, %arg2: memref<2x9x4x4xf32, #tpu.memory_space<vmem>>, %arg3: memref<2x1x4xf32, #tpu.memory_space<vmem>>, %arg4: memref<2x1x4xf32, #tpu.memory_space<vmem>>, %arg5: memref<2x1x4xf32, #tpu.memory_space<vmem>>, %arg6: memref<2x2x9x4x4xf32, #tpu.memory_space<vmem>>, %arg7: memref<2x1x4xf32, #tpu.memory_space<vmem>>, %arg8: memref<2x1x4xf32, #tpu.memory_space<vmem>>, %arg9: memref<2x1x4xf32, #tpu.memory_space<vmem>>, %arg10: memref<1x2x64x4xf32, #tpu.memory_space<vmem>>, %arg11: memref<10x10x4xf32, #tpu.memory_space<vmem>>, %arg12: memref<2x10x10x4xf32, #tpu.memory_space<vmem>>) attributes {dimension_semantics = [#tpu.dimension_semantics<parallel>], iteration_bounds = array<i64: 2>, scalar_prefetch = 0 : i64, scratch_operands = 2 : i64, tpu.core_type = #tpu.core_type<tc>, window_params = [{transform_indices = @transform_0, window_bounds = array<i64: 1, 4, 8, 8, 4>}, {pipeline_mode = #tpu.pipeline_mode<synchronous>, transform_indices = @transform_1, window_bounds = array<i64: 2, 9, 4, 4>}, {pipeline_mode = #tpu.pipeline_mode<synchronous>, transform_indices = @transform_2, window_bounds = array<i64: 2, 1, 4>}, {pipeline_mode = #tpu.pipeline_mode<synchronous>, transform_indices = @transform_3, window_bounds = array<i64: 2, 1, 4>}, {pipeline_mode = #tpu.pipeline_mode<synchronous>, transform_indices = @transform_4, window_bounds = array<i64: 2, 1, 4>}, {pipeline_mode = #tpu.pipeline_mode<synchronous>, transform_indices = @transform_5, window_bounds = array<i64: 2, 2, 9, 4, 4>}, {pipeline_mode = #tpu.pipeline_mode<synchronous>, transform_indices = @transform_6, window_bounds = array<i64: 2, 1, 4>}, {pipeline_mode = #tpu.pipeline_mode<synchronous>, transform_indices = @transform_7, window_bounds = array<i64: 2, 1, 4>}, {pipeline_mode = #tpu.pipeline_mode<synchronous>, transform_indices = @transform_8, window_bounds = array<i64: 2, 1, 4>}, {transform_indices = @transform_9, window_bounds = array<i64: 1, 2, 64, 4>}]} {
    %c0 = arith.constant 0 : index
    %c0_0 = arith.constant 0 : index
    %c0_1 = arith.constant 0 : index
    %c0_2 = arith.constant 0 : index
    %c0_3 = arith.constant 0 : index
    %0 = vector.load %arg1[%c0, %c0_0, %c0_1, %c0_2, %c0_3] : memref<1x4x8x8x4xf32, #tpu.memory_space<vmem>>, vector<1x1x8x8x4xf32>
    %1 = vector.shape_cast %0 : vector<1x1x8x8x4xf32> to vector<8x8x4xf32>
    %c0_4 = arith.constant 0 : index
    %c1 = arith.constant 1 : index
    %c0_5 = arith.constant 0 : index
    %c0_6 = arith.constant 0 : index
    %c0_7 = arith.constant 0 : index
    %2 = vector.load %arg1[%c0_4, %c1, %c0_5, %c0_6, %c0_7] : memref<1x4x8x8x4xf32, #tpu.memory_space<vmem>>, vector<1x1x8x8x4xf32>
    %3 = vector.shape_cast %2 : vector<1x1x8x8x4xf32> to vector<8x8x4xf32>
    %4 = arith.addf %1, %3 : vector<8x8x4xf32>
    %c0_8 = arith.constant 0 : index
    %c2 = arith.constant 2 : index
    %c0_9 = arith.constant 0 : index
    %c0_10 = arith.constant 0 : index
    %c0_11 = arith.constant 0 : index
    %5 = vector.load %arg1[%c0_8, %c2, %c0_9, %c0_10, %c0_11] : memref<1x4x8x8x4xf32, #tpu.memory_space<vmem>>, vector<1x1x8x8x4xf32>
    %6 = vector.shape_cast %5 : vector<1x1x8x8x4xf32> to vector<8x8x4xf32>
    %7 = arith.addf %4, %6 : vector<8x8x4xf32>
    %c0_12 = arith.constant 0 : index
    %c3 = arith.constant 3 : index
    %c0_13 = arith.constant 0 : index
    %c0_14 = arith.constant 0 : index
    %c0_15 = arith.constant 0 : index
    %8 = vector.load %arg1[%c0_12, %c3, %c0_13, %c0_14, %c0_15] : memref<1x4x8x8x4xf32, #tpu.memory_space<vmem>>, vector<1x1x8x8x4xf32>
    %9 = vector.shape_cast %8 : vector<1x1x8x8x4xf32> to vector<8x8x4xf32>
    %10 = arith.addf %7, %9 : vector<8x8x4xf32>
    %cst = arith.constant 2.500000e-01 : f32
    %11 = vector.broadcast %cst : f32 to vector<8x8x4xf32>
    %12 = arith.mulf %11, %10 : vector<8x8x4xf32>
    %cst_16 = arith.constant 0.000000e+00 : f32
    %13 = vector.broadcast %cst_16 : f32 to vector<10x10x4xf32>
    %c0_17 = arith.constant 0 : index
    %c0_18 = arith.constant 0 : index
    %c0_19 = arith.constant 0 : index
    %14 = vector.load %arg11[%c0_17, %c0_18, %c0_19] : memref<10x10x4xf32, #tpu.memory_space<vmem>>, vector<10x10x4xf32>
    tpu.vector_store %arg11[%c0_17, %c0_18, %c0_19], %13 {strides = array<i32>} : memref<10x10x4xf32, #tpu.memory_space<vmem>>, vector<10x10x4xf32>,
    %c1_20 = arith.constant 1 : index
    %c1_21 = arith.constant 1 : index
    %c0_22 = arith.constant 0 : index
    %15 = vector.load %arg11[%c1_20, %c1_21, %c0_22] : memref<10x10x4xf32, #tpu.memory_space<vmem>>, vector<8x8x4xf32>
    tpu.vector_store %arg11[%c1_20, %c1_21, %c0_22], %12 {strides = array<i32>} : memref<10x10x4xf32, #tpu.memory_space<vmem>>, vector<8x8x4xf32>,
    %cst_23 = arith.constant 0.000000e+00 : f32
    %16 = vector.broadcast %cst_23 : f32 to vector<64x4xf32>
    %cst_24 = arith.constant 0.000000e+00 : f32
    %17 = vector.broadcast %cst_24 : f32 to vector<64x4xf32>
    %c0_25 = arith.constant 0 : index
    %c0_26 = arith.constant 0 : index
    %c0_27 = arith.constant 0 : index
    %18 = vector.load %arg11[%c0_25, %c0_26, %c0_27] : memref<10x10x4xf32, #tpu.memory_space<vmem>>, vector<8x8x4xf32>
    %19 = vector.shape_cast %18 : vector<8x8x4xf32> to vector<64x4xf32>
    %c0_28 = arith.constant 0 : index
    %c0_29 = arith.constant 0 : index
    %c0_30 = arith.constant 0 : index
    %c0_31 = arith.constant 0 : index
    %20 = vector.load %arg2[%c0_28, %c0_29, %c0_30, %c0_31] : memref<2x9x4x4xf32, #tpu.memory_space<vmem>>, vector<1x1x4x4xf32>
    %21 = vector.shape_cast %20 : vector<1x1x4x4xf32> to vector<4x4xf32>
    %cst_32 = arith.constant dense<0.000000e+00> : vector<64x4xf32>
    %22 = tpu.matmul %19, %21, %cst_32 {dimension_numbers = #tpu.dot_dimension_numbers<[1], [0], [0], [1], [0, 0, 1, 1], [], []>} : vector<64x4xf32>, vector<4x4xf32>, vector<64x4xf32> -> vector<64x4xf32>
    %23 = arith.addf %16, %22 : vector<64x4xf32>
    %c1_33 = arith.constant 1 : index
    %c0_34 = arith.constant 0 : index
    %c0_35 = arith.constant 0 : index
    %c0_36 = arith.constant 0 : index
    %24 = vector.load %arg2[%c1_33, %c0_34, %c0_35, %c0_36] : memref<2x9x4x4xf32, #tpu.memory_space<vmem>>, vector<1x1x4x4xf32>
    %25 = vector.shape_cast %24 : vector<1x1x4x4xf32> to vector<4x4xf32>
    %cst_37 = arith.constant dense<0.000000e+00> : vector<64x4xf32>
    %26 = tpu.matmul %19, %25, %cst_37 {dimension_numbers = #tpu.dot_dimension_numbers<[1], [0], [0], [1], [0, 0, 1, 1], [], []>} : vector<64x4xf32>, vector<4x4xf32>, vector<64x4xf32> -> vector<64x4xf32>
    %27 = arith.addf %17, %26 : vector<64x4xf32>
    %c0_38 = arith.constant 0 : index
    %c1_39 = arith.constant 1 : index
    %c0_40 = arith.constant 0 : index
    %28 = vector.load %arg11[%c0_38, %c1_39, %c0_40] : memref<10x10x4xf32, #tpu.memory_space<vmem>>, vector<8x8x4xf32>
    %29 = vector.shape_cast %28 : vector<8x8x4xf32> to vector<64x4xf32>
    %c0_41 = arith.constant 0 : index
    %c1_42 = arith.constant 1 : index
    %c0_43 = arith.constant 0 : index
    %c0_44 = arith.constant 0 : index
    %30 = vector.load %arg2[%c0_41, %c1_42, %c0_43, %c0_44] : memref<2x9x4x4xf32, #tpu.memory_space<vmem>>, vector<1x1x4x4xf32>
    %31 = vector.shape_cast %30 : vector<1x1x4x4xf32> to vector<4x4xf32>
    %cst_45 = arith.constant dense<0.000000e+00> : vector<64x4xf32>
    %32 = tpu.matmul %29, %31, %cst_45 {dimension_numbers = #tpu.dot_dimension_numbers<[1], [0], [0], [1], [0, 0, 1, 1], [], []>} : vector<64x4xf32>, vector<4x4xf32>, vector<64x4xf32> -> vector<64x4xf32>
    %33 = arith.addf %23, %32 : vector<64x4xf32>
    %c1_46 = arith.constant 1 : index
    %c1_47 = arith.constant 1 : index
    %c0_48 = arith.constant 0 : index
    %c0_49 = arith.constant 0 : index
    %34 = vector.load %arg2[%c1_46, %c1_47, %c0_48, %c0_49] : memref<2x9x4x4xf32, #tpu.memory_space<vmem>>, vector<1x1x4x4xf32>
    %35 = vector.shape_cast %34 : vector<1x1x4x4xf32> to vector<4x4xf32>
    %cst_50 = arith.constant dense<0.000000e+00> : vector<64x4xf32>
    %36 = tpu.matmul %29, %35, %cst_50 {dimension_numbers = #tpu.dot_dimension_numbers<[1], [0], [0], [1], [0, 0, 1, 1], [], []>} : vector<64x4xf32>, vector<4x4xf32>, vector<64x4xf32> -> vector<64x4xf32>
    %37 = arith.addf %27, %36 : vector<64x4xf32>
    %c0_51 = arith.constant 0 : index
    %c2_52 = arith.constant 2 : index
    %c0_53 = arith.constant 0 : index
    %38 = vector.load %arg11[%c0_51, %c2_52, %c0_53] : memref<10x10x4xf32, #tpu.memory_space<vmem>>, vector<8x8x4xf32>
    %39 = vector.shape_cast %38 : vector<8x8x4xf32> to vector<64x4xf32>
    %c0_54 = arith.constant 0 : index
    %c2_55 = arith.constant 2 : index
    %c0_56 = arith.constant 0 : index
    %c0_57 = arith.constant 0 : index
    %40 = vector.load %arg2[%c0_54, %c2_55, %c0_56, %c0_57] : memref<2x9x4x4xf32, #tpu.memory_space<vmem>>, vector<1x1x4x4xf32>
    %41 = vector.shape_cast %40 : vector<1x1x4x4xf32> to vector<4x4xf32>
    %cst_58 = arith.constant dense<0.000000e+00> : vector<64x4xf32>
    %42 = tpu.matmul %39, %41, %cst_58 {dimension_numbers = #tpu.dot_dimension_numbers<[1], [0], [0], [1], [0, 0, 1, 1], [], []>} : vector<64x4xf32>, vector<4x4xf32>, vector<64x4xf32> -> vector<64x4xf32>
    %43 = arith.addf %33, %42 : vector<64x4xf32>
    %c1_59 = arith.constant 1 : index
    %c2_60 = arith.constant 2 : index
    %c0_61 = arith.constant 0 : index
    %c0_62 = arith.constant 0 : index
    %44 = vector.load %arg2[%c1_59, %c2_60, %c0_61, %c0_62] : memref<2x9x4x4xf32, #tpu.memory_space<vmem>>, vector<1x1x4x4xf32>
    %45 = vector.shape_cast %44 : vector<1x1x4x4xf32> to vector<4x4xf32>
    %cst_63 = arith.constant dense<0.000000e+00> : vector<64x4xf32>
    %46 = tpu.matmul %39, %45, %cst_63 {dimension_numbers = #tpu.dot_dimension_numbers<[1], [0], [0], [1], [0, 0, 1, 1], [], []>} : vector<64x4xf32>, vector<4x4xf32>, vector<64x4xf32> -> vector<64x4xf32>
    %47 = arith.addf %37, %46 : vector<64x4xf32>
    %c1_64 = arith.constant 1 : index
    %c0_65 = arith.constant 0 : index
    %c0_66 = arith.constant 0 : index
    %48 = vector.load %arg11[%c1_64, %c0_65, %c0_66] : memref<10x10x4xf32, #tpu.memory_space<vmem>>, vector<8x8x4xf32>
    %49 = vector.shape_cast %48 : vector<8x8x4xf32> to vector<64x4xf32>
    %c0_67 = arith.constant 0 : index
    %c3_68 = arith.constant 3 : index
    %c0_69 = arith.constant 0 : index
    %c0_70 = arith.constant 0 : index
    %50 = vector.load %arg2[%c0_67, %c3_68, %c0_69, %c0_70] : memref<2x9x4x4xf32, #tpu.memory_space<vmem>>, vector<1x1x4x4xf32>
    %51 = vector.shape_cast %50 : vector<1x1x4x4xf32> to vector<4x4xf32>
    %cst_71 = arith.constant dense<0.000000e+00> : vector<64x4xf32>
    %52 = tpu.matmul %49, %51, %cst_71 {dimension_numbers = #tpu.dot_dimension_numbers<[1], [0], [0], [1], [0, 0, 1, 1], [], []>} : vector<64x4xf32>, vector<4x4xf32>, vector<64x4xf32> -> vector<64x4xf32>
    %53 = arith.addf %43, %52 : vector<64x4xf32>
    %c1_72 = arith.constant 1 : index
    %c3_73 = arith.constant 3 : index
    %c0_74 = arith.constant 0 : index
    %c0_75 = arith.constant 0 : index
    %54 = vector.load %arg2[%c1_72, %c3_73, %c0_74, %c0_75] : memref<2x9x4x4xf32, #tpu.memory_space<vmem>>, vector<1x1x4x4xf32>
    %55 = vector.shape_cast %54 : vector<1x1x4x4xf32> to vector<4x4xf32>
    %cst_76 = arith.constant dense<0.000000e+00> : vector<64x4xf32>
    %56 = tpu.matmul %49, %55, %cst_76 {dimension_numbers = #tpu.dot_dimension_numbers<[1], [0], [0], [1], [0, 0, 1, 1], [], []>} : vector<64x4xf32>, vector<4x4xf32>, vector<64x4xf32> -> vector<64x4xf32>
    %57 = arith.addf %47, %56 : vector<64x4xf32>
    %c1_77 = arith.constant 1 : index
    %c1_78 = arith.constant 1 : index
    %c0_79 = arith.constant 0 : index
    %58 = vector.load %arg11[%c1_77, %c1_78, %c0_79] : memref<10x10x4xf32, #tpu.memory_space<vmem>>, vector<8x8x4xf32>
    %59 = vector.shape_cast %58 : vector<8x8x4xf32> to vector<64x4xf32>
    %c0_80 = arith.constant 0 : index
    %c4 = arith.constant 4 : index
    %c0_81 = arith.constant 0 : index
    %c0_82 = arith.constant 0 : index
    %60 = vector.load %arg2[%c0_80, %c4, %c0_81, %c0_82] : memref<2x9x4x4xf32, #tpu.memory_space<vmem>>, vector<1x1x4x4xf32>
    %61 = vector.shape_cast %60 : vector<1x1x4x4xf32> to vector<4x4xf32>
    %cst_83 = arith.constant dense<0.000000e+00> : vector<64x4xf32>
    %62 = tpu.matmul %59, %61, %cst_83 {dimension_numbers = #tpu.dot_dimension_numbers<[1], [0], [0], [1], [0, 0, 1, 1], [], []>} : vector<64x4xf32>, vector<4x4xf32>, vector<64x4xf32> -> vector<64x4xf32>
    %63 = arith.addf %53, %62 : vector<64x4xf32>
    %c1_84 = arith.constant 1 : index
    %c4_85 = arith.constant 4 : index
    %c0_86 = arith.constant 0 : index
    %c0_87 = arith.constant 0 : index
    %64 = vector.load %arg2[%c1_84, %c4_85, %c0_86, %c0_87] : memref<2x9x4x4xf32, #tpu.memory_space<vmem>>, vector<1x1x4x4xf32>
    %65 = vector.shape_cast %64 : vector<1x1x4x4xf32> to vector<4x4xf32>
    %cst_88 = arith.constant dense<0.000000e+00> : vector<64x4xf32>
    %66 = tpu.matmul %59, %65, %cst_88 {dimension_numbers = #tpu.dot_dimension_numbers<[1], [0], [0], [1], [0, 0, 1, 1], [], []>} : vector<64x4xf32>, vector<4x4xf32>, vector<64x4xf32> -> vector<64x4xf32>
    %67 = arith.addf %57, %66 : vector<64x4xf32>
    %c1_89 = arith.constant 1 : index
    %c2_90 = arith.constant 2 : index
    %c0_91 = arith.constant 0 : index
    %68 = vector.load %arg11[%c1_89, %c2_90, %c0_91] : memref<10x10x4xf32, #tpu.memory_space<vmem>>, vector<8x8x4xf32>
    %69 = vector.shape_cast %68 : vector<8x8x4xf32> to vector<64x4xf32>
    %c0_92 = arith.constant 0 : index
    %c5 = arith.constant 5 : index
    %c0_93 = arith.constant 0 : index
    %c0_94 = arith.constant 0 : index
    %70 = vector.load %arg2[%c0_92, %c5, %c0_93, %c0_94] : memref<2x9x4x4xf32, #tpu.memory_space<vmem>>, vector<1x1x4x4xf32>
    %71 = vector.shape_cast %70 : vector<1x1x4x4xf32> to vector<4x4xf32>
    %cst_95 = arith.constant dense<0.000000e+00> : vector<64x4xf32>
    %72 = tpu.matmul %69, %71, %cst_95 {dimension_numbers = #tpu.dot_dimension_numbers<[1], [0], [0], [1], [0, 0, 1, 1], [], []>} : vector<64x4xf32>, vector<4x4xf32>, vector<64x4xf32> -> vector<64x4xf32>
    %73 = arith.addf %63, %72 : vector<64x4xf32>
    %c1_96 = arith.constant 1 : index
    %c5_97 = arith.constant 5 : index
    %c0_98 = arith.constant 0 : index
    %c0_99 = arith.constant 0 : index
    %74 = vector.load %arg2[%c1_96, %c5_97, %c0_98, %c0_99] : memref<2x9x4x4xf32, #tpu.memory_space<vmem>>, vector<1x1x4x4xf32>
    %75 = vector.shape_cast %74 : vector<1x1x4x4xf32> to vector<4x4xf32>
    %cst_100 = arith.constant dense<0.000000e+00> : vector<64x4xf32>
    %76 = tpu.matmul %69, %75, %cst_100 {dimension_numbers = #tpu.dot_dimension_numbers<[1], [0], [0], [1], [0, 0, 1, 1], [], []>} : vector<64x4xf32>, vector<4x4xf32>, vector<64x4xf32> -> vector<64x4xf32>
    %77 = arith.addf %67, %76 : vector<64x4xf32>
    %c2_101 = arith.constant 2 : index
    %c0_102 = arith.constant 0 : index
    %c0_103 = arith.constant 0 : index
    %78 = vector.load %arg11[%c2_101, %c0_102, %c0_103] : memref<10x10x4xf32, #tpu.memory_space<vmem>>, vector<8x8x4xf32>
    %79 = vector.shape_cast %78 : vector<8x8x4xf32> to vector<64x4xf32>
    %c0_104 = arith.constant 0 : index
    %c6 = arith.constant 6 : index
    %c0_105 = arith.constant 0 : index
    %c0_106 = arith.constant 0 : index
    %80 = vector.load %arg2[%c0_104, %c6, %c0_105, %c0_106] : memref<2x9x4x4xf32, #tpu.memory_space<vmem>>, vector<1x1x4x4xf32>
    %81 = vector.shape_cast %80 : vector<1x1x4x4xf32> to vector<4x4xf32>
    %cst_107 = arith.constant dense<0.000000e+00> : vector<64x4xf32>
    %82 = tpu.matmul %79, %81, %cst_107 {dimension_numbers = #tpu.dot_dimension_numbers<[1], [0], [0], [1], [0, 0, 1, 1], [], []>} : vector<64x4xf32>, vector<4x4xf32>, vector<64x4xf32> -> vector<64x4xf32>
    %83 = arith.addf %73, %82 : vector<64x4xf32>
    %c1_108 = arith.constant 1 : index
    %c6_109 = arith.constant 6 : index
    %c0_110 = arith.constant 0 : index
    %c0_111 = arith.constant 0 : index
    %84 = vector.load %arg2[%c1_108, %c6_109, %c0_110, %c0_111] : memref<2x9x4x4xf32, #tpu.memory_space<vmem>>, vector<1x1x4x4xf32>
    %85 = vector.shape_cast %84 : vector<1x1x4x4xf32> to vector<4x4xf32>
    %cst_112 = arith.constant dense<0.000000e+00> : vector<64x4xf32>
    %86 = tpu.matmul %79, %85, %cst_112 {dimension_numbers = #tpu.dot_dimension_numbers<[1], [0], [0], [1], [0, 0, 1, 1], [], []>} : vector<64x4xf32>, vector<4x4xf32>, vector<64x4xf32> -> vector<64x4xf32>
    %87 = arith.addf %77, %86 : vector<64x4xf32>
    %c2_113 = arith.constant 2 : index
    %c1_114 = arith.constant 1 : index
    %c0_115 = arith.constant 0 : index
    %88 = vector.load %arg11[%c2_113, %c1_114, %c0_115] : memref<10x10x4xf32, #tpu.memory_space<vmem>>, vector<8x8x4xf32>
    %89 = vector.shape_cast %88 : vector<8x8x4xf32> to vector<64x4xf32>
    %c0_116 = arith.constant 0 : index
    %c7 = arith.constant 7 : index
    %c0_117 = arith.constant 0 : index
    %c0_118 = arith.constant 0 : index
    %90 = vector.load %arg2[%c0_116, %c7, %c0_117, %c0_118] : memref<2x9x4x4xf32, #tpu.memory_space<vmem>>, vector<1x1x4x4xf32>
    %91 = vector.shape_cast %90 : vector<1x1x4x4xf32> to vector<4x4xf32>
    %cst_119 = arith.constant dense<0.000000e+00> : vector<64x4xf32>
    %92 = tpu.matmul %89, %91, %cst_119 {dimension_numbers = #tpu.dot_dimension_numbers<[1], [0], [0], [1], [0, 0, 1, 1], [], []>} : vector<64x4xf32>, vector<4x4xf32>, vector<64x4xf32> -> vector<64x4xf32>
    %93 = arith.addf %83, %92 : vector<64x4xf32>
    %c1_120 = arith.constant 1 : index
    %c7_121 = arith.constant 7 : index
    %c0_122 = arith.constant 0 : index
    %c0_123 = arith.constant 0 : index
    %94 = vector.load %arg2[%c1_120, %c7_121, %c0_122, %c0_123] : memref<2x9x4x4xf32, #tpu.memory_space<vmem>>, vector<1x1x4x4xf32>
    %95 = vector.shape_cast %94 : vector<1x1x4x4xf32> to vector<4x4xf32>
    %cst_124 = arith.constant dense<0.000000e+00> : vector<64x4xf32>
    %96 = tpu.matmul %89, %95, %cst_124 {dimension_numbers = #tpu.dot_dimension_numbers<[1], [0], [0], [1], [0, 0, 1, 1], [], []>} : vector<64x4xf32>, vector<4x4xf32>, vector<64x4xf32> -> vector<64x4xf32>
    %97 = arith.addf %87, %96 : vector<64x4xf32>
    %c2_125 = arith.constant 2 : index
    %c2_126 = arith.constant 2 : index
    %c0_127 = arith.constant 0 : index
    %98 = vector.load %arg11[%c2_125, %c2_126, %c0_127] : memref<10x10x4xf32, #tpu.memory_space<vmem>>, vector<8x8x4xf32>
    %99 = vector.shape_cast %98 : vector<8x8x4xf32> to vector<64x4xf32>
    %c0_128 = arith.constant 0 : index
    %c8 = arith.constant 8 : index
    %c0_129 = arith.constant 0 : index
    %c0_130 = arith.constant 0 : index
    %100 = vector.load %arg2[%c0_128, %c8, %c0_129, %c0_130] : memref<2x9x4x4xf32, #tpu.memory_space<vmem>>, vector<1x1x4x4xf32>
    %101 = vector.shape_cast %100 : vector<1x1x4x4xf32> to vector<4x4xf32>
    %cst_131 = arith.constant dense<0.000000e+00> : vector<64x4xf32>
    %102 = tpu.matmul %99, %101, %cst_131 {dimension_numbers = #tpu.dot_dimension_numbers<[1], [0], [0], [1], [0, 0, 1, 1], [], []>} : vector<64x4xf32>, vector<4x4xf32>, vector<64x4xf32> -> vector<64x4xf32>
    %103 = arith.addf %93, %102 : vector<64x4xf32>
    %c1_132 = arith.constant 1 : index
    %c8_133 = arith.constant 8 : index
    %c0_134 = arith.constant 0 : index
    %c0_135 = arith.constant 0 : index
    %104 = vector.load %arg2[%c1_132, %c8_133, %c0_134, %c0_135] : memref<2x9x4x4xf32, #tpu.memory_space<vmem>>, vector<1x1x4x4xf32>
    %105 = vector.shape_cast %104 : vector<1x1x4x4xf32> to vector<4x4xf32>
    %cst_136 = arith.constant dense<0.000000e+00> : vector<64x4xf32>
    %106 = tpu.matmul %99, %105, %cst_136 {dimension_numbers = #tpu.dot_dimension_numbers<[1], [0], [0], [1], [0, 0, 1, 1], [], []>} : vector<64x4xf32>, vector<4x4xf32>, vector<64x4xf32> -> vector<64x4xf32>
    %107 = arith.addf %97, %106 : vector<64x4xf32>
    %c0_137 = arith.constant 0 : index
    %c0_138 = arith.constant 0 : index
    %c0_139 = arith.constant 0 : index
    %108 = vector.load %arg3[%c0_137, %c0_138, %c0_139] : memref<2x1x4xf32, #tpu.memory_space<vmem>>, vector<1x1x4xf32>
    %109 = vector.shape_cast %108 : vector<1x1x4xf32> to vector<1x4xf32>
    %110 = vector.broadcast %109 : vector<1x4xf32> to vector<64x4xf32>
    %111 = arith.addf %103, %110 : vector<64x4xf32>
    %c1_140 = arith.constant 1 : index
    %c0_141 = arith.constant 0 : index
    %c0_142 = arith.constant 0 : index
    %112 = vector.load %arg3[%c1_140, %c0_141, %c0_142] : memref<2x1x4xf32, #tpu.memory_space<vmem>>, vector<1x1x4xf32>
    %113 = vector.shape_cast %112 : vector<1x1x4xf32> to vector<1x4xf32>
    %114 = vector.broadcast %113 : vector<1x4xf32> to vector<64x4xf32>
    %115 = arith.addf %107, %114 : vector<64x4xf32>
    %cst_143 = arith.constant dense<0.000000e+00> : vector<4xf32>
    %116 = vector.multi_reduction <add>, %111, %cst_143 [0] : vector<64x4xf32> to vector<4xf32>
    %117 = vector.shape_cast %116 : vector<4xf32> to vector<1x4xf32>
    %cst_144 = arith.constant dense<0.000000e+00> : vector<4xf32>
    %118 = vector.multi_reduction <add>, %115, %cst_144 [0] : vector<64x4xf32> to vector<4xf32>
    %119 = vector.shape_cast %118 : vector<4xf32> to vector<1x4xf32>
    %120 = arith.addf %117, %119 : vector<1x4xf32>
    %cst_145 = arith.constant 7.812500e-03 : f32
    %121 = vector.broadcast %cst_145 : f32 to vector<1x4xf32>
    %122 = arith.mulf %120, %121 : vector<1x4xf32>
    %123 = vector.broadcast %122 : vector<1x4xf32> to vector<64x4xf32>
    %124 = arith.subf %111, %123 : vector<64x4xf32>
    %125 = vector.broadcast %122 : vector<1x4xf32> to vector<64x4xf32>
    %126 = arith.subf %115, %125 : vector<64x4xf32>
    %127 = arith.mulf %124, %124 : vector<64x4xf32>
    %cst_146 = arith.constant dense<0.000000e+00> : vector<4xf32>
    %128 = vector.multi_reduction <add>, %127, %cst_146 [0] : vector<64x4xf32> to vector<4xf32>
    %129 = vector.shape_cast %128 : vector<4xf32> to vector<1x4xf32>
    %130 = arith.mulf %126, %126 : vector<64x4xf32>
    %cst_147 = arith.constant dense<0.000000e+00> : vector<4xf32>
    %131 = vector.multi_reduction <add>, %130, %cst_147 [0] : vector<64x4xf32> to vector<4xf32>
    %132 = vector.shape_cast %131 : vector<4xf32> to vector<1x4xf32>
    %133 = arith.addf %129, %132 : vector<1x4xf32>
    %cst_148 = arith.constant 7.812500e-03 : f32
    %134 = vector.broadcast %cst_148 : f32 to vector<1x4xf32>
    %135 = arith.mulf %133, %134 : vector<1x4xf32>
    %cst_149 = arith.constant 9.99999974E-6 : f32
    %136 = vector.broadcast %cst_149 : f32 to vector<1x4xf32>
    %137 = arith.addf %135, %136 : vector<1x4xf32>
    %138 = math.rsqrt %137 : vector<1x4xf32>
    %139 = vector.broadcast %138 : vector<1x4xf32> to vector<64x4xf32>
    %140 = arith.mulf %124, %139 : vector<64x4xf32>
    %c0_150 = arith.constant 0 : index
    %c0_151 = arith.constant 0 : index
    %c0_152 = arith.constant 0 : index
    %141 = vector.load %arg4[%c0_150, %c0_151, %c0_152] : memref<2x1x4xf32, #tpu.memory_space<vmem>>, vector<1x1x4xf32>
    %142 = vector.shape_cast %141 : vector<1x1x4xf32> to vector<1x4xf32>
    %143 = vector.broadcast %142 : vector<1x4xf32> to vector<64x4xf32>
    %144 = arith.mulf %140, %143 : vector<64x4xf32>
    %c0_153 = arith.constant 0 : index
    %c0_154 = arith.constant 0 : index
    %c0_155 = arith.constant 0 : index
    %145 = vector.load %arg5[%c0_153, %c0_154, %c0_155] : memref<2x1x4xf32, #tpu.memory_space<vmem>>, vector<1x1x4xf32>
    %146 = vector.shape_cast %145 : vector<1x1x4xf32> to vector<1x4xf32>
    %147 = vector.broadcast %146 : vector<1x4xf32> to vector<64x4xf32>
    %148 = arith.addf %144, %147 : vector<64x4xf32>
    %cst_156 = arith.constant 0.000000e+00 : f32
    %149 = vector.broadcast %cst_156 : f32 to vector<64x4xf32>
    %150 = arith.maximumf %148, %149 : vector<64x4xf32>
    %151 = vector.broadcast %138 : vector<1x4xf32> to vector<64x4xf32>
    %152 = arith.mulf %126, %151 : vector<64x4xf32>
    %c1_157 = arith.constant 1 : index
    %c0_158 = arith.constant 0 : index
    %c0_159 = arith.constant 0 : index
    %153 = vector.load %arg4[%c1_157, %c0_158, %c0_159] : memref<2x1x4xf32, #tpu.memory_space<vmem>>, vector<1x1x4xf32>
    %154 = vector.shape_cast %153 : vector<1x1x4xf32> to vector<1x4xf32>
    %155 = vector.broadcast %154 : vector<1x4xf32> to vector<64x4xf32>
    %156 = arith.mulf %152, %155 : vector<64x4xf32>
    %c1_160 = arith.constant 1 : index
    %c0_161 = arith.constant 0 : index
    %c0_162 = arith.constant 0 : index
    %157 = vector.load %arg5[%c1_160, %c0_161, %c0_162] : memref<2x1x4xf32, #tpu.memory_space<vmem>>, vector<1x1x4xf32>
    %158 = vector.shape_cast %157 : vector<1x1x4xf32> to vector<1x4xf32>
    %159 = vector.broadcast %158 : vector<1x4xf32> to vector<64x4xf32>
    %160 = arith.addf %156, %159 : vector<64x4xf32>
    %cst_163 = arith.constant 0.000000e+00 : f32
    %161 = vector.broadcast %cst_163 : f32 to vector<64x4xf32>
    %162 = arith.maximumf %160, %161 : vector<64x4xf32>
    %cst_164 = arith.constant 0.000000e+00 : f32
    %163 = vector.broadcast %cst_164 : f32 to vector<2x10x10x4xf32>
    %c0_165 = arith.constant 0 : index
    %c0_166 = arith.constant 0 : index
    %c0_167 = arith.constant 0 : index
    %c0_168 = arith.constant 0 : index
    %164 = vector.load %arg12[%c0_165, %c0_166, %c0_167, %c0_168] : memref<2x10x10x4xf32, #tpu.memory_space<vmem>>, vector<2x10x10x4xf32>
    tpu.vector_store %arg12[%c0_165, %c0_166, %c0_167, %c0_168], %163 {strides = array<i32>} : memref<2x10x10x4xf32, #tpu.memory_space<vmem>>, vector<2x10x10x4xf32>,
    %165 = vector.shape_cast %150 : vector<64x4xf32> to vector<8x8x4xf32>
    %c0_169 = arith.constant 0 : index
    %c1_170 = arith.constant 1 : index
    %c1_171 = arith.constant 1 : index
    %c0_172 = arith.constant 0 : index
    %166 = vector.load %arg12[%c0_169, %c1_170, %c1_171, %c0_172] : memref<2x10x10x4xf32, #tpu.memory_space<vmem>>, vector<1x8x8x4xf32>
    %167 = vector.shape_cast %166 : vector<1x8x8x4xf32> to vector<8x8x4xf32>
    %168 = vector.shape_cast %165 : vector<8x8x4xf32> to vector<1x8x8x4xf32>
    tpu.vector_store %arg12[%c0_169, %c1_170, %c1_171, %c0_172], %168 {strides = array<i32>} : memref<2x10x10x4xf32, #tpu.memory_space<vmem>>, vector<1x8x8x4xf32>,
    %169 = vector.shape_cast %162 : vector<64x4xf32> to vector<8x8x4xf32>
    %c1_173 = arith.constant 1 : index
    %c1_174 = arith.constant 1 : index
    %c1_175 = arith.constant 1 : index
    %c0_176 = arith.constant 0 : index
    %170 = vector.load %arg12[%c1_173, %c1_174, %c1_175, %c0_176] : memref<2x10x10x4xf32, #tpu.memory_space<vmem>>, vector<1x8x8x4xf32>
    %171 = vector.shape_cast %170 : vector<1x8x8x4xf32> to vector<8x8x4xf32>
    %172 = vector.shape_cast %169 : vector<8x8x4xf32> to vector<1x8x8x4xf32>
    tpu.vector_store %arg12[%c1_173, %c1_174, %c1_175, %c0_176], %172 {strides = array<i32>} : memref<2x10x10x4xf32, #tpu.memory_space<vmem>>, vector<1x8x8x4xf32>,
    %cst_177 = arith.constant 0.000000e+00 : f32
    %173 = vector.broadcast %cst_177 : f32 to vector<64x4xf32>
    %cst_178 = arith.constant 0.000000e+00 : f32
    %174 = vector.broadcast %cst_178 : f32 to vector<64x4xf32>
    %c0_179 = arith.constant 0 : index
    %c0_180 = arith.constant 0 : index
    %c0_181 = arith.constant 0 : index
    %c0_182 = arith.constant 0 : index
    %175 = vector.load %arg12[%c0_179, %c0_180, %c0_181, %c0_182] : memref<2x10x10x4xf32, #tpu.memory_space<vmem>>, vector<1x8x8x4xf32>
    %176 = vector.shape_cast %175 : vector<1x8x8x4xf32> to vector<8x8x4xf32>
    %177 = vector.shape_cast %176 : vector<8x8x4xf32> to vector<64x4xf32>
    %c1_183 = arith.constant 1 : index
    %c0_184 = arith.constant 0 : index
    %c0_185 = arith.constant 0 : index
    %c0_186 = arith.constant 0 : index
    %178 = vector.load %arg12[%c1_183, %c0_184, %c0_185, %c0_186] : memref<2x10x10x4xf32, #tpu.memory_space<vmem>>, vector<1x8x8x4xf32>
    %179 = vector.shape_cast %178 : vector<1x8x8x4xf32> to vector<8x8x4xf32>
    %180 = vector.shape_cast %179 : vector<8x8x4xf32> to vector<64x4xf32>
    %c0_187 = arith.constant 0 : index
    %c0_188 = arith.constant 0 : index
    %c0_189 = arith.constant 0 : index
    %c0_190 = arith.constant 0 : index
    %c0_191 = arith.constant 0 : index
    %181 = vector.load %arg6[%c0_187, %c0_188, %c0_189, %c0_190, %c0_191] : memref<2x2x9x4x4xf32, #tpu.memory_space<vmem>>, vector<1x1x1x4x4xf32>
    %182 = vector.shape_cast %181 : vector<1x1x1x4x4xf32> to vector<4x4xf32>
    %cst_192 = arith.constant dense<0.000000e+00> : vector<64x4xf32>
    %183 = tpu.matmul %177, %182, %cst_192 {dimension_numbers = #tpu.dot_dimension_numbers<[1], [0], [0], [1], [0, 0, 1, 1], [], []>} : vector<64x4xf32>, vector<4x4xf32>, vector<64x4xf32> -> vector<64x4xf32>
    %184 = arith.addf %173, %183 : vector<64x4xf32>
    %c1_193 = arith.constant 1 : index
    %c0_194 = arith.constant 0 : index
    %c0_195 = arith.constant 0 : index
    %c0_196 = arith.constant 0 : index
    %c0_197 = arith.constant 0 : index
    %185 = vector.load %arg6[%c1_193, %c0_194, %c0_195, %c0_196, %c0_197] : memref<2x2x9x4x4xf32, #tpu.memory_space<vmem>>, vector<1x1x1x4x4xf32>
    %186 = vector.shape_cast %185 : vector<1x1x1x4x4xf32> to vector<4x4xf32>
    %cst_198 = arith.constant dense<0.000000e+00> : vector<64x4xf32>
    %187 = tpu.matmul %180, %186, %cst_198 {dimension_numbers = #tpu.dot_dimension_numbers<[1], [0], [0], [1], [0, 0, 1, 1], [], []>} : vector<64x4xf32>, vector<4x4xf32>, vector<64x4xf32> -> vector<64x4xf32>
    %188 = arith.addf %184, %187 : vector<64x4xf32>
    %c0_199 = arith.constant 0 : index
    %c1_200 = arith.constant 1 : index
    %c0_201 = arith.constant 0 : index
    %c0_202 = arith.constant 0 : index
    %c0_203 = arith.constant 0 : index
    %189 = vector.load %arg6[%c0_199, %c1_200, %c0_201, %c0_202, %c0_203] : memref<2x2x9x4x4xf32, #tpu.memory_space<vmem>>, vector<1x1x1x4x4xf32>
    %190 = vector.shape_cast %189 : vector<1x1x1x4x4xf32> to vector<4x4xf32>
    %cst_204 = arith.constant dense<0.000000e+00> : vector<64x4xf32>
    %191 = tpu.matmul %177, %190, %cst_204 {dimension_numbers = #tpu.dot_dimension_numbers<[1], [0], [0], [1], [0, 0, 1, 1], [], []>} : vector<64x4xf32>, vector<4x4xf32>, vector<64x4xf32> -> vector<64x4xf32>
    %192 = arith.addf %174, %191 : vector<64x4xf32>
    %c1_205 = arith.constant 1 : index
    %c1_206 = arith.constant 1 : index
    %c0_207 = arith.constant 0 : index
    %c0_208 = arith.constant 0 : index
    %c0_209 = arith.constant 0 : index
    %193 = vector.load %arg6[%c1_205, %c1_206, %c0_207, %c0_208, %c0_209] : memref<2x2x9x4x4xf32, #tpu.memory_space<vmem>>, vector<1x1x1x4x4xf32>
    %194 = vector.shape_cast %193 : vector<1x1x1x4x4xf32> to vector<4x4xf32>
    %cst_210 = arith.constant dense<0.000000e+00> : vector<64x4xf32>
    %195 = tpu.matmul %180, %194, %cst_210 {dimension_numbers = #tpu.dot_dimension_numbers<[1], [0], [0], [1], [0, 0, 1, 1], [], []>} : vector<64x4xf32>, vector<4x4xf32>, vector<64x4xf32> -> vector<64x4xf32>
    %196 = arith.addf %192, %195 : vector<64x4xf32>
    %c0_211 = arith.constant 0 : index
    %c0_212 = arith.constant 0 : index
    %c1_213 = arith.constant 1 : index
    %c0_214 = arith.constant 0 : index
    %197 = vector.load %arg12[%c0_211, %c0_212, %c1_213, %c0_214] : memref<2x10x10x4xf32, #tpu.memory_space<vmem>>, vector<1x8x8x4xf32>
    %198 = vector.shape_cast %197 : vector<1x8x8x4xf32> to vector<8x8x4xf32>
    %199 = vector.shape_cast %198 : vector<8x8x4xf32> to vector<64x4xf32>
    %c1_215 = arith.constant 1 : index
    %c0_216 = arith.constant 0 : index
    %c1_217 = arith.constant 1 : index
    %c0_218 = arith.constant 0 : index
    %200 = vector.load %arg12[%c1_215, %c0_216, %c1_217, %c0_218] : memref<2x10x10x4xf32, #tpu.memory_space<vmem>>, vector<1x8x8x4xf32>
    %201 = vector.shape_cast %200 : vector<1x8x8x4xf32> to vector<8x8x4xf32>
    %202 = vector.shape_cast %201 : vector<8x8x4xf32> to vector<64x4xf32>
    %c0_219 = arith.constant 0 : index
    %c0_220 = arith.constant 0 : index
    %c1_221 = arith.constant 1 : index
    %c0_222 = arith.constant 0 : index
    %c0_223 = arith.constant 0 : index
    %203 = vector.load %arg6[%c0_219, %c0_220, %c1_221, %c0_222, %c0_223] : memref<2x2x9x4x4xf32, #tpu.memory_space<vmem>>, vector<1x1x1x4x4xf32>
    %204 = vector.shape_cast %203 : vector<1x1x1x4x4xf32> to vector<4x4xf32>
    %cst_224 = arith.constant dense<0.000000e+00> : vector<64x4xf32>
    %205 = tpu.matmul %199, %204, %cst_224 {dimension_numbers = #tpu.dot_dimension_numbers<[1], [0], [0], [1], [0, 0, 1, 1], [], []>} : vector<64x4xf32>, vector<4x4xf32>, vector<64x4xf32> -> vector<64x4xf32>
    %206 = arith.addf %188, %205 : vector<64x4xf32>
    %c1_225 = arith.constant 1 : index
    %c0_226 = arith.constant 0 : index
    %c1_227 = arith.constant 1 : index
    %c0_228 = arith.constant 0 : index
    %c0_229 = arith.constant 0 : index
    %207 = vector.load %arg6[%c1_225, %c0_226, %c1_227, %c0_228, %c0_229] : memref<2x2x9x4x4xf32, #tpu.memory_space<vmem>>, vector<1x1x1x4x4xf32>
    %208 = vector.shape_cast %207 : vector<1x1x1x4x4xf32> to vector<4x4xf32>
    %cst_230 = arith.constant dense<0.000000e+00> : vector<64x4xf32>
    %209 = tpu.matmul %202, %208, %cst_230 {dimension_numbers = #tpu.dot_dimension_numbers<[1], [0], [0], [1], [0, 0, 1, 1], [], []>} : vector<64x4xf32>, vector<4x4xf32>, vector<64x4xf32> -> vector<64x4xf32>
    %210 = arith.addf %206, %209 : vector<64x4xf32>
    %c0_231 = arith.constant 0 : index
    %c1_232 = arith.constant 1 : index
    %c1_233 = arith.constant 1 : index
    %c0_234 = arith.constant 0 : index
    %c0_235 = arith.constant 0 : index
    %211 = vector.load %arg6[%c0_231, %c1_232, %c1_233, %c0_234, %c0_235] : memref<2x2x9x4x4xf32, #tpu.memory_space<vmem>>, vector<1x1x1x4x4xf32>
    %212 = vector.shape_cast %211 : vector<1x1x1x4x4xf32> to vector<4x4xf32>
    %cst_236 = arith.constant dense<0.000000e+00> : vector<64x4xf32>
    %213 = tpu.matmul %199, %212, %cst_236 {dimension_numbers = #tpu.dot_dimension_numbers<[1], [0], [0], [1], [0, 0, 1, 1], [], []>} : vector<64x4xf32>, vector<4x4xf32>, vector<64x4xf32> -> vector<64x4xf32>
    %214 = arith.addf %196, %213 : vector<64x4xf32>
    %c1_237 = arith.constant 1 : index
    %c1_238 = arith.constant 1 : index
    %c1_239 = arith.constant 1 : index
    %c0_240 = arith.constant 0 : index
    %c0_241 = arith.constant 0 : index
    %215 = vector.load %arg6[%c1_237, %c1_238, %c1_239, %c0_240, %c0_241] : memref<2x2x9x4x4xf32, #tpu.memory_space<vmem>>, vector<1x1x1x4x4xf32>
    %216 = vector.shape_cast %215 : vector<1x1x1x4x4xf32> to vector<4x4xf32>
    %cst_242 = arith.constant dense<0.000000e+00> : vector<64x4xf32>
    %217 = tpu.matmul %202, %216, %cst_242 {dimension_numbers = #tpu.dot_dimension_numbers<[1], [0], [0], [1], [0, 0, 1, 1], [], []>} : vector<64x4xf32>, vector<4x4xf32>, vector<64x4xf32> -> vector<64x4xf32>
    %218 = arith.addf %214, %217 : vector<64x4xf32>
    %c0_243 = arith.constant 0 : index
    %c0_244 = arith.constant 0 : index
    %c2_245 = arith.constant 2 : index
    %c0_246 = arith.constant 0 : index
    %219 = vector.load %arg12[%c0_243, %c0_244, %c2_245, %c0_246] : memref<2x10x10x4xf32, #tpu.memory_space<vmem>>, vector<1x8x8x4xf32>
    %220 = vector.shape_cast %219 : vector<1x8x8x4xf32> to vector<8x8x4xf32>
    %221 = vector.shape_cast %220 : vector<8x8x4xf32> to vector<64x4xf32>
    %c1_247 = arith.constant 1 : index
    %c0_248 = arith.constant 0 : index
    %c2_249 = arith.constant 2 : index
    %c0_250 = arith.constant 0 : index
    %222 = vector.load %arg12[%c1_247, %c0_248, %c2_249, %c0_250] : memref<2x10x10x4xf32, #tpu.memory_space<vmem>>, vector<1x8x8x4xf32>
    %223 = vector.shape_cast %222 : vector<1x8x8x4xf32> to vector<8x8x4xf32>
    %224 = vector.shape_cast %223 : vector<8x8x4xf32> to vector<64x4xf32>
    %c0_251 = arith.constant 0 : index
    %c0_252 = arith.constant 0 : index
    %c2_253 = arith.constant 2 : index
    %c0_254 = arith.constant 0 : index
    %c0_255 = arith.constant 0 : index
    %225 = vector.load %arg6[%c0_251, %c0_252, %c2_253, %c0_254, %c0_255] : memref<2x2x9x4x4xf32, #tpu.memory_space<vmem>>, vector<1x1x1x4x4xf32>
    %226 = vector.shape_cast %225 : vector<1x1x1x4x4xf32> to vector<4x4xf32>
    %cst_256 = arith.constant dense<0.000000e+00> : vector<64x4xf32>
    %227 = tpu.matmul %221, %226, %cst_256 {dimension_numbers = #tpu.dot_dimension_numbers<[1], [0], [0], [1], [0, 0, 1, 1], [], []>} : vector<64x4xf32>, vector<4x4xf32>, vector<64x4xf32> -> vector<64x4xf32>
    %228 = arith.addf %210, %227 : vector<64x4xf32>
    %c1_257 = arith.constant 1 : index
    %c0_258 = arith.constant 0 : index
    %c2_259 = arith.constant 2 : index
    %c0_260 = arith.constant 0 : index
    %c0_261 = arith.constant 0 : index
    %229 = vector.load %arg6[%c1_257, %c0_258, %c2_259, %c0_260, %c0_261] : memref<2x2x9x4x4xf32, #tpu.memory_space<vmem>>, vector<1x1x1x4x4xf32>
    %230 = vector.shape_cast %229 : vector<1x1x1x4x4xf32> to vector<4x4xf32>
    %cst_262 = arith.constant dense<0.000000e+00> : vector<64x4xf32>
    %231 = tpu.matmul %224, %230, %cst_262 {dimension_numbers = #tpu.dot_dimension_numbers<[1], [0], [0], [1], [0, 0, 1, 1], [], []>} : vector<64x4xf32>, vector<4x4xf32>, vector<64x4xf32> -> vector<64x4xf32>
    %232 = arith.addf %228, %231 : vector<64x4xf32>
    %c0_263 = arith.constant 0 : index
    %c1_264 = arith.constant 1 : index
    %c2_265 = arith.constant 2 : index
    %c0_266 = arith.constant 0 : index
    %c0_267 = arith.constant 0 : index
    %233 = vector.load %arg6[%c0_263, %c1_264, %c2_265, %c0_266, %c0_267] : memref<2x2x9x4x4xf32, #tpu.memory_space<vmem>>, vector<1x1x1x4x4xf32>
    %234 = vector.shape_cast %233 : vector<1x1x1x4x4xf32> to vector<4x4xf32>
    %cst_268 = arith.constant dense<0.000000e+00> : vector<64x4xf32>
    %235 = tpu.matmul %221, %234, %cst_268 {dimension_numbers = #tpu.dot_dimension_numbers<[1], [0], [0], [1], [0, 0, 1, 1], [], []>} : vector<64x4xf32>, vector<4x4xf32>, vector<64x4xf32> -> vector<64x4xf32>
    %236 = arith.addf %218, %235 : vector<64x4xf32>
    %c1_269 = arith.constant 1 : index
    %c1_270 = arith.constant 1 : index
    %c2_271 = arith.constant 2 : index
    %c0_272 = arith.constant 0 : index
    %c0_273 = arith.constant 0 : index
    %237 = vector.load %arg6[%c1_269, %c1_270, %c2_271, %c0_272, %c0_273] : memref<2x2x9x4x4xf32, #tpu.memory_space<vmem>>, vector<1x1x1x4x4xf32>
    %238 = vector.shape_cast %237 : vector<1x1x1x4x4xf32> to vector<4x4xf32>
    %cst_274 = arith.constant dense<0.000000e+00> : vector<64x4xf32>
    %239 = tpu.matmul %224, %238, %cst_274 {dimension_numbers = #tpu.dot_dimension_numbers<[1], [0], [0], [1], [0, 0, 1, 1], [], []>} : vector<64x4xf32>, vector<4x4xf32>, vector<64x4xf32> -> vector<64x4xf32>
    %240 = arith.addf %236, %239 : vector<64x4xf32>
    %c0_275 = arith.constant 0 : index
    %c1_276 = arith.constant 1 : index
    %c0_277 = arith.constant 0 : index
    %c0_278 = arith.constant 0 : index
    %241 = vector.load %arg12[%c0_275, %c1_276, %c0_277, %c0_278] : memref<2x10x10x4xf32, #tpu.memory_space<vmem>>, vector<1x8x8x4xf32>
    %242 = vector.shape_cast %241 : vector<1x8x8x4xf32> to vector<8x8x4xf32>
    %243 = vector.shape_cast %242 : vector<8x8x4xf32> to vector<64x4xf32>
    %c1_279 = arith.constant 1 : index
    %c1_280 = arith.constant 1 : index
    %c0_281 = arith.constant 0 : index
    %c0_282 = arith.constant 0 : index
    %244 = vector.load %arg12[%c1_279, %c1_280, %c0_281, %c0_282] : memref<2x10x10x4xf32, #tpu.memory_space<vmem>>, vector<1x8x8x4xf32>
    %245 = vector.shape_cast %244 : vector<1x8x8x4xf32> to vector<8x8x4xf32>
    %246 = vector.shape_cast %245 : vector<8x8x4xf32> to vector<64x4xf32>
    %c0_283 = arith.constant 0 : index
    %c0_284 = arith.constant 0 : index
    %c3_285 = arith.constant 3 : index
    %c0_286 = arith.constant 0 : index
    %c0_287 = arith.constant 0 : index
    %247 = vector.load %arg6[%c0_283, %c0_284, %c3_285, %c0_286, %c0_287] : memref<2x2x9x4x4xf32, #tpu.memory_space<vmem>>, vector<1x1x1x4x4xf32>
    %248 = vector.shape_cast %247 : vector<1x1x1x4x4xf32> to vector<4x4xf32>
    %cst_288 = arith.constant dense<0.000000e+00> : vector<64x4xf32>
    %249 = tpu.matmul %243, %248, %cst_288 {dimension_numbers = #tpu.dot_dimension_numbers<[1], [0], [0], [1], [0, 0, 1, 1], [], []>} : vector<64x4xf32>, vector<4x4xf32>, vector<64x4xf32> -> vector<64x4xf32>
    %250 = arith.addf %232, %249 : vector<64x4xf32>
    %c1_289 = arith.constant 1 : index
    %c0_290 = arith.constant 0 : index
    %c3_291 = arith.constant 3 : index
    %c0_292 = arith.constant 0 : index
    %c0_293 = arith.constant 0 : index
    %251 = vector.load %arg6[%c1_289, %c0_290, %c3_291, %c0_292, %c0_293] : memref<2x2x9x4x4xf32, #tpu.memory_space<vmem>>, vector<1x1x1x4x4xf32>
    %252 = vector.shape_cast %251 : vector<1x1x1x4x4xf32> to vector<4x4xf32>
    %cst_294 = arith.constant dense<0.000000e+00> : vector<64x4xf32>
    %253 = tpu.matmul %246, %252, %cst_294 {dimension_numbers = #tpu.dot_dimension_numbers<[1], [0], [0], [1], [0, 0, 1, 1], [], []>} : vector<64x4xf32>, vector<4x4xf32>, vector<64x4xf32> -> vector<64x4xf32>
    %254 = arith.addf %250, %253 : vector<64x4xf32>
    %c0_295 = arith.constant 0 : index
    %c1_296 = arith.constant 1 : index
    %c3_297 = arith.constant 3 : index
    %c0_298 = arith.constant 0 : index
    %c0_299 = arith.constant 0 : index
    %255 = vector.load %arg6[%c0_295, %c1_296, %c3_297, %c0_298, %c0_299] : memref<2x2x9x4x4xf32, #tpu.memory_space<vmem>>, vector<1x1x1x4x4xf32>
    %256 = vector.shape_cast %255 : vector<1x1x1x4x4xf32> to vector<4x4xf32>
    %cst_300 = arith.constant dense<0.000000e+00> : vector<64x4xf32>
    %257 = tpu.matmul %243, %256, %cst_300 {dimension_numbers = #tpu.dot_dimension_numbers<[1], [0], [0], [1], [0, 0, 1, 1], [], []>} : vector<64x4xf32>, vector<4x4xf32>, vector<64x4xf32> -> vector<64x4xf32>
    %258 = arith.addf %240, %257 : vector<64x4xf32>
    %c1_301 = arith.constant 1 : index
    %c1_302 = arith.constant 1 : index
    %c3_303 = arith.constant 3 : index
    %c0_304 = arith.constant 0 : index
    %c0_305 = arith.constant 0 : index
    %259 = vector.load %arg6[%c1_301, %c1_302, %c3_303, %c0_304, %c0_305] : memref<2x2x9x4x4xf32, #tpu.memory_space<vmem>>, vector<1x1x1x4x4xf32>
    %260 = vector.shape_cast %259 : vector<1x1x1x4x4xf32> to vector<4x4xf32>
    %cst_306 = arith.constant dense<0.000000e+00> : vector<64x4xf32>
    %261 = tpu.matmul %246, %260, %cst_306 {dimension_numbers = #tpu.dot_dimension_numbers<[1], [0], [0], [1], [0, 0, 1, 1], [], []>} : vector<64x4xf32>, vector<4x4xf32>, vector<64x4xf32> -> vector<64x4xf32>
    %262 = arith.addf %258, %261 : vector<64x4xf32>
    %c0_307 = arith.constant 0 : index
    %c1_308 = arith.constant 1 : index
    %c1_309 = arith.constant 1 : index
    %c0_310 = arith.constant 0 : index
    %263 = vector.load %arg12[%c0_307, %c1_308, %c1_309, %c0_310] : memref<2x10x10x4xf32, #tpu.memory_space<vmem>>, vector<1x8x8x4xf32>
    %264 = vector.shape_cast %263 : vector<1x8x8x4xf32> to vector<8x8x4xf32>
    %265 = vector.shape_cast %264 : vector<8x8x4xf32> to vector<64x4xf32>
    %c1_311 = arith.constant 1 : index
    %c1_312 = arith.constant 1 : index
    %c1_313 = arith.constant 1 : index
    %c0_314 = arith.constant 0 : index
    %266 = vector.load %arg12[%c1_311, %c1_312, %c1_313, %c0_314] : memref<2x10x10x4xf32, #tpu.memory_space<vmem>>, vector<1x8x8x4xf32>
    %267 = vector.shape_cast %266 : vector<1x8x8x4xf32> to vector<8x8x4xf32>
    %268 = vector.shape_cast %267 : vector<8x8x4xf32> to vector<64x4xf32>
    %c0_315 = arith.constant 0 : index
    %c0_316 = arith.constant 0 : index
    %c4_317 = arith.constant 4 : index
    %c0_318 = arith.constant 0 : index
    %c0_319 = arith.constant 0 : index
    %269 = vector.load %arg6[%c0_315, %c0_316, %c4_317, %c0_318, %c0_319] : memref<2x2x9x4x4xf32, #tpu.memory_space<vmem>>, vector<1x1x1x4x4xf32>
    %270 = vector.shape_cast %269 : vector<1x1x1x4x4xf32> to vector<4x4xf32>
    %cst_320 = arith.constant dense<0.000000e+00> : vector<64x4xf32>
    %271 = tpu.matmul %265, %270, %cst_320 {dimension_numbers = #tpu.dot_dimension_numbers<[1], [0], [0], [1], [0, 0, 1, 1], [], []>} : vector<64x4xf32>, vector<4x4xf32>, vector<64x4xf32> -> vector<64x4xf32>
    %272 = arith.addf %254, %271 : vector<64x4xf32>
    %c1_321 = arith.constant 1 : index
    %c0_322 = arith.constant 0 : index
    %c4_323 = arith.constant 4 : index
    %c0_324 = arith.constant 0 : index
    %c0_325 = arith.constant 0 : index
    %273 = vector.load %arg6[%c1_321, %c0_322, %c4_323, %c0_324, %c0_325] : memref<2x2x9x4x4xf32, #tpu.memory_space<vmem>>, vector<1x1x1x4x4xf32>
    %274 = vector.shape_cast %273 : vector<1x1x1x4x4xf32> to vector<4x4xf32>
    %cst_326 = arith.constant dense<0.000000e+00> : vector<64x4xf32>
    %275 = tpu.matmul %268, %274, %cst_326 {dimension_numbers = #tpu.dot_dimension_numbers<[1], [0], [0], [1], [0, 0, 1, 1], [], []>} : vector<64x4xf32>, vector<4x4xf32>, vector<64x4xf32> -> vector<64x4xf32>
    %276 = arith.addf %272, %275 : vector<64x4xf32>
    %c0_327 = arith.constant 0 : index
    %c1_328 = arith.constant 1 : index
    %c4_329 = arith.constant 4 : index
    %c0_330 = arith.constant 0 : index
    %c0_331 = arith.constant 0 : index
    %277 = vector.load %arg6[%c0_327, %c1_328, %c4_329, %c0_330, %c0_331] : memref<2x2x9x4x4xf32, #tpu.memory_space<vmem>>, vector<1x1x1x4x4xf32>
    %278 = vector.shape_cast %277 : vector<1x1x1x4x4xf32> to vector<4x4xf32>
    %cst_332 = arith.constant dense<0.000000e+00> : vector<64x4xf32>
    %279 = tpu.matmul %265, %278, %cst_332 {dimension_numbers = #tpu.dot_dimension_numbers<[1], [0], [0], [1], [0, 0, 1, 1], [], []>} : vector<64x4xf32>, vector<4x4xf32>, vector<64x4xf32> -> vector<64x4xf32>
    %280 = arith.addf %262, %279 : vector<64x4xf32>
    %c1_333 = arith.constant 1 : index
    %c1_334 = arith.constant 1 : index
    %c4_335 = arith.constant 4 : index
    %c0_336 = arith.constant 0 : index
    %c0_337 = arith.constant 0 : index
    %281 = vector.load %arg6[%c1_333, %c1_334, %c4_335, %c0_336, %c0_337] : memref<2x2x9x4x4xf32, #tpu.memory_space<vmem>>, vector<1x1x1x4x4xf32>
    %282 = vector.shape_cast %281 : vector<1x1x1x4x4xf32> to vector<4x4xf32>
    %cst_338 = arith.constant dense<0.000000e+00> : vector<64x4xf32>
    %283 = tpu.matmul %268, %282, %cst_338 {dimension_numbers = #tpu.dot_dimension_numbers<[1], [0], [0], [1], [0, 0, 1, 1], [], []>} : vector<64x4xf32>, vector<4x4xf32>, vector<64x4xf32> -> vector<64x4xf32>
    %284 = arith.addf %280, %283 : vector<64x4xf32>
    %c0_339 = arith.constant 0 : index
    %c1_340 = arith.constant 1 : index
    %c2_341 = arith.constant 2 : index
    %c0_342 = arith.constant 0 : index
    %285 = vector.load %arg12[%c0_339, %c1_340, %c2_341, %c0_342] : memref<2x10x10x4xf32, #tpu.memory_space<vmem>>, vector<1x8x8x4xf32>
    %286 = vector.shape_cast %285 : vector<1x8x8x4xf32> to vector<8x8x4xf32>
    %287 = vector.shape_cast %286 : vector<8x8x4xf32> to vector<64x4xf32>
    %c1_343 = arith.constant 1 : index
    %c1_344 = arith.constant 1 : index
    %c2_345 = arith.constant 2 : index
    %c0_346 = arith.constant 0 : index
    %288 = vector.load %arg12[%c1_343, %c1_344, %c2_345, %c0_346] : memref<2x10x10x4xf32, #tpu.memory_space<vmem>>, vector<1x8x8x4xf32>
    %289 = vector.shape_cast %288 : vector<1x8x8x4xf32> to vector<8x8x4xf32>
    %290 = vector.shape_cast %289 : vector<8x8x4xf32> to vector<64x4xf32>
    %c0_347 = arith.constant 0 : index
    %c0_348 = arith.constant 0 : index
    %c5_349 = arith.constant 5 : index
    %c0_350 = arith.constant 0 : index
    %c0_351 = arith.constant 0 : index
    %291 = vector.load %arg6[%c0_347, %c0_348, %c5_349, %c0_350, %c0_351] : memref<2x2x9x4x4xf32, #tpu.memory_space<vmem>>, vector<1x1x1x4x4xf32>
    %292 = vector.shape_cast %291 : vector<1x1x1x4x4xf32> to vector<4x4xf32>
    %cst_352 = arith.constant dense<0.000000e+00> : vector<64x4xf32>
    %293 = tpu.matmul %287, %292, %cst_352 {dimension_numbers = #tpu.dot_dimension_numbers<[1], [0], [0], [1], [0, 0, 1, 1], [], []>} : vector<64x4xf32>, vector<4x4xf32>, vector<64x4xf32> -> vector<64x4xf32>
    %294 = arith.addf %276, %293 : vector<64x4xf32>
    %c1_353 = arith.constant 1 : index
    %c0_354 = arith.constant 0 : index
    %c5_355 = arith.constant 5 : index
    %c0_356 = arith.constant 0 : index
    %c0_357 = arith.constant 0 : index
    %295 = vector.load %arg6[%c1_353, %c0_354, %c5_355, %c0_356, %c0_357] : memref<2x2x9x4x4xf32, #tpu.memory_space<vmem>>, vector<1x1x1x4x4xf32>
    %296 = vector.shape_cast %295 : vector<1x1x1x4x4xf32> to vector<4x4xf32>
    %cst_358 = arith.constant dense<0.000000e+00> : vector<64x4xf32>
    %297 = tpu.matmul %290, %296, %cst_358 {dimension_numbers = #tpu.dot_dimension_numbers<[1], [0], [0], [1], [0, 0, 1, 1], [], []>} : vector<64x4xf32>, vector<4x4xf32>, vector<64x4xf32> -> vector<64x4xf32>
    %298 = arith.addf %294, %297 : vector<64x4xf32>
    %c0_359 = arith.constant 0 : index
    %c1_360 = arith.constant 1 : index
    %c5_361 = arith.constant 5 : index
    %c0_362 = arith.constant 0 : index
    %c0_363 = arith.constant 0 : index
    %299 = vector.load %arg6[%c0_359, %c1_360, %c5_361, %c0_362, %c0_363] : memref<2x2x9x4x4xf32, #tpu.memory_space<vmem>>, vector<1x1x1x4x4xf32>
    %300 = vector.shape_cast %299 : vector<1x1x1x4x4xf32> to vector<4x4xf32>
    %cst_364 = arith.constant dense<0.000000e+00> : vector<64x4xf32>
    %301 = tpu.matmul %287, %300, %cst_364 {dimension_numbers = #tpu.dot_dimension_numbers<[1], [0], [0], [1], [0, 0, 1, 1], [], []>} : vector<64x4xf32>, vector<4x4xf32>, vector<64x4xf32> -> vector<64x4xf32>
    %302 = arith.addf %284, %301 : vector<64x4xf32>
    %c1_365 = arith.constant 1 : index
    %c1_366 = arith.constant 1 : index
    %c5_367 = arith.constant 5 : index
    %c0_368 = arith.constant 0 : index
    %c0_369 = arith.constant 0 : index
    %303 = vector.load %arg6[%c1_365, %c1_366, %c5_367, %c0_368, %c0_369] : memref<2x2x9x4x4xf32, #tpu.memory_space<vmem>>, vector<1x1x1x4x4xf32>
    %304 = vector.shape_cast %303 : vector<1x1x1x4x4xf32> to vector<4x4xf32>
    %cst_370 = arith.constant dense<0.000000e+00> : vector<64x4xf32>
    %305 = tpu.matmul %290, %304, %cst_370 {dimension_numbers = #tpu.dot_dimension_numbers<[1], [0], [0], [1], [0, 0, 1, 1], [], []>} : vector<64x4xf32>, vector<4x4xf32>, vector<64x4xf32> -> vector<64x4xf32>
    %306 = arith.addf %302, %305 : vector<64x4xf32>
    %c0_371 = arith.constant 0 : index
    %c2_372 = arith.constant 2 : index
    %c0_373 = arith.constant 0 : index
    %c0_374 = arith.constant 0 : index
    %307 = vector.load %arg12[%c0_371, %c2_372, %c0_373, %c0_374] : memref<2x10x10x4xf32, #tpu.memory_space<vmem>>, vector<1x8x8x4xf32>
    %308 = vector.shape_cast %307 : vector<1x8x8x4xf32> to vector<8x8x4xf32>
    %309 = vector.shape_cast %308 : vector<8x8x4xf32> to vector<64x4xf32>
    %c1_375 = arith.constant 1 : index
    %c2_376 = arith.constant 2 : index
    %c0_377 = arith.constant 0 : index
    %c0_378 = arith.constant 0 : index
    %310 = vector.load %arg12[%c1_375, %c2_376, %c0_377, %c0_378] : memref<2x10x10x4xf32, #tpu.memory_space<vmem>>, vector<1x8x8x4xf32>
    %311 = vector.shape_cast %310 : vector<1x8x8x4xf32> to vector<8x8x4xf32>
    %312 = vector.shape_cast %311 : vector<8x8x4xf32> to vector<64x4xf32>
    %c0_379 = arith.constant 0 : index
    %c0_380 = arith.constant 0 : index
    %c6_381 = arith.constant 6 : index
    %c0_382 = arith.constant 0 : index
    %c0_383 = arith.constant 0 : index
    %313 = vector.load %arg6[%c0_379, %c0_380, %c6_381, %c0_382, %c0_383] : memref<2x2x9x4x4xf32, #tpu.memory_space<vmem>>, vector<1x1x1x4x4xf32>
    %314 = vector.shape_cast %313 : vector<1x1x1x4x4xf32> to vector<4x4xf32>
    %cst_384 = arith.constant dense<0.000000e+00> : vector<64x4xf32>
    %315 = tpu.matmul %309, %314, %cst_384 {dimension_numbers = #tpu.dot_dimension_numbers<[1], [0], [0], [1], [0, 0, 1, 1], [], []>} : vector<64x4xf32>, vector<4x4xf32>, vector<64x4xf32> -> vector<64x4xf32>
    %316 = arith.addf %298, %315 : vector<64x4xf32>
    %c1_385 = arith.constant 1 : index
    %c0_386 = arith.constant 0 : index
    %c6_387 = arith.constant 6 : index
    %c0_388 = arith.constant 0 : index
    %c0_389 = arith.constant 0 : index
    %317 = vector.load %arg6[%c1_385, %c0_386, %c6_387, %c0_388, %c0_389] : memref<2x2x9x4x4xf32, #tpu.memory_space<vmem>>, vector<1x1x1x4x4xf32>
    %318 = vector.shape_cast %317 : vector<1x1x1x4x4xf32> to vector<4x4xf32>
    %cst_390 = arith.constant dense<0.000000e+00> : vector<64x4xf32>
    %319 = tpu.matmul %312, %318, %cst_390 {dimension_numbers = #tpu.dot_dimension_numbers<[1], [0], [0], [1], [0, 0, 1, 1], [], []>} : vector<64x4xf32>, vector<4x4xf32>, vector<64x4xf32> -> vector<64x4xf32>
    %320 = arith.addf %316, %319 : vector<64x4xf32>
    %c0_391 = arith.constant 0 : index
    %c1_392 = arith.constant 1 : index
    %c6_393 = arith.constant 6 : index
    %c0_394 = arith.constant 0 : index
    %c0_395 = arith.constant 0 : index
    %321 = vector.load %arg6[%c0_391, %c1_392, %c6_393, %c0_394, %c0_395] : memref<2x2x9x4x4xf32, #tpu.memory_space<vmem>>, vector<1x1x1x4x4xf32>
    %322 = vector.shape_cast %321 : vector<1x1x1x4x4xf32> to vector<4x4xf32>
    %cst_396 = arith.constant dense<0.000000e+00> : vector<64x4xf32>
    %323 = tpu.matmul %309, %322, %cst_396 {dimension_numbers = #tpu.dot_dimension_numbers<[1], [0], [0], [1], [0, 0, 1, 1], [], []>} : vector<64x4xf32>, vector<4x4xf32>, vector<64x4xf32> -> vector<64x4xf32>
    %324 = arith.addf %306, %323 : vector<64x4xf32>
    %c1_397 = arith.constant 1 : index
    %c1_398 = arith.constant 1 : index
    %c6_399 = arith.constant 6 : index
    %c0_400 = arith.constant 0 : index
    %c0_401 = arith.constant 0 : index
    %325 = vector.load %arg6[%c1_397, %c1_398, %c6_399, %c0_400, %c0_401] : memref<2x2x9x4x4xf32, #tpu.memory_space<vmem>>, vector<1x1x1x4x4xf32>
    %326 = vector.shape_cast %325 : vector<1x1x1x4x4xf32> to vector<4x4xf32>
    %cst_402 = arith.constant dense<0.000000e+00> : vector<64x4xf32>
    %327 = tpu.matmul %312, %326, %cst_402 {dimension_numbers = #tpu.dot_dimension_numbers<[1], [0], [0], [1], [0, 0, 1, 1], [], []>} : vector<64x4xf32>, vector<4x4xf32>, vector<64x4xf32> -> vector<64x4xf32>
    %328 = arith.addf %324, %327 : vector<64x4xf32>
    %c0_403 = arith.constant 0 : index
    %c2_404 = arith.constant 2 : index
    %c1_405 = arith.constant 1 : index
    %c0_406 = arith.constant 0 : index
    %329 = vector.load %arg12[%c0_403, %c2_404, %c1_405, %c0_406] : memref<2x10x10x4xf32, #tpu.memory_space<vmem>>, vector<1x8x8x4xf32>
    %330 = vector.shape_cast %329 : vector<1x8x8x4xf32> to vector<8x8x4xf32>
    %331 = vector.shape_cast %330 : vector<8x8x4xf32> to vector<64x4xf32>
    %c1_407 = arith.constant 1 : index
    %c2_408 = arith.constant 2 : index
    %c1_409 = arith.constant 1 : index
    %c0_410 = arith.constant 0 : index
    %332 = vector.load %arg12[%c1_407, %c2_408, %c1_409, %c0_410] : memref<2x10x10x4xf32, #tpu.memory_space<vmem>>, vector<1x8x8x4xf32>
    %333 = vector.shape_cast %332 : vector<1x8x8x4xf32> to vector<8x8x4xf32>
    %334 = vector.shape_cast %333 : vector<8x8x4xf32> to vector<64x4xf32>
    %c0_411 = arith.constant 0 : index
    %c0_412 = arith.constant 0 : index
    %c7_413 = arith.constant 7 : index
    %c0_414 = arith.constant 0 : index
    %c0_415 = arith.constant 0 : index
    %335 = vector.load %arg6[%c0_411, %c0_412, %c7_413, %c0_414, %c0_415] : memref<2x2x9x4x4xf32, #tpu.memory_space<vmem>>, vector<1x1x1x4x4xf32>
    %336 = vector.shape_cast %335 : vector<1x1x1x4x4xf32> to vector<4x4xf32>
    %cst_416 = arith.constant dense<0.000000e+00> : vector<64x4xf32>
    %337 = tpu.matmul %331, %336, %cst_416 {dimension_numbers = #tpu.dot_dimension_numbers<[1], [0], [0], [1], [0, 0, 1, 1], [], []>} : vector<64x4xf32>, vector<4x4xf32>, vector<64x4xf32> -> vector<64x4xf32>
    %338 = arith.addf %320, %337 : vector<64x4xf32>
    %c1_417 = arith.constant 1 : index
    %c0_418 = arith.constant 0 : index
    %c7_419 = arith.constant 7 : index
    %c0_420 = arith.constant 0 : index
    %c0_421 = arith.constant 0 : index
    %339 = vector.load %arg6[%c1_417, %c0_418, %c7_419, %c0_420, %c0_421] : memref<2x2x9x4x4xf32, #tpu.memory_space<vmem>>, vector<1x1x1x4x4xf32>
    %340 = vector.shape_cast %339 : vector<1x1x1x4x4xf32> to vector<4x4xf32>
    %cst_422 = arith.constant dense<0.000000e+00> : vector<64x4xf32>
    %341 = tpu.matmul %334, %340, %cst_422 {dimension_numbers = #tpu.dot_dimension_numbers<[1], [0], [0], [1], [0, 0, 1, 1], [], []>} : vector<64x4xf32>, vector<4x4xf32>, vector<64x4xf32> -> vector<64x4xf32>
    %342 = arith.addf %338, %341 : vector<64x4xf32>
    %c0_423 = arith.constant 0 : index
    %c1_424 = arith.constant 1 : index
    %c7_425 = arith.constant 7 : index
    %c0_426 = arith.constant 0 : index
    %c0_427 = arith.constant 0 : index
    %343 = vector.load %arg6[%c0_423, %c1_424, %c7_425, %c0_426, %c0_427] : memref<2x2x9x4x4xf32, #tpu.memory_space<vmem>>, vector<1x1x1x4x4xf32>
    %344 = vector.shape_cast %343 : vector<1x1x1x4x4xf32> to vector<4x4xf32>
    %cst_428 = arith.constant dense<0.000000e+00> : vector<64x4xf32>
    %345 = tpu.matmul %331, %344, %cst_428 {dimension_numbers = #tpu.dot_dimension_numbers<[1], [0], [0], [1], [0, 0, 1, 1], [], []>} : vector<64x4xf32>, vector<4x4xf32>, vector<64x4xf32> -> vector<64x4xf32>
    %346 = arith.addf %328, %345 : vector<64x4xf32>
    %c1_429 = arith.constant 1 : index
    %c1_430 = arith.constant 1 : index
    %c7_431 = arith.constant 7 : index
    %c0_432 = arith.constant 0 : index
    %c0_433 = arith.constant 0 : index
    %347 = vector.load %arg6[%c1_429, %c1_430, %c7_431, %c0_432, %c0_433] : memref<2x2x9x4x4xf32, #tpu.memory_space<vmem>>, vector<1x1x1x4x4xf32>
    %348 = vector.shape_cast %347 : vector<1x1x1x4x4xf32> to vector<4x4xf32>
    %cst_434 = arith.constant dense<0.000000e+00> : vector<64x4xf32>
    %349 = tpu.matmul %334, %348, %cst_434 {dimension_numbers = #tpu.dot_dimension_numbers<[1], [0], [0], [1], [0, 0, 1, 1], [], []>} : vector<64x4xf32>, vector<4x4xf32>, vector<64x4xf32> -> vector<64x4xf32>
    %350 = arith.addf %346, %349 : vector<64x4xf32>
    %c0_435 = arith.constant 0 : index
    %c2_436 = arith.constant 2 : index
    %c2_437 = arith.constant 2 : index
    %c0_438 = arith.constant 0 : index
    %351 = vector.load %arg12[%c0_435, %c2_436, %c2_437, %c0_438] : memref<2x10x10x4xf32, #tpu.memory_space<vmem>>, vector<1x8x8x4xf32>
    %352 = vector.shape_cast %351 : vector<1x8x8x4xf32> to vector<8x8x4xf32>
    %353 = vector.shape_cast %352 : vector<8x8x4xf32> to vector<64x4xf32>
    %c1_439 = arith.constant 1 : index
    %c2_440 = arith.constant 2 : index
    %c2_441 = arith.constant 2 : index
    %c0_442 = arith.constant 0 : index
    %354 = vector.load %arg12[%c1_439, %c2_440, %c2_441, %c0_442] : memref<2x10x10x4xf32, #tpu.memory_space<vmem>>, vector<1x8x8x4xf32>
    %355 = vector.shape_cast %354 : vector<1x8x8x4xf32> to vector<8x8x4xf32>
    %356 = vector.shape_cast %355 : vector<8x8x4xf32> to vector<64x4xf32>
    %c0_443 = arith.constant 0 : index
    %c0_444 = arith.constant 0 : index
    %c8_445 = arith.constant 8 : index
    %c0_446 = arith.constant 0 : index
    %c0_447 = arith.constant 0 : index
    %357 = vector.load %arg6[%c0_443, %c0_444, %c8_445, %c0_446, %c0_447] : memref<2x2x9x4x4xf32, #tpu.memory_space<vmem>>, vector<1x1x1x4x4xf32>
    %358 = vector.shape_cast %357 : vector<1x1x1x4x4xf32> to vector<4x4xf32>
    %cst_448 = arith.constant dense<0.000000e+00> : vector<64x4xf32>
    %359 = tpu.matmul %353, %358, %cst_448 {dimension_numbers = #tpu.dot_dimension_numbers<[1], [0], [0], [1], [0, 0, 1, 1], [], []>} : vector<64x4xf32>, vector<4x4xf32>, vector<64x4xf32> -> vector<64x4xf32>
    %360 = arith.addf %342, %359 : vector<64x4xf32>
    %c1_449 = arith.constant 1 : index
    %c0_450 = arith.constant 0 : index
    %c8_451 = arith.constant 8 : index
    %c0_452 = arith.constant 0 : index
    %c0_453 = arith.constant 0 : index
    %361 = vector.load %arg6[%c1_449, %c0_450, %c8_451, %c0_452, %c0_453] : memref<2x2x9x4x4xf32, #tpu.memory_space<vmem>>, vector<1x1x1x4x4xf32>
    %362 = vector.shape_cast %361 : vector<1x1x1x4x4xf32> to vector<4x4xf32>
    %cst_454 = arith.constant dense<0.000000e+00> : vector<64x4xf32>
    %363 = tpu.matmul %356, %362, %cst_454 {dimension_numbers = #tpu.dot_dimension_numbers<[1], [0], [0], [1], [0, 0, 1, 1], [], []>} : vector<64x4xf32>, vector<4x4xf32>, vector<64x4xf32> -> vector<64x4xf32>
    %364 = arith.addf %360, %363 : vector<64x4xf32>
    %c0_455 = arith.constant 0 : index
    %c1_456 = arith.constant 1 : index
    %c8_457 = arith.constant 8 : index
    %c0_458 = arith.constant 0 : index
    %c0_459 = arith.constant 0 : index
    %365 = vector.load %arg6[%c0_455, %c1_456, %c8_457, %c0_458, %c0_459] : memref<2x2x9x4x4xf32, #tpu.memory_space<vmem>>, vector<1x1x1x4x4xf32>
    %366 = vector.shape_cast %365 : vector<1x1x1x4x4xf32> to vector<4x4xf32>
    %cst_460 = arith.constant dense<0.000000e+00> : vector<64x4xf32>
    %367 = tpu.matmul %353, %366, %cst_460 {dimension_numbers = #tpu.dot_dimension_numbers<[1], [0], [0], [1], [0, 0, 1, 1], [], []>} : vector<64x4xf32>, vector<4x4xf32>, vector<64x4xf32> -> vector<64x4xf32>
    %368 = arith.addf %350, %367 : vector<64x4xf32>
    %c1_461 = arith.constant 1 : index
    %c1_462 = arith.constant 1 : index
    %c8_463 = arith.constant 8 : index
    %c0_464 = arith.constant 0 : index
    %c0_465 = arith.constant 0 : index
    %369 = vector.load %arg6[%c1_461, %c1_462, %c8_463, %c0_464, %c0_465] : memref<2x2x9x4x4xf32, #tpu.memory_space<vmem>>, vector<1x1x1x4x4xf32>
    %370 = vector.shape_cast %369 : vector<1x1x1x4x4xf32> to vector<4x4xf32>
    %cst_466 = arith.constant dense<0.000000e+00> : vector<64x4xf32>
    %371 = tpu.matmul %356, %370, %cst_466 {dimension_numbers = #tpu.dot_dimension_numbers<[1], [0], [0], [1], [0, 0, 1, 1], [], []>} : vector<64x4xf32>, vector<4x4xf32>, vector<64x4xf32> -> vector<64x4xf32>
    %372 = arith.addf %368, %371 : vector<64x4xf32>
    %c0_467 = arith.constant 0 : index
    %c0_468 = arith.constant 0 : index
    %c0_469 = arith.constant 0 : index
    %373 = vector.load %arg7[%c0_467, %c0_468, %c0_469] : memref<2x1x4xf32, #tpu.memory_space<vmem>>, vector<1x1x4xf32>
    %374 = vector.shape_cast %373 : vector<1x1x4xf32> to vector<1x4xf32>
    %375 = vector.broadcast %374 : vector<1x4xf32> to vector<64x4xf32>
    %376 = arith.addf %364, %375 : vector<64x4xf32>
    %c1_470 = arith.constant 1 : index
    %c0_471 = arith.constant 0 : index
    %c0_472 = arith.constant 0 : index
    %377 = vector.load %arg7[%c1_470, %c0_471, %c0_472] : memref<2x1x4xf32, #tpu.memory_space<vmem>>, vector<1x1x4xf32>
    %378 = vector.shape_cast %377 : vector<1x1x4xf32> to vector<1x4xf32>
    %379 = vector.broadcast %378 : vector<1x4xf32> to vector<64x4xf32>
    %380 = arith.addf %372, %379 : vector<64x4xf32>
    %cst_473 = arith.constant dense<0.000000e+00> : vector<4xf32>
    %381 = vector.multi_reduction <add>, %376, %cst_473 [0] : vector<64x4xf32> to vector<4xf32>
    %382 = vector.shape_cast %381 : vector<4xf32> to vector<1x4xf32>
    %cst_474 = arith.constant dense<0.000000e+00> : vector<4xf32>
    %383 = vector.multi_reduction <add>, %380, %cst_474 [0] : vector<64x4xf32> to vector<4xf32>
    %384 = vector.shape_cast %383 : vector<4xf32> to vector<1x4xf32>
    %385 = arith.addf %382, %384 : vector<1x4xf32>
    %cst_475 = arith.constant 7.812500e-03 : f32
    %386 = vector.broadcast %cst_475 : f32 to vector<1x4xf32>
    %387 = arith.mulf %385, %386 : vector<1x4xf32>
    %388 = vector.broadcast %387 : vector<1x4xf32> to vector<64x4xf32>
    %389 = arith.subf %376, %388 : vector<64x4xf32>
    %390 = vector.broadcast %387 : vector<1x4xf32> to vector<64x4xf32>
    %391 = arith.subf %380, %390 : vector<64x4xf32>
    %392 = arith.mulf %389, %389 : vector<64x4xf32>
    %cst_476 = arith.constant dense<0.000000e+00> : vector<4xf32>
    %393 = vector.multi_reduction <add>, %392, %cst_476 [0] : vector<64x4xf32> to vector<4xf32>
    %394 = vector.shape_cast %393 : vector<4xf32> to vector<1x4xf32>
    %395 = arith.mulf %391, %391 : vector<64x4xf32>
    %cst_477 = arith.constant dense<0.000000e+00> : vector<4xf32>
    %396 = vector.multi_reduction <add>, %395, %cst_477 [0] : vector<64x4xf32> to vector<4xf32>
    %397 = vector.shape_cast %396 : vector<4xf32> to vector<1x4xf32>
    %398 = arith.addf %394, %397 : vector<1x4xf32>
    %cst_478 = arith.constant 7.812500e-03 : f32
    %399 = vector.broadcast %cst_478 : f32 to vector<1x4xf32>
    %400 = arith.mulf %398, %399 : vector<1x4xf32>
    %cst_479 = arith.constant 9.99999974E-6 : f32
    %401 = vector.broadcast %cst_479 : f32 to vector<1x4xf32>
    %402 = arith.addf %400, %401 : vector<1x4xf32>
    %403 = math.rsqrt %402 : vector<1x4xf32>
    %404 = vector.broadcast %403 : vector<1x4xf32> to vector<64x4xf32>
    %405 = arith.mulf %389, %404 : vector<64x4xf32>
    %c0_480 = arith.constant 0 : index
    %c0_481 = arith.constant 0 : index
    %c0_482 = arith.constant 0 : index
    %406 = vector.load %arg8[%c0_480, %c0_481, %c0_482] : memref<2x1x4xf32, #tpu.memory_space<vmem>>, vector<1x1x4xf32>
    %407 = vector.shape_cast %406 : vector<1x1x4xf32> to vector<1x4xf32>
    %408 = vector.broadcast %407 : vector<1x4xf32> to vector<64x4xf32>
    %409 = arith.mulf %405, %408 : vector<64x4xf32>
    %c0_483 = arith.constant 0 : index
    %c0_484 = arith.constant 0 : index
    %c0_485 = arith.constant 0 : index
    %410 = vector.load %arg9[%c0_483, %c0_484, %c0_485] : memref<2x1x4xf32, #tpu.memory_space<vmem>>, vector<1x1x4xf32>
    %411 = vector.shape_cast %410 : vector<1x1x4xf32> to vector<1x4xf32>
    %412 = vector.broadcast %411 : vector<1x4xf32> to vector<64x4xf32>
    %413 = arith.addf %409, %412 : vector<64x4xf32>
    %cst_486 = arith.constant 0.000000e+00 : f32
    %414 = vector.broadcast %cst_486 : f32 to vector<64x4xf32>
    %415 = arith.maximumf %413, %414 : vector<64x4xf32>
    %416 = vector.broadcast %403 : vector<1x4xf32> to vector<64x4xf32>
    %417 = arith.mulf %391, %416 : vector<64x4xf32>
    %c1_487 = arith.constant 1 : index
    %c0_488 = arith.constant 0 : index
    %c0_489 = arith.constant 0 : index
    %418 = vector.load %arg8[%c1_487, %c0_488, %c0_489] : memref<2x1x4xf32, #tpu.memory_space<vmem>>, vector<1x1x4xf32>
    %419 = vector.shape_cast %418 : vector<1x1x4xf32> to vector<1x4xf32>
    %420 = vector.broadcast %419 : vector<1x4xf32> to vector<64x4xf32>
    %421 = arith.mulf %417, %420 : vector<64x4xf32>
    %c1_490 = arith.constant 1 : index
    %c0_491 = arith.constant 0 : index
    %c0_492 = arith.constant 0 : index
    %422 = vector.load %arg9[%c1_490, %c0_491, %c0_492] : memref<2x1x4xf32, #tpu.memory_space<vmem>>, vector<1x1x4xf32>
    %423 = vector.shape_cast %422 : vector<1x1x4xf32> to vector<1x4xf32>
    %424 = vector.broadcast %423 : vector<1x4xf32> to vector<64x4xf32>
    %425 = arith.addf %421, %424 : vector<64x4xf32>
    %cst_493 = arith.constant 0.000000e+00 : f32
    %426 = vector.broadcast %cst_493 : f32 to vector<64x4xf32>
    %427 = arith.maximumf %425, %426 : vector<64x4xf32>
    %c0_494 = arith.constant 0 : index
    %c0_495 = arith.constant 0 : index
    %c0_496 = arith.constant 0 : index
    %c0_497 = arith.constant 0 : index
    %428 = vector.load %arg10[%c0_494, %c0_495, %c0_496, %c0_497] : memref<1x2x64x4xf32, #tpu.memory_space<vmem>>, vector<1x1x64x4xf32>
    %429 = vector.shape_cast %428 : vector<1x1x64x4xf32> to vector<64x4xf32>
    %430 = vector.shape_cast %415 : vector<64x4xf32> to vector<1x1x64x4xf32>
    tpu.vector_store %arg10[%c0_494, %c0_495, %c0_496, %c0_497], %430 {strides = array<i32>} : memref<1x2x64x4xf32, #tpu.memory_space<vmem>>, vector<1x1x64x4xf32>,
    %c0_498 = arith.constant 0 : index
    %c1_499 = arith.constant 1 : index
    %c0_500 = arith.constant 0 : index
    %c0_501 = arith.constant 0 : index
    %431 = vector.load %arg10[%c0_498, %c1_499, %c0_500, %c0_501] : memref<1x2x64x4xf32, #tpu.memory_space<vmem>>, vector<1x1x64x4xf32>
    %432 = vector.shape_cast %431 : vector<1x1x64x4xf32> to vector<64x4xf32>
    %433 = vector.shape_cast %427 : vector<64x4xf32> to vector<1x1x64x4xf32>
    tpu.vector_store %arg10[%c0_498, %c1_499, %c0_500, %c0_501], %433 {strides = array<i32>} : memref<1x2x64x4xf32, #tpu.memory_space<vmem>>, vector<1x1x64x4xf32>,
    return
  }
  func.func @transform_0(%arg0: i32) -> (i32, i32, i32, i32, i32) {
    %c0_i32 = arith.constant 0 : i32
    %c0_i32_0 = arith.constant 0 : i32
    %c0_i32_1 = arith.constant 0 : i32
    %c0_i32_2 = arith.constant 0 : i32
    %c0_i32_3 = arith.constant 0 : i32
    return %arg0, %c0_i32, %c0_i32_0, %c0_i32_1, %c0_i32_2 : i32, i32, i32, i32, i32
  }
  func.func @transform_1(%arg0: i32) -> (i32, i32, i32, i32) {
    %c0_i32 = arith.constant 0 : i32
    %c0_i32_0 = arith.constant 0 : i32
    %c0_i32_1 = arith.constant 0 : i32
    %c0_i32_2 = arith.constant 0 : i32
    %c0_i32_3 = arith.constant 0 : i32
    return %c0_i32, %c0_i32_0, %c0_i32_1, %c0_i32_2 : i32, i32, i32, i32
  }
  func.func @transform_2(%arg0: i32) -> (i32, i32, i32) {
    %c0_i32 = arith.constant 0 : i32
    %c0_i32_0 = arith.constant 0 : i32
    %c0_i32_1 = arith.constant 0 : i32
    %c0_i32_2 = arith.constant 0 : i32
    return %c0_i32, %c0_i32_0, %c0_i32_1 : i32, i32, i32
  }
  func.func @transform_3(%arg0: i32) -> (i32, i32, i32) {
    %c0_i32 = arith.constant 0 : i32
    %c0_i32_0 = arith.constant 0 : i32
    %c0_i32_1 = arith.constant 0 : i32
    %c0_i32_2 = arith.constant 0 : i32
    return %c0_i32, %c0_i32_0, %c0_i32_1 : i32, i32, i32
  }
  func.func @transform_4(%arg0: i32) -> (i32, i32, i32) {
    %c0_i32 = arith.constant 0 : i32
    %c0_i32_0 = arith.constant 0 : i32
    %c0_i32_1 = arith.constant 0 : i32
    %c0_i32_2 = arith.constant 0 : i32
    return %c0_i32, %c0_i32_0, %c0_i32_1 : i32, i32, i32
  }
  func.func @transform_5(%arg0: i32) -> (i32, i32, i32, i32, i32) {
    %c0_i32 = arith.constant 0 : i32
    %c0_i32_0 = arith.constant 0 : i32
    %c0_i32_1 = arith.constant 0 : i32
    %c0_i32_2 = arith.constant 0 : i32
    %c0_i32_3 = arith.constant 0 : i32
    %c0_i32_4 = arith.constant 0 : i32
    return %c0_i32, %c0_i32_0, %c0_i32_1, %c0_i32_2, %c0_i32_3 : i32, i32, i32, i32, i32
  }
  func.func @transform_6(%arg0: i32) -> (i32, i32, i32) {
    %c0_i32 = arith.constant 0 : i32
    %c0_i32_0 = arith.constant 0 : i32
    %c0_i32_1 = arith.constant 0 : i32
    %c0_i32_2 = arith.constant 0 : i32
    return %c0_i32, %c0_i32_0, %c0_i32_1 : i32, i32, i32
  }
  func.func @transform_7(%arg0: i32) -> (i32, i32, i32) {
    %c0_i32 = arith.constant 0 : i32
    %c0_i32_0 = arith.constant 0 : i32
    %c0_i32_1 = arith.constant 0 : i32
    %c0_i32_2 = arith.constant 0 : i32
    return %c0_i32, %c0_i32_0, %c0_i32_1 : i32, i32, i32
  }
  func.func @transform_8(%arg0: i32) -> (i32, i32, i32) {
    %c0_i32 = arith.constant 0 : i32
    %c0_i32_0 = arith.constant 0 : i32
    %c0_i32_1 = arith.constant 0 : i32
    %c0_i32_2 = arith.constant 0 : i32
    return %c0_i32, %c0_i32_0, %c0_i32_1 : i32, i32, i32
  }
  func.func @transform_9(%arg0: i32) -> (i32, i32, i32, i32) {
    %c0_i32 = arith.constant 0 : i32
    %c0_i32_0 = arith.constant 0 : i32
    %c0_i32_1 = arith.constant 0 : i32
    %c0_i32_2 = arith.constant 0 : i32
    return %arg0, %c0_i32, %c0_i32_0, %c0_i32_1 : i32, i32, i32, i32
  }
}

</mosaic_0001>

<bundles_post_ra>
// kernel: down2d_pallas.1
= control target key start
LH: loop header
LB: loop body
LE: loop exit
PB: predicated region body
PF: predicated region fallthrough
CT: control target
= control target key end

     0   :  { %s10145_s30 = smov 0   ;;  %s12526_s0 = inlined_call_operand.vmem [shape: f32[2,4,8,8,4], index: 0, kind: input, shape index: {}]   ;;  %s12527_s1 = inlined_call_operand.vmem [shape: f32[2,9,4,4], index: 1, kind: input, shape index: {}]   ;;  %s12528_s2 = inlined_call_operand.vmem [shape: f32[2,1,4], index: 2, kind: input, shape index: {}]   ;;  %s12529_s3 = inlined_call_operand.vmem [shape: f32[2,1,4], index: 3, kind: input, shape index: {}]   ;;  %s12530_s4 = inlined_call_operand.vmem [shape: f32[2,1,4], index: 4, kind: input, shape index: {}]   ;;  %s12531_s5 = inlined_call_operand.vmem [shape: f32[2,2,9,4,4], index: 5, kind: input, shape index: {}]   ;;  %s12532_s6 = inlined_call_operand.vmem [shape: f32[2,1,4], index: 6, kind: input, shape index: {}]   ;;  %s12533_s7 = inlined_call_operand.vmem [shape: f32[2,1,4], index: 7, kind: input, shape index: {}]   ;;  %s12534_s8 = inlined_call_operand.vmem [shape: f32[2,1,4], index: 8, kind: input, shape index: {}]   ;;  %s12535_s9 = inlined_call_operand.vmem [shape: f32[2,2,64,4], index: 9, kind: output, shape index: {}]  }
   0x1 LB: > { %s8230_s10 = sadd.s32 4294967295, %s10092_s30   ;;  %p8234_p0 = scmp.ge.s32.totalorder %s10092_s30, 1  ;;  %s10092_s30 = sphi %s10145_s30, %s19_s30  }
   0x2   : > { %p287_p1 = scmp.lt.s32.totalorder %s10092_s30, 3 }
   0x4   : > { %p288_p2 = pnand %p8234_p0, %p287_p1 }
   0x6   : > { %291 = sbr.rel (%p288_p2) target bundleno = 1071 (0x42f), region = 56 }
   0xb   : > { %v8264_v0 = vld [vmem:[%s12527_s1 + $0x4] sm:$0xf]  ;;  %vm476_vm0 = vcmask 1043456   ;;  %v439_v1 = vld [vmem:[%s12527_s1] sm:$0xf]  ;;  %vm400_vm1 = vcmask 31744  }
   0xc   : > { %9317 = vmatprep.subr.msk.mxu0 %vm476_vm0, %v8264_v0  ;;  %9331 = vmatprep.subr.msk.mxu1 %vm476_vm0, %v439_v1  ;;  %vm402_vm2 = vcmask 25600   ;;  %v10164_v2 = vld [vmem:[%s12527_s1 + $0x28] sm:$0xf]  ;;  %v10169_v3 = vld [vmem:[%s12527_s1 + $0x24] sm:$0xf]  ;;  %v10094_v4 = vmov 0.0  }
   0xd   : > { %9318 = vmatpush3.msk.msra.mxu0 %vm476_vm0, %v8264_v0  ;;  %9332 = vmatpush3.msk.msra.mxu1 %vm476_vm0, %v439_v1  ;;  %401 = vst.msk [vmem:[#allocation2] sm:$0xff] %vm400_vm1, %v10094_v4  ;;  %404 = vst.msk [vmem:[#allocation2 + $0x10] sm:$0xff] %vm400_vm1, %v10094_v4  ;;  %p323_p3 = scmp.lt.s32.totalorder %s8230_s10, 1 }
   0xe   : > { %403 = vst.msk [vmem:[#allocation2 + $0x8] sm:$0x3] %vm402_vm2, %v10094_v4  ;;  %405 = vst.msk [vmem:[#allocation2 + $0x18] sm:$0x3] %vm402_vm2, %v10094_v4  ;;  %9345 = vmatprep.subr.msk.mxu0 %vm476_vm0, %v10164_v2  ;;  %9359 = vmatprep.subr.msk.mxu1 %vm476_vm0, %v10169_v3 }
   0xf   : > { %406 = vst.msk [vmem:[#allocation2 + $0x20] sm:$0xff] %vm400_vm1, %v10094_v4  ;;  %408 = vst.msk [vmem:[#allocation2 + $0x30] sm:$0xff] %vm400_vm1, %v10094_v4  ;;  %s12615_s10 = smov (!%p323_p3, %s8230_s10), 1 }
  0x10   : > { %407 = vst.msk [vmem:[#allocation2 + $0x28] sm:$0x3] %vm402_vm2, %v10094_v4  ;;  %409 = vst.msk [vmem:[#allocation2 + $0x38] sm:$0x3] %vm402_vm2, %v10094_v4  ;;  %s8829_s19 = sshll.u32 %s12615_s10, 8  ;;  %s8830_s29 = sshll.u32 %s12615_s10, 7 }
  0x11   : > { %410 = vst.msk [vmem:[#allocation2 + $0x40] sm:$0xff] %vm400_vm1, %v10094_v4  ;;  %412 = vst.msk [vmem:[#allocation2 + $0x50] sm:$0xff] %vm400_vm1, %v10094_v4  ;;  %s10247_s22 = scalar_lea.vmem %s12526_s0, %s8829_s19  ;;  %s12475_s13 = scalar_lea.vmem %s12535_s9, %s8830_s29 }
  0x12   : > { %411 = vst.msk [vmem:[#allocation2 + $0x48] sm:$0x3] %vm402_vm2, %v10094_v4  ;;  %413 = vst.msk [vmem:[#allocation2 + $0x58] sm:$0x3] %vm402_vm2, %v10094_v4  ;;  %v333_v5 = vld [vmem:[%s10247_s22] sm:$0xff]  ;;  %v334_v12 = vld [vmem:[%s10247_s22 + $0x8] sm:$0xff] }
  0x13   : > { %414 = vst.msk [vmem:[#allocation2 + $0x60] sm:$0xff] %vm400_vm1, %v10094_v4  ;;  %416 = vst.msk [vmem:[#allocation2 + $0x70] sm:$0xff] %vm400_vm1, %v10094_v4  ;;  %v8239_v6 = vld [vmem:[%s10247_s22 + $0x40] sm:$0xff]  ;;  %v8240_v13 = vld [vmem:[%s10247_s22 + $0x48] sm:$0xff] }
  0x14   : > { %415 = vst.msk [vmem:[#allocation2 + $0x68] sm:$0x3] %vm402_vm2, %v10094_v4  ;;  %417 = vst.msk [vmem:[#allocation2 + $0x78] sm:$0x3] %vm402_vm2, %v10094_v4  ;;  %v8247_v7 = vld [vmem:[%s10247_s22 + $0x80] sm:$0xff]  ;;  %v350_v10 = vadd.f32 %v8239_v6, %v333_v5  ;;  %v8248_v14 = vld [vmem:[%s10247_s22 + $0x88] sm:$0xff]  ;;  %v351_v16 = vadd.f32 %v8240_v13, %v334_v12 }
  0x15   : > { %418 = vst.msk [vmem:[#allocation2 + $0x80] sm:$0xff] %vm400_vm1, %v10094_v4  ;;  %420 = vst.msk [vmem:[#allocation2 + $0x90] sm:$0xff] %vm400_vm1, %v10094_v4  ;;  %v10252_v8 = vld [vmem:[#allocation2 + $0x1] sm:$0xff]  ;;  %v335_v17 = vld [vmem:[%s10247_s22 + $0x10] sm:$0xff] }
  0x16   : > { %419 = vst.msk [vmem:[#allocation2 + $0x88] sm:$0x3] %vm402_vm2, %v10094_v4  ;;  %421 = vst.msk [vmem:[#allocation2 + $0x98] sm:$0x3] %vm402_vm2, %v10094_v4  ;;  %v10254_v9 = vld [vmem:[#allocation2] sm:$0xff]  ;;  %9319 = vmatprep.mubr.msk.f32.mxu0 %vm400_vm1, %v10252_v8  ;;  %v367_v15 = vadd.f32 %v8247_v7, %v350_v10  ;;  %v8241_v18 = vld [vmem:[%s10247_s22 + $0x50] sm:$0xff]  ;;  %v368_v24 = vadd.f32 %v8248_v14, %v351_v16 }
  0x17   : > { %3059 = vst.msk [vmem:[#allocation3] sm:$0xff] %vm400_vm1, %v10094_v4  ;;  %3061 = vst.msk [vmem:[#allocation3 + $0x10] sm:$0xff] %vm400_vm1, %v10094_v4  ;;  %v8255_v11 = vld [vmem:[%s10247_s22 + $0xc0] sm:$0xff]  ;;  %9333 = vmatprep.mubr.msk.f32.mxu1 %vm400_vm1, %v10254_v9  ;;  %v8256_v19 = vld [vmem:[%s10247_s22 + $0xc8] sm:$0xff]  ;;  %v352_v20 = vadd.f32 %v8241_v18, %v335_v17 }
  0x18   : > { %3060 = vst.msk [vmem:[#allocation3 + $0x8] sm:$0x3] %vm402_vm2, %v10094_v4  ;;  %3062 = vst.msk [vmem:[#allocation3 + $0x18] sm:$0x3] %vm402_vm2, %v10094_v4  ;;  %v8249_v21 = vld [vmem:[%s10247_s22 + $0x90] sm:$0xff]  ;;  %v336_v22 = vld [vmem:[%s10247_s22 + $0x18] sm:$0xff]  ;;  %v384_v23 = vadd.f32 %v8255_v11, %v367_v15  ;;  %v385_v34 = vadd.f32 %v8256_v19, %v368_v24 }
  0x19   : > { %3063 = vst.msk [vmem:[#allocation3 + $0x20] sm:$0xff] %vm400_vm1, %v10094_v4  ;;  %3065 = vst.msk [vmem:[#allocation3 + $0x30] sm:$0xff] %vm400_vm1, %v10094_v4  ;;  %v8257_v25 = vld [vmem:[%s10247_s22 + $0xd0] sm:$0xff]  ;;  %v8242_v26 = vld [vmem:[%s10247_s22 + $0x58] sm:$0xff]  ;;  %v369_v28 = vadd.f32 %v8249_v21, %v352_v20 }
  0x1a   : > { %3064 = vst.msk [vmem:[#allocation3 + $0x28] sm:$0x3] %vm402_vm2, %v10094_v4  ;;  %3066 = vst.msk [vmem:[#allocation3 + $0x38] sm:$0x3] %vm402_vm2, %v10094_v4  ;;  %v8250_v27 = vld [vmem:[%s10247_s22 + $0x98] sm:$0xff]  ;;  %v353_v29 = vadd.f32 %v8242_v26, %v336_v22  ;;  %v337_v30 = vld [vmem:[%s10247_s22 + $0x20] sm:$0xff] }
  0x1b   : > { %3067 = vst.msk [vmem:[#allocation3 + $0x40] sm:$0xff] %vm400_vm1, %v10094_v4  ;;  %3069 = vst.msk [vmem:[#allocation3 + $0x50] sm:$0xff] %vm400_vm1, %v10094_v4  ;;  %v8243_v31 = vld [vmem:[%s10247_s22 + $0x60] sm:$0xff]  ;;  %v392_v33 = vmul.f32 0.25, %v384_v23  ;;  %v8258_v35 = vld [vmem:[%s10247_s22 + $0xd8] sm:$0xff]  ;;  %v386_v39 = vadd.f32 %v8257_v25, %v369_v28  ;;  %v393_v45 = vmul.f32 0.25, %v385_v34 }
  0x1c   : > { %3068 = vst.msk [vmem:[#allocation3 + $0x48] sm:$0x3] %vm402_vm2, %v10094_v4  ;;  %3070 = vst.msk [vmem:[#allocation3 + $0x58] sm:$0x3] %vm402_vm2, %v10094_v4  ;;  %v8251_v32 = vld [vmem:[%s10247_s22 + $0xa0] sm:$0xff]  ;;  %v354_v36 = vadd.f32 %v8243_v31, %v337_v30  ;;  %v338_v37 = vld [vmem:[%s10247_s22 + $0x28] sm:$0xff]  ;;  %v370_v40 = vadd.f32 %v8250_v27, %v353_v29 }
  0x1d   : > { %3071 = vst.msk [vmem:[#allocation3 + $0x60] sm:$0xff] %vm400_vm1, %v10094_v4  ;;  %3073 = vst.msk [vmem:[#allocation3 + $0x70] sm:$0xff] %vm400_vm1, %v10094_v4  ;;  %v8244_v38 = vld [vmem:[%s10247_s22 + $0x68] sm:$0xff]  ;;  %v8259_v41 = vld [vmem:[%s10247_s22 + $0xe0] sm:$0xff]  ;;  %v394_v50 = vmul.f32 0.25, %v386_v39 }
  0x1e   : > { %3072 = vst.msk [vmem:[#allocation3 + $0x68] sm:$0x3] %vm402_vm2, %v10094_v4  ;;  %3074 = vst.msk [vmem:[#allocation3 + $0x78] sm:$0x3] %vm402_vm2, %v10094_v4  ;;  %v355_v42 = vadd.f32 %v8244_v38, %v338_v37  ;;  %v8252_v43 = vld [vmem:[%s10247_s22 + $0xa8] sm:$0xff]  ;;  %v339_v44 = vld [vmem:[%s10247_s22 + $0x30] sm:$0xff]  ;;  %v371_v46 = vadd.f32 %v8251_v32, %v354_v36  ;;  %v387_v51 = vadd.f32 %v8258_v35, %v370_v40 }
  0x1f   : > { %3075 = vst.msk [vmem:[#allocation3 + $0x80] sm:$0xff] %vm400_vm1, %v10094_v4  ;;  %3077 = vst.msk [vmem:[#allocation3 + $0x90] sm:$0xff] %vm400_vm1, %v10094_v4  ;;  %v8260_v47 = vld [vmem:[%s10247_s22 + $0xe8] sm:$0xff]  ;;  %v8245_v48 = vld [vmem:[%s10247_s22 + $0x70] sm:$0xff] }
  0x20   : > { %3076 = vst.msk [vmem:[#allocation3 + $0x88] sm:$0x3] %vm402_vm2, %v10094_v4  ;;  %3078 = vst.msk [vmem:[#allocation3 + $0x98] sm:$0x3] %vm402_vm2, %v10094_v4  ;;  %v8253_v49 = vld [vmem:[%s10247_s22 + $0xb0] sm:$0xff]  ;;  %v372_v52 = vadd.f32 %v8252_v43, %v355_v42  ;;  %v356_v53 = vadd.f32 %v8245_v48, %v339_v44  ;;  %v340_v54 = vld [vmem:[%s10247_s22 + $0x38] sm:$0xff]  ;;  %v388_v56 = vadd.f32 %v8259_v41, %v371_v46 }
  0x21   : > { %3079 = vst.msk [vmem:[#allocation3 + $0xa0] sm:$0xff] %vm400_vm1, %v10094_v4  ;;  %3081 = vst.msk [vmem:[#allocation3 + $0xb0] sm:$0xff] %vm400_vm1, %v10094_v4  ;;  %v8246_v55 = vld [vmem:[%s10247_s22 + $0x78] sm:$0xff]  ;;  %v8261_v57 = vld [vmem:[%s10247_s22 + $0xf0] sm:$0xff]  ;;  %v395_v60 = vmul.f32 0.25, %v387_v51 }
  0x22   : > { %3080 = vst.msk [vmem:[#allocation3 + $0xa8] sm:$0x3] %vm402_vm2, %v10094_v4  ;;  %3082 = vst.msk [vmem:[#allocation3 + $0xb8] sm:$0x3] %vm402_vm2, %v10094_v4  ;;  %v357_v58 = vadd.f32 %v8246_v55, %v340_v54  ;;  %v8254_v59 = vld [vmem:[%s10247_s22 + $0xb8] sm:$0xff]  ;;  %v389_v61 = vadd.f32 %v8260_v47, %v372_v52  ;;  %v373_v62 = vadd.f32 %v8253_v49, %v356_v53  ;;  %v396_v0 = vmul.f32 0.25, %v388_v56 }
  0x23   : > { %3083 = vst.msk [vmem:[#allocation3 + $0xc0] sm:$0xff] %vm400_vm1, %v10094_v4  ;;  %3085 = vst.msk [vmem:[#allocation3 + $0xd0] sm:$0xff] %vm400_vm1, %v10094_v4  ;;  %v8262_v63 = vld [vmem:[%s10247_s22 + $0xf8] sm:$0xff]  ;;  %v8302_v12 = vld [vmem:[%s12527_s1 + $0x8] sm:$0xf] }
  0x24   : > { %3084 = vst.msk [vmem:[#allocation3 + $0xc8] sm:$0x3] %vm402_vm2, %v10094_v4  ;;  %3086 = vst.msk [vmem:[#allocation3 + $0xd8] sm:$0x3] %vm402_vm2, %v10094_v4  ;;  %v374_v1 = vadd.f32 %v8254_v59, %v357_v58  ;;  %v390_v5 = vadd.f32 %v8261_v57, %v373_v62  ;;  %v8312_v13 = vld [vmem:[%s12527_s1 + $0x2c] sm:$0xf] }
  0x25   : > { %3087 = vst.msk [vmem:[#allocation3 + $0xe0] sm:$0xff] %vm400_vm1, %v10094_v4  ;;  %3089 = vst.msk [vmem:[#allocation3 + $0xf0] sm:$0xff] %vm400_vm1, %v10094_v4  ;;  %v8322_v25 = vld [vmem:[%s12527_s1 + $0xc] sm:$0xf]  ;;  %v8332_v26 = vld [vmem:[%s12527_s1 + $0x30] sm:$0xf] }
  0x26   : > { %3088 = vst.msk [vmem:[#allocation3 + $0xe8] sm:$0x3] %vm402_vm2, %v10094_v4  ;;  %3090 = vst.msk [vmem:[#allocation3 + $0xf8] sm:$0x3] %vm402_vm2, %v10094_v4  ;;  %v391_v6 = vadd.f32 %v8262_v63, %v374_v1  ;;  %v398_v11 = vmul.f32 0.25, %v390_v5  ;;  %v2015_v46 = vld [vmem:[#allocation2 + $0x90] sm:$0xff] }
  0x27   : > { %3091 = vst.msk [vmem:[#allocation3 + $0x100] sm:$0xff] %vm400_vm1, %v10094_v4  ;;  %3093 = vst.msk [vmem:[#allocation3 + $0x110] sm:$0xff] %vm400_vm1, %v10094_v4  ;;  %v8342_v28 = vld [vmem:[%s12527_s1 + $0x10] sm:$0xf]  ;;  %v8352_v29 = vld [vmem:[%s12527_s1 + $0x34] sm:$0xf] }
  0x28   : > { %3092 = vst.msk [vmem:[#allocation3 + $0x108] sm:$0x3] %vm402_vm2, %v10094_v4  ;;  %3094 = vst.msk [vmem:[#allocation3 + $0x118] sm:$0x3] %vm402_vm2, %v10094_v4  ;;  %v399_v14 = vmul.f32 0.25, %v391_v6  ;;  %v2283_v47 = vld [vmem:[#allocation2 + $0x91] sm:$0xff] }
  0x29   : > { %3095 = vst.msk [vmem:[#allocation3 + $0x120] sm:$0xff] %vm400_vm1, %v10094_v4  ;;  %3097 = vst.msk [vmem:[#allocation3 + $0x130] sm:$0xff] %vm400_vm1, %v10094_v4  ;;  %v8362_v35 = vld [vmem:[%s12527_s1 + $0x14] sm:$0xf]  ;;  %v8372_v36 = vld [vmem:[%s12527_s1 + $0x38] sm:$0xf] }
  0x2a   : > { %3096 = vst.msk [vmem:[#allocation3 + $0x128] sm:$0x3] %vm402_vm2, %v10094_v4  ;;  %3098 = vst.msk [vmem:[#allocation3 + $0x138] sm:$0x3] %vm402_vm2, %v10094_v4  ;;  %v397_v4 = vmul.f32 0.25, %v389_v61  ;;  %v2551_v48 = vld [vmem:[#allocation2 + $0x92] sm:$0xff] }
  0x2b   : > { %423 = vst.msk [vmem:[#allocation2 + $0x11] sm:$0xff] %vm400_vm1, %v392_v33  ;;  %424 = vst.msk [vmem:[#allocation2 + $0x21] sm:$0xff] %vm400_vm1, %v393_v45  ;;  %v8382_v38 = vld [vmem:[%s12527_s1 + $0x18] sm:$0xf]  ;;  %v8392_v39 = vld [vmem:[%s12527_s1 + $0x3c] sm:$0xf] }
  0x2c   : > { %425 = vst.msk [vmem:[#allocation2 + $0x31] sm:$0xff] %vm400_vm1, %v394_v50  ;;  %426 = vst.msk [vmem:[#allocation2 + $0x41] sm:$0xff] %vm400_vm1, %v395_v60  ;;  %v8402_v41 = vld [vmem:[%s12527_s1 + $0x1c] sm:$0xf]  ;;  %v8412_v42 = vld [vmem:[%s12527_s1 + $0x40] sm:$0xf] }
  0x2d   : > { %427 = vst.msk [vmem:[#allocation2 + $0x51] sm:$0xff] %vm400_vm1, %v396_v0  ;;  %428 = vst.msk [vmem:[#allocation2 + $0x61] sm:$0xff] %vm400_vm1, %v397_v4  ;;  %v8422_v44 = vld [vmem:[%s12527_s1 + $0x20] sm:$0xf]  ;;  %v8432_v45 = vld [vmem:[%s12527_s1 + $0x44] sm:$0xf] }
  0x2e   : > { %429 = vst.msk [vmem:[#allocation2 + $0x71] sm:$0xff] %vm400_vm1, %v398_v11  ;;  %430 = vst.msk [vmem:[#allocation2 + $0x81] sm:$0xff] %vm400_vm1, %v399_v14 }
  0x32   : > { %v10294_v7 = vld [vmem:[#allocation2 + $0x11] sm:$0xff]  ;;  %v10313_v15 = vld [vmem:[#allocation2 + $0x21] sm:$0xff] }
  0x33   : > { %v10296_v10 = vld [vmem:[#allocation2 + $0x10] sm:$0xff]  ;;  %9320 = vmatmul.mubr.msk.f32.vlgmr.msra.gmra.mxu0 %vm400_vm1, %v10294_v7  ;;  %v10315_v16 = vld [vmem:[#allocation2 + $0x20] sm:$0xff] }
  0x34   : > { %9334 = vmatmul.mubr.msk.f32.vlgmr.msra.gmra.mxu1 %vm400_vm1, %v10296_v10  ;;  %9346 = vmatpush3.msk.msra.mxu0 %vm476_vm0, %v10164_v2  ;;  %v10322_v17 = vld [vmem:[#allocation2 + $0x31] sm:$0xff]  ;;  %v10333_v2 = vld [vmem:[#allocation2 + $0x41] sm:$0xff] }
  0x35   : > { %9360 = vmatpush3.msk.msra.mxu1 %vm476_vm0, %v10169_v3  ;;  %9322 = vmatprep.mubr.msk.f32.mxu0 %vm400_vm1, %v10313_v15  ;;  %v10324_v18 = vld [vmem:[#allocation2 + $0x30] sm:$0xff]  ;;  %v10335_v3 = vld [vmem:[#allocation2 + $0x40] sm:$0xff] }
  0x36   : > { %9336 = vmatprep.mubr.msk.f32.mxu1 %vm400_vm1, %v10315_v16  ;;  %9373 = vmatprep.subr.msk.mxu0 %vm476_vm0, %v8302_v12  ;;  %v10341_v19 = vld [vmem:[#allocation2 + $0x51] sm:$0xff]  ;;  %v10345_v21 = vld [vmem:[#allocation2 + $0x61] sm:$0xff] }
  0x37   : > { %9387 = vmatprep.subr.msk.mxu1 %vm476_vm0, %v8312_v13  ;;  %9323 = vmatmul.mubr.msk.f32.gmra.mxu0 %vm400_vm1, %v10322_v17  ;;  %v10343_v20 = vld [vmem:[#allocation2 + $0x50] sm:$0xff]  ;;  %v10347_v22 = vld [vmem:[#allocation2 + $0x60] sm:$0xff] }
  0x38   : > { %9337 = vmatmul.mubr.msk.f32.gmra.mxu1 %vm400_vm1, %v10324_v18  ;;  %9325 = vmatprep.mubr.msk.f32.mxu0 %vm400_vm1, %v10333_v2  ;;  %v10357_v23 = vld [vmem:[#allocation2 + $0x71] sm:$0xff]  ;;  %v10411_v27 = vld [vmem:[#allocation2 + $0x22] sm:$0xff] }
  0x39   : > { %9339 = vmatprep.mubr.msk.f32.mxu1 %vm400_vm1, %v10335_v3  ;;  %v10359_v24 = vld [vmem:[#allocation2 + $0x70] sm:$0xff]  ;;  %v10431_v31 = vld [vmem:[#allocation2 + $0x42] sm:$0xff] }
  0x3a   : > { %v10425_v30 = vld [vmem:[#allocation2 + $0x32] sm:$0xff]  ;;  %v10445_v33 = vld [vmem:[#allocation2 + $0x62] sm:$0xff] }
  0x3b   : > { %9326 = vmatmul.mubr.msk.f32.gmra.mxu0 %vm400_vm1, %v10341_v19  ;;  %v10443_v32 = vld [vmem:[#allocation2 + $0x52] sm:$0xff]  ;;  %v10499_v37 = vld [vmem:[#allocation2 + $0x80] sm:$0xff] }
  0x3c   : > { %9340 = vmatmul.mubr.msk.f32.gmra.mxu1 %vm400_vm1, %v10343_v20  ;;  %9328 = vmatprep.mubr.msk.f32.mxu0 %vm400_vm1, %v10345_v21  ;;  %v10455_v34 = vld [vmem:[#allocation2 + $0x72] sm:$0xff]  ;;  %v10543_v40 = vld [vmem:[#allocation2 + $0x81] sm:$0xff] }
  0x3d   : > { %9342 = vmatprep.mubr.msk.f32.mxu1 %vm400_vm1, %v10347_v22  ;;  %v1746_v43 = vld [vmem:[#allocation2 + $0x82] sm:$0xff] }
  0x3f   : > { %9329 = vmatmul.mubr.msk.f32.gmra.mxu0 %vm400_vm1, %v10357_v23 }
  0x40   : > { %9343 = vmatmul.mubr.msk.f32.gmra.mxu1 %vm400_vm1, %v10359_v24  ;;  %9347 = vmatprep.mubr.msk.f32.mxu0 %vm400_vm1, %v10252_v8  ;;  %v935_v8 = vld [vmem:[#allocation2 + $0x2] sm:$0xff] }
  0x41   : > { %9361 = vmatprep.mubr.msk.f32.mxu1 %vm400_vm1, %v10254_v9  ;;  %v10409_v9 = vld [vmem:[#allocation2 + $0x12] sm:$0xff] }
  0x43   : > { %9348 = vmatmul.mubr.msk.f32.vlgmr.msra.gmra.mxu0 %vm400_vm1, %v10294_v7 }
  0x44   : > { %9362 = vmatmul.mubr.msk.f32.vlgmr.msra.gmra.mxu1 %vm400_vm1, %v10296_v10  ;;  %9374 = vmatpush3.msk.msra.mxu0 %vm476_vm0, %v8302_v12 }
  0x45   : > { %9388 = vmatpush3.msk.msra.mxu1 %vm476_vm0, %v8312_v13  ;;  %9350 = vmatprep.mubr.msk.f32.mxu0 %vm400_vm1, %v10313_v15 }
  0x46   : > { %9364 = vmatprep.mubr.msk.f32.mxu1 %vm400_vm1, %v10315_v16  ;;  %9401 = vmatprep.subr.msk.mxu0 %vm476_vm0, %v8322_v25 }
  0x47   : > { %9415 = vmatprep.subr.msk.mxu1 %vm476_vm0, %v8332_v26  ;;  %9351 = vmatmul.mubr.msk.f32.gmra.mxu0 %vm400_vm1, %v10322_v17 }
  0x48   : > { %9365 = vmatmul.mubr.msk.f32.gmra.mxu1 %vm400_vm1, %v10324_v18  ;;  %9353 = vmatprep.mubr.msk.f32.mxu0 %vm400_vm1, %v10333_v2 }
  0x49   : > { %9367 = vmatprep.mubr.msk.f32.mxu1 %vm400_vm1, %v10335_v3 }
  0x4b   : > { %9354 = vmatmul.mubr.msk.f32.gmra.mxu0 %vm400_vm1, %v10341_v19 }
  0x4c   : > { %9368 = vmatmul.mubr.msk.f32.gmra.mxu1 %vm400_vm1, %v10343_v20  ;;  %9356 = vmatprep.mubr.msk.f32.mxu0 %vm400_vm1, %v10345_v21 }
  0x4d   : > { %9370 = vmatprep.mubr.msk.f32.mxu1 %vm400_vm1, %v10347_v22 }
  0x4f   : > { %9357 = vmatmul.mubr.msk.f32.gmra.mxu0 %vm400_vm1, %v10357_v23 }
  0x50   : > { %9371 = vmatmul.mubr.msk.f32.gmra.mxu1 %vm400_vm1, %v10359_v24  ;;  %9375 = vmatprep.mubr.msk.f32.mxu0 %vm400_vm1, %v935_v8 }
  0x51   : > { %9389 = vmatprep.mubr.msk.f32.mxu1 %vm400_vm1, %v935_v8 }
  0x53   : > { %9376 = vmatmul.mubr.msk.f32.vlgmr.msra.gmra.mxu0 %vm400_vm1, %v10409_v9 }
  0x54   : > { %9390 = vmatmul.mubr.msk.f32.vlgmr.msra.gmra.mxu1 %vm400_vm1, %v10409_v9  ;;  %9402 = vmatpush3.msk.msra.mxu0 %vm476_vm0, %v8322_v25 }
  0x55   : > { %9416 = vmatpush3.msk.msra.mxu1 %vm476_vm0, %v8332_v26  ;;  %9378 = vmatprep.mubr.msk.f32.mxu0 %vm400_vm1, %v10411_v27 }
  0x56   : > { %9392 = vmatprep.mubr.msk.f32.mxu1 %vm400_vm1, %v10411_v27  ;;  %9429 = vmatprep.subr.msk.mxu0 %vm476_vm0, %v8342_v28 }
  0x57   : > { %9443 = vmatprep.subr.msk.mxu1 %vm476_vm0, %v8352_v29  ;;  %9379 = vmatmul.mubr.msk.f32.gmra.mxu0 %vm400_vm1, %v10425_v30 }
  0x58   : > { %9393 = vmatmul.mubr.msk.f32.gmra.mxu1 %vm400_vm1, %v10425_v30  ;;  %9381 = vmatprep.mubr.msk.f32.mxu0 %vm400_vm1, %v10431_v31 }
  0x59   : > { %9395 = vmatprep.mubr.msk.f32.mxu1 %vm400_vm1, %v10431_v31 }
  0x5b   : > { %9382 = vmatmul.mubr.msk.f32.gmra.mxu0 %vm400_vm1, %v10443_v32 }
  0x5c   : > { %9396 = vmatmul.mubr.msk.f32.gmra.mxu1 %vm400_vm1, %v10443_v32  ;;  %9384 = vmatprep.mubr.msk.f32.mxu0 %vm400_vm1, %v10445_v33 }
  0x5d   : > { %9398 = vmatprep.mubr.msk.f32.mxu1 %vm400_vm1, %v10445_v33 }
  0x5f   : > { %9385 = vmatmul.mubr.msk.f32.gmra.mxu0 %vm400_vm1, %v10455_v34 }
  0x60   : > { %9399 = vmatmul.mubr.msk.f32.gmra.mxu1 %vm400_vm1, %v10455_v34  ;;  %9403 = vmatprep.mubr.msk.f32.mxu0 %vm400_vm1, %v10296_v10 }
  0x61   : > { %9417 = vmatprep.mubr.msk.f32.mxu1 %vm400_vm1, %v10296_v10 }
  0x63   : > { %9404 = vmatmul.mubr.msk.f32.vlgmr.msra.gmra.mxu0 %vm400_vm1, %v10315_v16 }
  0x64   : > { %9418 = vmatmul.mubr.msk.f32.vlgmr.msra.gmra.mxu1 %vm400_vm1, %v10315_v16  ;;  %9430 = vmatpush3.msk.msra.mxu0 %vm476_vm0, %v8342_v28 }
  0x65   : > { %9444 = vmatpush3.msk.msra.mxu1 %vm476_vm0, %v8352_v29  ;;  %9406 = vmatprep.mubr.msk.f32.mxu0 %vm400_vm1, %v10324_v18 }
  0x66   : > { %9420 = vmatprep.mubr.msk.f32.mxu1 %vm400_vm1, %v10324_v18  ;;  %9457 = vmatprep.subr.msk.mxu0 %vm476_vm0, %v8362_v35 }
  0x67   : > { %9471 = vmatprep.subr.msk.mxu1 %vm476_vm0, %v8372_v36  ;;  %9407 = vmatmul.mubr.msk.f32.gmra.mxu0 %vm400_vm1, %v10335_v3 }
  0x68   : > { %9421 = vmatmul.mubr.msk.f32.gmra.mxu1 %vm400_vm1, %v10335_v3  ;;  %9409 = vmatprep.mubr.msk.f32.mxu0 %vm400_vm1, %v10343_v20 }
  0x69   : > { %9423 = vmatprep.mubr.msk.f32.mxu1 %vm400_vm1, %v10343_v20 }
  0x6b   : > { %9410 = vmatmul.mubr.msk.f32.gmra.mxu0 %vm400_vm1, %v10347_v22 }
  0x6c   : > { %9424 = vmatmul.mubr.msk.f32.gmra.mxu1 %vm400_vm1, %v10347_v22  ;;  %9412 = vmatprep.mubr.msk.f32.mxu0 %vm400_vm1, %v10359_v24 }
  0x6d   : > { %9426 = vmatprep.mubr.msk.f32.mxu1 %vm400_vm1, %v10359_v24 }
  0x6f   : > { %9413 = vmatmul.mubr.msk.f32.gmra.mxu0 %vm400_vm1, %v10499_v37 }
  0x70   : > { %9427 = vmatmul.mubr.msk.f32.gmra.mxu1 %vm400_vm1, %v10499_v37  ;;  %9431 = vmatprep.mubr.msk.f32.mxu0 %vm400_vm1, %v10294_v7 }
  0x71   : > { %9445 = vmatprep.mubr.msk.f32.mxu1 %vm400_vm1, %v10294_v7 }
  0x73   : > { %9432 = vmatmul.mubr.msk.f32.vlgmr.msra.gmra.mxu0 %vm400_vm1, %v10313_v15 }
  0x74   : > { %9446 = vmatmul.mubr.msk.f32.vlgmr.msra.gmra.mxu1 %vm400_vm1, %v10313_v15  ;;  %9458 = vmatpush3.msk.msra.mxu0 %vm476_vm0, %v8362_v35 }
  0x75   : > { %9472 = vmatpush3.msk.msra.mxu1 %vm476_vm0, %v8372_v36  ;;  %9434 = vmatprep.mubr.msk.f32.mxu0 %vm400_vm1, %v10322_v17 }
  0x76   : > { %9448 = vmatprep.mubr.msk.f32.mxu1 %vm400_vm1, %v10322_v17  ;;  %9485 = vmatprep.subr.msk.mxu0 %vm476_vm0, %v8382_v38 }
  0x77   : > { %9499 = vmatprep.subr.msk.mxu1 %vm476_vm0, %v8392_v39  ;;  %9435 = vmatmul.mubr.msk.f32.gmra.mxu0 %vm400_vm1, %v10333_v2 }
  0x78   : > { %9449 = vmatmul.mubr.msk.f32.gmra.mxu1 %vm400_vm1, %v10333_v2  ;;  %9437 = vmatprep.mubr.msk.f32.mxu0 %vm400_vm1, %v10341_v19 }
  0x79   : > { %9451 = vmatprep.mubr.msk.f32.mxu1 %vm400_vm1, %v10341_v19 }
  0x7b   : > { %9438 = vmatmul.mubr.msk.f32.gmra.mxu0 %vm400_vm1, %v10345_v21 }
  0x7c   : > { %9452 = vmatmul.mubr.msk.f32.gmra.mxu1 %vm400_vm1, %v10345_v21  ;;  %9440 = vmatprep.mubr.msk.f32.mxu0 %vm400_vm1, %v10357_v23 }
  0x7d   : > { %9454 = vmatprep.mubr.msk.f32.mxu1 %vm400_vm1, %v10357_v23 }
  0x7f   : > { %9441 = vmatmul.mubr.msk.f32.gmra.mxu0 %vm400_vm1, %v10543_v40 }
  0x80   : > { %9455 = vmatmul.mubr.msk.f32.gmra.mxu1 %vm400_vm1, %v10543_v40  ;;  %9459 = vmatprep.mubr.msk.f32.mxu0 %vm400_vm1, %v10409_v9 }
  0x81   : > { %9473 = vmatprep.mubr.msk.f32.mxu1 %vm400_vm1, %v10409_v9 }
  0x83   : > { %9460 = vmatmul.mubr.msk.f32.vlgmr.msra.gmra.mxu0 %vm400_vm1, %v10411_v27 }
  0x84   : > { %9474 = vmatmul.mubr.msk.f32.vlgmr.msra.gmra.mxu1 %vm400_vm1, %v10411_v27  ;;  %9486 = vmatpush3.msk.msra.mxu0 %vm476_vm0, %v8382_v38 }
  0x85   : > { %9500 = vmatpush3.msk.msra.mxu1 %vm476_vm0, %v8392_v39  ;;  %9462 = vmatprep.mubr.msk.f32.mxu0 %vm400_vm1, %v10425_v30 }
  0x86   : > { %9476 = vmatprep.mubr.msk.f32.mxu1 %vm400_vm1, %v10425_v30  ;;  %9513 = vmatprep.subr.msk.mxu0 %vm476_vm0, %v8402_v41 }
  0x87   : > { %9527 = vmatprep.subr.msk.mxu1 %vm476_vm0, %v8412_v42  ;;  %9463 = vmatmul.mubr.msk.f32.gmra.mxu0 %vm400_vm1, %v10431_v31 }
  0x88   : > { %9477 = vmatmul.mubr.msk.f32.gmra.mxu1 %vm400_vm1, %v10431_v31  ;;  %9465 = vmatprep.mubr.msk.f32.mxu0 %vm400_vm1, %v10443_v32 }
  0x89   : > { %9479 = vmatprep.mubr.msk.f32.mxu1 %vm400_vm1, %v10443_v32 }
  0x8b   : > { %9466 = vmatmul.mubr.msk.f32.gmra.mxu0 %vm400_vm1, %v10445_v33 }
  0x8c   : > { %9480 = vmatmul.mubr.msk.f32.gmra.mxu1 %vm400_vm1, %v10445_v33  ;;  %9468 = vmatprep.mubr.msk.f32.mxu0 %vm400_vm1, %v10455_v34 }
  0x8d   : > { %9482 = vmatprep.mubr.msk.f32.mxu1 %vm400_vm1, %v10455_v34 }
  0x8f   : > { %9469 = vmatmul.mubr.msk.f32.gmra.mxu0 %vm400_vm1, %v1746_v43 }
  0x90   : > { %9483 = vmatmul.mubr.msk.f32.gmra.mxu1 %vm400_vm1, %v1746_v43  ;;  %9487 = vmatprep.mubr.msk.f32.mxu0 %vm400_vm1, %v10315_v16 }
  0x91   : > { %9501 = vmatprep.mubr.msk.f32.mxu1 %vm400_vm1, %v10315_v16 }
  0x93   : > { %9488 = vmatmul.mubr.msk.f32.vlgmr.msra.gmra.mxu0 %vm400_vm1, %v10324_v18 }
  0x94   : > { %9502 = vmatmul.mubr.msk.f32.vlgmr.msra.gmra.mxu1 %vm400_vm1, %v10324_v18  ;;  %9514 = vmatpush3.msk.msra.mxu0 %vm476_vm0, %v8402_v41 }
  0x95   : > { %9528 = vmatpush3.msk.msra.mxu1 %vm476_vm0, %v8412_v42  ;;  %9490 = vmatprep.mubr.msk.f32.mxu0 %vm400_vm1, %v10335_v3 }
  0x96   : > { %9504 = vmatprep.mubr.msk.f32.mxu1 %vm400_vm1, %v10335_v3  ;;  %9541 = vmatprep.subr.msk.mxu0 %vm476_vm0, %v8422_v44 }
  0x97   : > { %9555 = vmatprep.subr.msk.mxu1 %vm476_vm0, %v8432_v45  ;;  %9491 = vmatmul.mubr.msk.f32.gmra.mxu0 %vm400_vm1, %v10343_v20 }
  0x98   : > { %9505 = vmatmul.mubr.msk.f32.gmra.mxu1 %vm400_vm1, %v10343_v20  ;;  %9493 = vmatprep.mubr.msk.f32.mxu0 %vm400_vm1, %v10347_v22 }
  0x99   : > { %9507 = vmatprep.mubr.msk.f32.mxu1 %vm400_vm1, %v10347_v22 }
  0x9b   : > { %9494 = vmatmul.mubr.msk.f32.gmra.mxu0 %vm400_vm1, %v10359_v24 }
  0x9c   : > { %9508 = vmatmul.mubr.msk.f32.gmra.mxu1 %vm400_vm1, %v10359_v24  ;;  %9496 = vmatprep.mubr.msk.f32.mxu0 %vm400_vm1, %v10499_v37 }
  0x9d   : > { %9510 = vmatprep.mubr.msk.f32.mxu1 %vm400_vm1, %v10499_v37 }
  0x9f   : > { %9497 = vmatmul.mubr.msk.f32.gmra.mxu0 %vm400_vm1, %v2015_v46 }
  0xa0   : > { %9511 = vmatmul.mubr.msk.f32.gmra.mxu1 %vm400_vm1, %v2015_v46  ;;  %9515 = vmatprep.mubr.msk.f32.mxu0 %vm400_vm1, %v10313_v15 }
  0xa1   : > { %9529 = vmatprep.mubr.msk.f32.mxu1 %vm400_vm1, %v10313_v15 }
  0xa3   : > { %9516 = vmatmul.mubr.msk.f32.vlgmr.msra.gmra.mxu0 %vm400_vm1, %v10322_v17 }
  0xa4   : > { %9530 = vmatmul.mubr.msk.f32.vlgmr.msra.gmra.mxu1 %vm400_vm1, %v10322_v17  ;;  %9542 = vmatpush3.msk.msra.mxu0 %vm476_vm0, %v8422_v44 }
  0xa5   : > { %9556 = vmatpush3.msk.msra.mxu1 %vm476_vm0, %v8432_v45  ;;  %9518 = vmatprep.mubr.msk.f32.mxu0 %vm400_vm1, %v10333_v2 }
  0xa6   : > { %9532 = vmatprep.mubr.msk.f32.mxu1 %vm400_vm1, %v10333_v2 }
  0xa7   : > { %9519 = vmatmul.mubr.msk.f32.gmra.mxu0 %vm400_vm1, %v10341_v19 }
  0xa8   : > { %9533 = vmatmul.mubr.msk.f32.gmra.mxu1 %vm400_vm1, %v10341_v19  ;;  %9521 = vmatprep.mubr.msk.f32.mxu0 %vm400_vm1, %v10345_v21 }
  0xa9   : > { %9535 = vmatprep.mubr.msk.f32.mxu1 %vm400_vm1, %v10345_v21 }
  0xab   : > { %9522 = vmatmul.mubr.msk.f32.gmra.mxu0 %vm400_vm1, %v10357_v23 }
  0xac   : > { %9536 = vmatmul.mubr.msk.f32.gmra.mxu1 %vm400_vm1, %v10357_v23  ;;  %9524 = vmatprep.mubr.msk.f32.mxu0 %vm400_vm1, %v10543_v40 }
  0xad   : > { %9538 = vmatprep.mubr.msk.f32.mxu1 %vm400_vm1, %v10543_v40 }
  0xaf   : > { %9525 = vmatmul.mubr.msk.f32.gmra.mxu0 %vm400_vm1, %v2283_v47 }
  0xb0   : > { %9539 = vmatmul.mubr.msk.f32.gmra.mxu1 %vm400_vm1, %v2283_v47  ;;  %9543 = vmatprep.mubr.msk.f32.mxu0 %vm400_vm1, %v10411_v27 }
  0xb1   : > { %9557 = vmatprep.mubr.msk.f32.mxu1 %vm400_vm1, %v10411_v27 }
  0xb3   : > { %9544 = vmatmul.mubr.msk.f32.vlgmr.msra.gmra.mxu0 %vm400_vm1, %v10425_v30 }
  0xb4   : > { %9558 = vmatmul.mubr.msk.f32.vlgmr.msra.gmra.mxu1 %vm400_vm1, %v10425_v30  ;;  %9546 = vmatprep.mubr.msk.f32.mxu0 %vm400_vm1, %v10431_v31 }
  0xb5   : > { %9560 = vmatprep.mubr.msk.f32.mxu1 %vm400_vm1, %v10431_v31 }
  0xb7   : > { %9547 = vmatmul.mubr.msk.f32.gmra.mxu0 %vm400_vm1, %v10443_v32 }
  0xb8   : > { %9561 = vmatmul.mubr.msk.f32.gmra.mxu1 %vm400_vm1, %v10443_v32  ;;  %9549 = vmatprep.mubr.msk.f32.mxu0 %vm400_vm1, %v10445_v33 }
  0xb9   : > { %9563 = vmatprep.mubr.msk.f32.mxu1 %vm400_vm1, %v10445_v33 }
  0xbb   : > { %9550 = vmatmul.mubr.msk.f32.gmra.mxu0 %vm400_vm1, %v10455_v34 }
  0xbc   : > { %9564 = vmatmul.mubr.msk.f32.gmra.mxu1 %vm400_vm1, %v10455_v34  ;;  %9552 = vmatprep.mubr.msk.f32.mxu0 %vm400_vm1, %v1746_v43 }
  0xbd   : > { %9566 = vmatprep.mubr.msk.f32.mxu1 %vm400_vm1, %v1746_v43 }
  0xbf   : > { %9553 = vmatmul.mubr.msk.f32.gmra.mxu0 %vm400_vm1, %v2551_v48 }
  0xc0   : > { %9567 = vmatmul.mubr.msk.f32.gmra.mxu1 %vm400_vm1, %v2551_v48 }
  0xf3   : > { %v9321_v49 = vpop.f32.mrf.mxu0 }
  0xf4   : > { %v9335_v50 = vpop.f32.mrf.mxu1 }
  0xf5   : > { %v684_v51 = vadd.f32 %v9335_v50, %v9321_v49  ;;  %v10689_v52 = vpop.f32.mrf.mxu0 }
  0xf6   : > { %v10691_v53 = vpop.f32.mrf.mxu1 }
  0xf7   : > { %v9324_v54 = vpop.f32.mrf.mxu0 }
  0xf8   : > { %v9338_v55 = vpop.f32.mrf.mxu1 }
  0xf9   : > { %v694_v56 = vadd.f32 %v9338_v55, %v9324_v54  ;;  %v10693_v57 = vpop.f32.mrf.mxu0 }
  0xfa   : > { %v10695_v58 = vpop.f32.mrf.mxu1 }
  0xfb   : > { %v9327_v59 = vpop.f32.mrf.mxu0 }
  0xfc   : > { %v9341_v60 = vpop.f32.mrf.mxu1 }
  0xfd   : > { %v704_v61 = vadd.f32 %v9341_v60, %v9327_v59  ;;  %v10697_v62 = vpop.f32.mrf.mxu0 }
  0xfe   : > { %v10699_v63 = vpop.f32.mrf.mxu1 }
  0xff   : > { %v9330_v0 = vpop.f32.mrf.mxu0 }
 0x100   : > { %v9344_v1 = vpop.f32.mrf.mxu1 }
 0x101   : > { %v714_v4 = vadd.f32 %v9344_v1, %v9330_v0  ;;  %v10701_v5 = vpop.f32.mrf.mxu0 }
 0x102   : > { %v10703_v6 = vpop.f32.mrf.mxu1 }
 0x103   : > { %v9349_v7 = vpop.f32.mrf.mxu0 }
 0x104   : > { %v9363_v10 = vpop.f32.mrf.mxu1 }
 0x105   : > { %v902_v11 = vadd.f32 %v9363_v10, %v9349_v7  ;;  %v10705_v12 = vpop.f32.mrf.mxu0 }
 0x106   : > { %v10707_v13 = vpop.f32.mrf.mxu1 }
 0x107   : > { %v9352_v14 = vpop.f32.mrf.mxu0 }
 0x108   : > { %v9366_v15 = vpop.f32.mrf.mxu1 }
 0x109   : > { %v912_v16 = vadd.f32 %v9366_v15, %v9352_v14  ;;  %v10709_v17 = vpop.f32.mrf.mxu0 }
 0x10a   : > { %v10711_v18 = vpop.f32.mrf.mxu1 }
 0x10b   : > { %v9355_v2 = vpop.f32.mrf.mxu0 }
 0x10c   : > { %v9369_v3 = vpop.f32.mrf.mxu1 }
 0x10d   : > { %v922_v19 = vadd.f32 %v9369_v3, %v9355_v2  ;;  %v10713_v20 = vpop.f32.mrf.mxu0 }
 0x10e   : > { %v10715_v21 = vpop.f32.mrf.mxu1 }
 0x10f   : > { %v9358_v22 = vpop.f32.mrf.mxu0 }
 0x110   : > { %v9372_v23 = vpop.f32.mrf.mxu1 }
 0x111   : > { %v932_v24 = vadd.f32 %v9372_v23, %v9358_v22  ;;  %v10717_v25 = vpop.f32.mrf.mxu0 }
 0x112   : > { %v10719_v26 = vpop.f32.mrf.mxu1 }
 0x113   : > { %v9377_v8 = vpop.f32.mrf.mxu0 }
 0x114   : > { %v9391_v9 = vpop.f32.mrf.mxu1  ;;  %v1078_v27 = vadd.f32 %v9377_v8, %v684_v51 }
 0x115   : > { %v1196_v28 = vadd.f32 %v9391_v9, %v902_v11  ;;  %v10721_v29 = vpop.f32.mrf.mxu0 }
 0x116   : > { %v10723_v30 = vpop.f32.mrf.mxu1 }
 0x117   : > { %v9380_v31 = vpop.f32.mrf.mxu0 }
 0x118   : > { %v9394_v32 = vpop.f32.mrf.mxu1  ;;  %v1080_v33 = vadd.f32 %v9380_v31, %v694_v56 }
 0x119   : > { %v1198_v34 = vadd.f32 %v9394_v32, %v912_v16  ;;  %v10725_v35 = vpop.f32.mrf.mxu0 }
 0x11a   : > { %v10727_v36 = vpop.f32.mrf.mxu1 }
 0x11b   : > { %v9383_v37 = vpop.f32.mrf.mxu0 }
 0x11c   : > { %v9397_v38 = vpop.f32.mrf.mxu1  ;;  %v1082_v39 = vadd.f32 %v9383_v37, %v704_v61 }
 0x11d   : > { %v1200_v40 = vadd.f32 %v9397_v38, %v922_v19  ;;  %v10729_v41 = vpop.f32.mrf.mxu0 }
 0x11e   : > { %v10731_v42 = vpop.f32.mrf.mxu1 }
 0x11f   : > { %v9386_v43 = vpop.f32.mrf.mxu0 }
 0x120   : > { %v9400_v44 = vpop.f32.mrf.mxu1  ;;  %v1084_v45 = vadd.f32 %v9386_v43, %v714_v4 }
 0x121   : > { %v1202_v46 = vadd.f32 %v9400_v44, %v932_v24  ;;  %v10733_v47 = vpop.f32.mrf.mxu0 }
 0x122   : > { %v10735_v48 = vpop.f32.mrf.mxu1 }
 0x123   : > { %v9405_v49 = vpop.f32.mrf.mxu0 }
 0x124   : > { %v9419_v50 = vpop.f32.mrf.mxu1  ;;  %v10737_v51 = vadd.f32 %v9405_v49, %v1078_v27 }
 0x125   : > { %v10739_v54 = vadd.f32 %v9419_v50, %v1196_v28  ;;  %v10741_v55 = vpop.f32.mrf.mxu0 }
 0x126   : > { %v10743_v56 = vpop.f32.mrf.mxu1 }
 0x127   : > { %v9408_v59 = vpop.f32.mrf.mxu0 }
 0x128   : > { %v9422_v60 = vpop.f32.mrf.mxu1  ;;  %v10745_v61 = vadd.f32 %v9408_v59, %v1080_v33 }
 0x129   : > { %v10747_v0 = vadd.f32 %v9422_v60, %v1198_v34  ;;  %v10749_v1 = vpop.f32.mrf.mxu0 }
 0x12a   : > { %v10751_v4 = vpop.f32.mrf.mxu1 }
 0x12b   : > { %v9411_v7 = vpop.f32.mrf.mxu0 }
 0x12c   : > { %v9425_v10 = vpop.f32.mrf.mxu1  ;;  %v10753_v11 = vadd.f32 %v9411_v7, %v1082_v39 }
 0x12d   : > { %v10755_v14 = vadd.f32 %v9425_v10, %v1200_v40  ;;  %v10757_v15 = vpop.f32.mrf.mxu0 }
 0x12e   : > { %v10759_v16 = vpop.f32.mrf.mxu1 }
 0x12f   : > { %v9414_v2 = vpop.f32.mrf.mxu0 }
 0x130   : > { %v9428_v3 = vpop.f32.mrf.mxu1  ;;  %v10761_v19 = vadd.f32 %v9414_v2, %v1084_v45 }
 0x131   : > { %v10763_v22 = vadd.f32 %v9428_v3, %v1202_v46  ;;  %v10765_v23 = vpop.f32.mrf.mxu0 }
 0x132   : > { %v10767_v24 = vpop.f32.mrf.mxu1 }
 0x133   : > { %v10769_v8 = vpop.f32.mrf.mxu0 }
 0x134   : > { %v10771_v9 = vpop.f32.mrf.mxu1 }
 0x135   : > { %v10773_v27 = vpop.f32.mrf.mxu0 }
 0x136   : > { %v10775_v28 = vpop.f32.mrf.mxu1 }
 0x137   : > { %v10777_v31 = vpop.f32.mrf.mxu0 }
 0x138   : > { %v10779_v32 = vpop.f32.mrf.mxu1 }
 0x139   : > { %v10781_v33 = vpop.f32.mrf.mxu0 }
 0x13a   : > { %v10783_v34 = vpop.f32.mrf.mxu1 }
 0x13b   : > { %v10785_v37 = vpop.f32.mrf.mxu0 }
 0x13c   : > { %v10787_v38 = vpop.f32.mrf.mxu1 }
 0x13d   : > { %v10789_v39 = vpop.f32.mrf.mxu0 }
 0x13e   : > { %v10791_v40 = vpop.f32.mrf.mxu1 }
 0x13f   : > { %v10793_v43 = vpop.f32.mrf.mxu0 }
 0x140   : > { %v10795_v44 = vpop.f32.mrf.mxu1 }
 0x141   : > { %12536 = vst [vmem:[#allocation4_spill] sm:$0xff] %v10795_v44  ;;  %v10797_v45 = vpop.f32.mrf.mxu0 }
 0x142   : > { %12537 = vst [vmem:[#allocation5_spill] sm:$0xff] %v10797_v45  ;;  %v10799_v46 = vpop.f32.mrf.mxu1 }
 0x143   : > { %12538 = vst [vmem:[#allocation6_spill] sm:$0xff] %v10799_v46  ;;  %v10801_v49 = vpop.f32.mrf.mxu0 }
 0x144   : > { %12539 = vst [vmem:[#allocation7_spill] sm:$0xff] %v10801_v49  ;;  %v10803_v50 = vpop.f32.mrf.mxu1 }
 0x145   : > { %12540 = vst [vmem:[#allocation8_spill] sm:$0xff] %v10803_v50  ;;  %v10805_v59 = vpop.f32.mrf.mxu0 }
 0x146   : > { %12541 = vst [vmem:[#allocation9_spill] sm:$0xff] %v10805_v59  ;;  %v10807_v60 = vpop.f32.mrf.mxu1 }
 0x147   : > { %12542 = vst [vmem:[#allocation10_spill] sm:$0xff] %v10807_v60  ;;  %v10809_v7 = vpop.f32.mrf.mxu0 }
 0x148   : > { %12543 = vst [vmem:[#allocation11_spill] sm:$0xff] %v10809_v7  ;;  %v10811_v10 = vpop.f32.mrf.mxu1 }
 0x149   : > { %12544 = vst [vmem:[#allocation12_spill] sm:$0xff] %v10811_v10  ;;  %v10813_v2 = vpop.f32.mrf.mxu0 }
 0x14a   : > { %12545 = vst [vmem:[#allocation13_spill] sm:$0xff] %v10813_v2  ;;  %v10815_v3 = vpop.f32.mrf.mxu1 }
 0x14b   : > { %12546 = vst [vmem:[#allocation14_spill] sm:$0xff] %v10815_v3  ;;  %v10817_v44 = vpop.f32.mrf.mxu0 }
 0x14c   : > { %12547 = vst [vmem:[#allocation15_spill] sm:$0xff] %v10817_v44  ;;  %v10819_v45 = vpop.f32.mrf.mxu1 }
 0x14d   : > { %12548 = vst [vmem:[#allocation16_spill] sm:$0xff] %v10819_v45  ;;  %v10821_v46 = vpop.f32.mrf.mxu0 }
 0x14e   : > { %12549 = vst [vmem:[#allocation17_spill] sm:$0xff] %v10821_v46  ;;  %v10823_v49 = vpop.f32.mrf.mxu1 }
 0x14f   : > { %12550 = vst [vmem:[#allocation18_spill] sm:$0xff] %v10823_v49  ;;  %v10825_v50 = vpop.f32.mrf.mxu0 }
 0x150   : > { %12551 = vst [vmem:[#allocation19_spill] sm:$0xff] %v10825_v50  ;;  %v10827_v59 = vpop.f32.mrf.mxu1 }
 0x151   : > { %12552 = vst [vmem:[#allocation20_spill] sm:$0xff] %v10827_v59  ;;  %v10829_v60 = vpop.f32.mrf.mxu0 }
 0x152   : > { %12553 = vst [vmem:[#allocation21_spill] sm:$0xff] %v10829_v60  ;;  %v10831_v7 = vpop.f32.mrf.mxu1 }
 0x153   : > { %12554 = vst [vmem:[#allocation22_spill] sm:$0xff] %v10831_v7  ;;  %v10833_v10 = vpop.f32.mrf.mxu0 }
 0x154   : > { %12555 = vst [vmem:[#allocation23_spill] sm:$0xff] %v10833_v10  ;;  %v10835_v2 = vpop.f32.mrf.mxu1 }
 0x155   : > { %12556 = vst [vmem:[#allocation24_spill] sm:$0xff] %v10835_v2  ;;  %v10837_v3 = vpop.f32.mrf.mxu0 }
 0x156   : > { %12557 = vst [vmem:[#allocation25_spill] sm:$0xff] %v10837_v3  ;;  %v10839_v44 = vpop.f32.mrf.mxu1 }
 0x157   : > { %v10841_v45 = vpop.f32.mrf.mxu0 }
 0x158   : > { %12558 = vst [vmem:[#allocation26_spill] sm:$0xff] %v10841_v45  ;;  %v10843_v46 = vpop.f32.mrf.mxu1  ;;  %v679_v45 = vadd.f32 %v10691_v53, %v10689_v52  ;;  %v917_v52 = vadd.f32 %v10715_v21, %v10713_v20  ;;  %v927_v53 = vadd.f32 %v10719_v26, %v10717_v25  ;;  %v10901_v21 = vld [vmem:[#allocation3] sm:$0xff]  ;;  %v10906_v25 = vld [vmem:[%s12531_s5 + $0x6c] sm:$0xf] }
 0x159   : > { %v10845_v49 = vpop.f32.mrf.mxu0  ;;  %9585 = vmatprep.mubr.msk.f32.mxu1 %vm400_vm1, %v10901_v21 }
 0x15a   : > { %12559 = vst [vmem:[#allocation27_spill] sm:$0xff] %v10845_v49  ;;  %v10847_v50 = vpop.f32.mrf.mxu1  ;;  %v689_v49 = vadd.f32 %v10695_v58, %v10693_v57  ;;  %v1077_v57 = vadd.f32 %v10721_v29, %v679_v45  ;;  %v1199_v20 = vadd.f32 %v10731_v42, %v917_v52  ;;  %v1201_v29 = vadd.f32 %v10735_v48, %v927_v53 }
 0x15b   : > { %12560 = vst [vmem:[#allocation28_spill] sm:$0xff] %v10847_v50  ;;  %v10849_v59 = vpop.f32.mrf.mxu0  ;;  %v897_v50 = vadd.f32 %v10707_v13, %v10705_v12 }
 0x15c   : > { %12561 = vst [vmem:[#allocation29_spill] sm:$0xff] %v10849_v59  ;;  %v10851_v60 = vpop.f32.mrf.mxu1  ;;  %v1079_v12 = vadd.f32 %v10725_v35, %v689_v49  ;;  %v1467_v48 = vadd.f32 %v10759_v16, %v1199_v20  ;;  %v1469_v49 = vadd.f32 %v10767_v24, %v1201_v29  ;;  %v1734_v24 = vadd.f32 %v10779_v32, %v10747_v0  ;;  %v12577_v29 = vld [vmem:[#allocation15_spill] sm:$0xff] }
 0x15d   : > { %12562 = vst [vmem:[#allocation30_spill] sm:$0xff] %v10851_v60  ;;  %v10853_v7 = vpop.f32.mrf.mxu0  ;;  %v1195_v58 = vadd.f32 %v10723_v30, %v897_v50  ;;  %v1345_v30 = vadd.f32 %v10741_v55, %v1077_v57  ;;  %v1620_v0 = vadd.f32 %v10793_v43, %v10761_v19  ;;  %v12570_v57 = vld [vmem:[#allocation8_spill] sm:$0xff] }
 0x15e   : > { %v10855_v10 = vpop.f32.mrf.mxu1  ;;  %v1347_v42 = vadd.f32 %v10749_v1, %v1079_v12  ;;  %v1614_v1 = vadd.f32 %v10769_v8, %v10737_v51  ;;  %v1736_v8 = vadd.f32 %v10787_v38, %v10755_v14  ;;  %v12571_v38 = vld [vmem:[#allocation9_spill] sm:$0xff]  ;;  %v12573_v12 = vld [vmem:[#allocation11_spill] sm:$0xff]  ;;  %v12574_v19 = vld [vmem:[#allocation12_spill] sm:$0xff] }
 0x15f   : > { %12563 = vst [vmem:[#allocation31_spill] sm:$0xff] %v10855_v10  ;;  %v10857_v2 = vpop.f32.mrf.mxu0  ;;  %v699_v10 = vadd.f32 %v10699_v63, %v10697_v62  ;;  %v8451_v63 = vld [vmem:[%s12531_s5 + $0x48] sm:$0xf]  ;;  %v2002_v43 = vadd.f32 %v12574_v19, %v1734_v24  ;;  %v12584_v24 = vld [vmem:[#allocation22_spill] sm:$0xff] }
 0x160   : > { %12564 = vst [vmem:[#allocation32_spill] sm:$0xff] %v10857_v2  ;;  %v10859_v3 = vpop.f32.mrf.mxu1  ;;  %v709_v2 = vadd.f32 %v10703_v6, %v10701_v5  ;;  %v3134_v5 = vld [vmem:[%s12531_s5] sm:$0xf]  ;;  %9569 = vmatprep.subr.msk.mxu0 %vm476_vm0, %v8451_v63 }
 0x161   : > { %12565 = vst [vmem:[#allocation33_spill] sm:$0xff] %v10859_v3  ;;  %v10867_v59 = vpop.f32.mrf.mxu0  ;;  %v907_v3 = vadd.f32 %v10711_v18, %v10709_v17  ;;  %v10894_v6 = vld [vmem:[#allocation3 + $0xa0] sm:$0xff]  ;;  %v1081_v18 = vadd.f32 %v10729_v41, %v699_v10  ;;  %9583 = vmatprep.subr.msk.mxu1 %vm476_vm0, %v3134_v5  ;;  %9570 = vmatpush3.msk.msra.mxu0 %vm476_vm0, %v8451_v63 }
 0x162   : > { %v10869_v60 = vpop.f32.mrf.mxu1  ;;  %v1083_v26 = vadd.f32 %v10733_v47, %v709_v2  ;;  %9584 = vmatpush3.msk.msra.mxu1 %vm476_vm0, %v3134_v5  ;;  %v1463_v41 = vadd.f32 %v10743_v56, %v1195_v58  ;;  %9571 = vmatprep.mubr.msk.f32.mxu0 %vm400_vm1, %v10894_v6  ;;  %v1615_v10 = vadd.f32 %v10781_v33, %v1347_v42  ;;  %v12568_v33 = vld [vmem:[#allocation6_spill] sm:$0xff]  ;;  %v12575_v5 = vld [vmem:[#allocation13_spill] sm:$0xff] }
 0x163   : > { %v10884_v13 = vpop.f32.mrf.mxu0  ;;  %v1197_v17 = vadd.f32 %v10727_v36, %v907_v3  ;;  %v1349_v47 = vadd.f32 %v10757_v15, %v1081_v18  ;;  %9597 = vmatprep.subr.msk.mxu0 %vm476_vm0, %v10906_v25  ;;  %v1613_v15 = vadd.f32 %v10773_v27, %v1345_v30  ;;  %v12566_v27 = vld [vmem:[#allocation4_spill] sm:$0xff]  ;;  %v12572_v58 = vld [vmem:[#allocation10_spill] sm:$0xff] }
 0x164   : > { %v10886_v62 = vpop.f32.mrf.mxu1  ;;  %v1351_v55 = vadd.f32 %v10765_v23, %v1083_v26  ;;  %v1731_v16 = vadd.f32 %v10775_v28, %v1463_v41  ;;  %v1616_v23 = vadd.f32 %v10777_v31, %v10745_v61  ;;  %v1735_v61 = vadd.f32 %v10791_v40, %v1467_v48  ;;  %v12567_v31 = vld [vmem:[#allocation5_spill] sm:$0xff]  ;;  %v12578_v41 = vld [vmem:[#allocation16_spill] sm:$0xff]  ;;  %v12580_v48 = vld [vmem:[#allocation18_spill] sm:$0xff] }
 0x165   : > { %v10911_v35 = vpop.f32.mrf.mxu0  ;;  %v1465_v45 = vadd.f32 %v10751_v4, %v1197_v17  ;;  %v1732_v4 = vadd.f32 %v10771_v9, %v10739_v54  ;;  %v1618_v54 = vadd.f32 %v10785_v37, %v10753_v11  ;;  %v1617_v9 = vadd.f32 %v10789_v39, %v1349_v47  ;;  %v12569_v11 = vld [vmem:[#allocation7_spill] sm:$0xff]  ;;  %v12576_v17 = vld [vmem:[#allocation14_spill] sm:$0xff] }
 0x166   : > { %v10913_v36 = vpop.f32.mrf.mxu1  ;;  %v1738_v28 = vadd.f32 %v12566_v27, %v10763_v22  ;;  %v1619_v32 = vadd.f32 %v12567_v31, %v1351_v55  ;;  %v1882_v37 = vadd.f32 %v12569_v11, %v1614_v1  ;;  %v1881_v39 = vadd.f32 %v12571_v38, %v1613_v15  ;;  %v12585_v31 = vld [vmem:[#allocation23_spill] sm:$0xff]  ;;  %v12586_v11 = vld [vmem:[#allocation24_spill] sm:$0xff] }
 0x167   : > { %v10928_v50 = vpop.f32.mrf.mxu0  ;;  %v1733_v2 = vadd.f32 %v10783_v34, %v1465_v45  ;;  %v1737_v34 = vadd.f32 %v12568_v33, %v1469_v49  ;;  %v2000_v14 = vadd.f32 %v12570_v57, %v1732_v4  ;;  %v1999_v40 = vadd.f32 %v12572_v58, %v1731_v16  ;;  %v12579_v45 = vld [vmem:[#allocation17_spill] sm:$0xff]  ;;  %v12581_v49 = vld [vmem:[#allocation19_spill] sm:$0xff]  ;;  %v12582_v4 = vld [vmem:[#allocation20_spill] sm:$0xff] }
 0x168   : > { %v10930_v56 = vpop.f32.mrf.mxu1  ;;  %v1884_v63 = vadd.f32 %v12573_v12, %v1616_v23  ;;  %v1883_v22 = vadd.f32 %v12575_v5, %v1615_v10  ;;  %v1886_v30 = vadd.f32 %v12577_v29, %v1618_v54  ;;  %v2004_v42 = vadd.f32 %v12578_v41, %v1736_v8  ;;  %v12583_v16 = vld [vmem:[#allocation21_spill] sm:$0xff]  ;;  %v12590_v58 = vld [vmem:[#allocation28_spill] sm:$0xff] }
 0x169   : > { %v10946_v3 = vpop.f32.mrf.mxu0  ;;  %v2001_v18 = vadd.f32 %v12576_v17, %v1733_v2  ;;  %v1885_v47 = vadd.f32 %v12579_v45, %v1617_v9  ;;  %v2003_v55 = vadd.f32 %v12580_v48, %v1735_v61  ;;  %v1888_v1 = vadd.f32 %v12581_v49, %v1620_v0  ;;  %v12587_v57 = vld [vmem:[#allocation25_spill] sm:$0xff]  ;;  %v10985_v61 = vld [vmem:[%s12531_s5 + $0x24] sm:$0xf]  ;;  %v12588_v0 = vld [vmem:[#allocation26_spill] sm:$0xff] }
 0x16a   : > { %v10948_v51 = vpop.f32.mrf.mxu1  ;;  %v2006_v15 = vadd.f32 %v12582_v4, %v1738_v28  ;;  %v1887_v23 = vadd.f32 %v12583_v16, %v1619_v32  ;;  %v2005_v10 = vadd.f32 %v12584_v24, %v1737_v34  ;;  %v2151_v33 = vadd.f32 %v12585_v31, %v1882_v37  ;;  %v12589_v34 = vld [vmem:[#allocation27_spill] sm:$0xff]  ;;  %9611 = vmatprep.subr.msk.mxu1 %vm476_vm0, %v10985_v61 }
 0x16b   : > { %v9523_v52 = vpop.f32.mrf.mxu0  ;;  %v2269_v54 = vadd.f32 %v12586_v11, %v2000_v14  ;;  %v2150_v8 = vadd.f32 %v12587_v57, %v1881_v39  ;;  %v2268_v9 = vadd.f32 %v10839_v44, %v1999_v40  ;;  %v2153_v28 = vadd.f32 %v12588_v0, %v1884_v63  ;;  %v12591_v14 = vld [vmem:[#allocation29_spill] sm:$0xff]  ;;  %v12592_v39 = vld [vmem:[#allocation30_spill] sm:$0xff] }
 0x16c   : > { %v9537_v53 = vpop.f32.mrf.mxu1  ;;  %v2271_v32 = vadd.f32 %v10843_v46, %v2002_v43  ;;  %v2152_v38 = vadd.f32 %v12589_v34, %v1883_v22  ;;  %v2270_v12 = vadd.f32 %v12590_v58, %v2001_v18  ;;  %v2155_v44 = vadd.f32 %v12591_v14, %v1886_v30  ;;  %v12593_v46 = vld [vmem:[#allocation31_spill] sm:$0xff]  ;;  %v12594_v22 = vld [vmem:[#allocation32_spill] sm:$0xff]  ;;  %v12595_v18 = vld [vmem:[#allocation33_spill] sm:$0xff] }
 0x16d   : > { %v2399_v20 = vpop.f32.mrf.mxu0  ;;  %v2273_v40 = vadd.f32 %v12592_v39, %v2004_v42  ;;  %v2419_v5 = vadd.f32 %v10884_v13, %v2151_v33  ;;  %v2537_v17 = vadd.f32 %v10886_v62, %v2269_v54  ;;  %v2154_v63 = vadd.f32 %v10853_v7, %v1885_v47  ;;  %v11006_v13 = vld [vmem:[%s12528_s2] ss:$0 sm:$0xff]  ;;  %v11011_v7 = vld [vmem:[%s12528_s2 + $0x1] ss:$0 sm:$0xff] }
 0x16e   : > { %v2517_v26 = vpop.f32.mrf.mxu1  ;;  %v2272_v43 = vadd.f32 %v12593_v46, %v2003_v55  ;;  %v2157_v29 = vadd.f32 %v12594_v22, %v1888_v1  ;;  %v2275_v41 = vadd.f32 %v12595_v18, %v2006_v15  ;;  %v2418_v49 = vadd.f32 %v10911_v35, %v2150_v8 }
 0x16f   : > { %v9526_v27 = vpop.f32.mrf.mxu0  ;;  %v2536_v30 = vadd.f32 %v10913_v36, %v2268_v9  ;;  %v2156_v42 = vadd.f32 %v10867_v59, %v1887_v23  ;;  %v2274_v47 = vadd.f32 %v10869_v60, %v2005_v10  ;;  %v2421_v35 = vadd.f32 %v10928_v50, %v2153_v28 }
 0x170   : > { %v9540_v2 = vpop.f32.mrf.mxu1  ;;  %v2539_v36 = vadd.f32 %v10930_v56, %v2271_v32  ;;  %v2420_v15 = vadd.f32 %v10946_v3, %v2152_v38  ;;  %v2538_v16 = vadd.f32 %v10948_v51, %v2270_v12  ;;  %v2423_v33 = vadd.f32 %v9523_v52, %v2155_v44 }
 0x171   : > { %v2409_v37 = vpop.f32.mrf.mxu0  ;;  %v2541_v11 = vadd.f32 %v9537_v53, %v2273_v40  ;;  %v2422_v23 = vadd.f32 %v2399_v20, %v2154_v63  ;;  %v2540_v56 = vadd.f32 %v2517_v26, %v2272_v43  ;;  %v2425_v51 = vadd.f32 %v9526_v27, %v2157_v29 }
 0x172   : > { %v2527_v19 = vpop.f32.mrf.mxu1  ;;  %v2543_v57 = vadd.f32 %v9540_v2, %v2275_v41  ;;  %v2424_v40 = vadd.f32 %v2409_v37, %v2156_v42 }
 0x173   : > { %v9545_v45 = vpop.f32.mrf.mxu0 }
 0x174   : > { %v9559_v48 = vpop.f32.mrf.mxu1  ;;  %v2687_v4 = vadd.f32 %v9545_v45, %v2419_v5  ;;  %v2542_v5 = vadd.f32 %v2527_v19, %v2274_v47 }
 0x175   : > { %v2805_v62 = vadd.f32 %v9559_v48, %v2537_v17  ;;  %v2647_v55 = vpop.f32.mrf.mxu0 }
 0x176   : > { %v2765_v1 = vpop.f32.mrf.mxu1  ;;  %v2686_v24 = vadd.f32 %v2647_v55, %v2418_v49  ;;  %v11020_v54 = vadd.f32 %v11006_v13, %v2687_v4 }
 0x177   : > { %v2804_v31 = vadd.f32 %v2765_v1, %v2536_v30  ;;  %v11023_v59 = vadd.f32 %v11011_v7, %v2805_v62  ;;  %v9548_v60 = vpop.f32.mrf.mxu0 }
 0x178   : > { %v9562_v50 = vpop.f32.mrf.mxu1  ;;  %v11026_v10 = vadd.f32 %v11006_v13, %v2686_v24  ;;  %v2689_v52 = vadd.f32 %v9548_v60, %v2421_v35  ;;  %v2844_v32 = vsel %vm400_vm1, %v11020_v54, 0.0 }
 0x179   : > { %v11029_v3 = vadd.f32 %v11011_v7, %v2804_v31  ;;  %v2807_v53 = vadd.f32 %v9562_v50, %v2539_v36  ;;  %v2657_v8 = vpop.f32.mrf.mxu0  ;;  %v2865_v34 = vsel %vm400_vm1, %v11023_v59, 0.0 }
 0x17a   : > { %v2775_v9 = vpop.f32.mrf.mxu1  ;;  %v2843_v0 = vsel %vm400_vm1, %v11026_v10, 0.0  ;;  %v2688_v20 = vadd.f32 %v2657_v8, %v2420_v15  ;;  %v11040_v27 = vadd.f32 %v11006_v13, %v2689_v52 }
 0x17b   : > { %v2864_v28 = vsel %vm400_vm1, %v11029_v3, 0.0  ;;  %v2806_v26 = vadd.f32 %v2775_v9, %v2538_v16  ;;  %v11043_v2 = vadd.f32 %v11011_v7, %v2807_v53  ;;  %v9551_v38 = vpop.f32.mrf.mxu0  ;;  %v2845_v17 = vadd.f32 %v2844_v32, %v2843_v0 }
 0x17c   : > { %v9565_v58 = vpop.f32.mrf.mxu1  ;;  %v11046_v12 = vadd.f32 %v11006_v13, %v2688_v20  ;;  %v2691_v44 = vadd.f32 %v9551_v38, %v2423_v33  ;;  %v2866_v63 = vadd.f32 %v2865_v34, %v2864_v28  ;;  %v2848_v22 = vsel %vm400_vm1, %v11040_v27, 0.0 }
 0x17d   : > { %v11049_v14 = vadd.f32 %v11011_v7, %v2806_v26  ;;  %v2809_v39 = vadd.f32 %v9565_v58, %v2541_v11  ;;  %v2667_v46 = vpop.f32.mrf.mxu0  ;;  %v2869_v29 = vsel %vm400_vm1, %v11043_v2, 0.0 }
 0x17e   : > { %v2785_v43 = vpop.f32.mrf.mxu1  ;;  %v2846_v18 = vsel %vm400_vm1, %v11046_v12, 0.0  ;;  %v2690_v37 = vadd.f32 %v2667_v46, %v2422_v23  ;;  %v2824_v4 = vadd.f32 %v11006_v13, %v2691_v44 }
 0x17f   : > { %v2867_v41 = vsel %vm400_vm1, %v11049_v14, 0.0  ;;  %v2847_v45 = vadd.f32 %v2846_v18, %v2845_v17  ;;  %v2808_v19 = vadd.f32 %v2785_v43, %v2540_v56  ;;  %v9554_v49 = vpop.f32.mrf.mxu0  ;;  %v2840_v62 = vadd.f32 %v11011_v7, %v2809_v39 }
 0x180   : > { %v2868_v48 = vadd.f32 %v2867_v41, %v2866_v63  ;;  %v9568_v30 = vpop.f32.mrf.mxu1  ;;  %v2693_v42 = vadd.f32 %v9554_v49, %v2425_v51  ;;  %v2823_v35 = vadd.f32 %v11006_v13, %v2690_v37  ;;  %v2852_v60 = vsel %vm400_vm1, %v2824_v4, 0.0 }
 0x181   : > { %v2811_v47 = vadd.f32 %v9568_v30, %v2543_v57  ;;  %v2849_v36 = vadd.f32 %v2848_v22, %v2847_v45  ;;  %v2839_v55 = vadd.f32 %v11011_v7, %v2808_v19  ;;  %v2677_v15 = vpop.f32.mrf.mxu0  ;;  %v2873_v50 = vsel %vm400_vm1, %v2840_v62, 0.0 }
 0x182   : > { %v2870_v1 = vadd.f32 %v2869_v29, %v2868_v48  ;;  %v2795_v16 = vpop.f32.mrf.mxu1  ;;  %v2692_v24 = vadd.f32 %v2677_v15, %v2424_v40  ;;  %v2850_v33 = vsel %vm400_vm1, %v2823_v35, 0.0  ;;  %v2826_v51 = vadd.f32 %v11006_v13, %v2693_v42 }
 0x183   : > { %v2810_v31 = vadd.f32 %v2795_v16, %v2542_v5  ;;  %v2871_v11 = vsel %vm400_vm1, %v2839_v55, 0.0  ;;  %v2851_v23 = vadd.f32 %v2850_v33, %v2849_v36  ;;  %v2842_v57 = vadd.f32 %v11011_v7, %v2811_v47 }
 0x184   : > { %v2872_v56 = vadd.f32 %v2871_v11, %v2870_v1  ;;  %v2825_v52 = vadd.f32 %v11006_v13, %v2692_v24  ;;  %v2856_v32 = vsel %vm400_vm1, %v2826_v51, 0.0 }
 0x185   : > { %v2841_v53 = vadd.f32 %v11011_v7, %v2810_v31  ;;  %v2853_v8 = vadd.f32 %v2852_v60, %v2851_v23  ;;  %v2877_v34 = vsel %vm400_vm1, %v2842_v57, 0.0 }
 0x186   : > { %v2874_v9 = vadd.f32 %v2873_v50, %v2872_v56  ;;  %v2854_v0 = vsel %vm400_vm1, %v2825_v52, 0.0 }
 0x187   : > { %v2875_v28 = vsel %vm400_vm1, %v2841_v53, 0.0  ;;  %v2855_v20 = vadd.f32 %v2854_v0, %v2853_v8 }
 0x188   : > { %v2876_v26 = vadd.f32 %v2875_v28, %v2874_v9 }
 0x189   : > { %v2857_v38 = vadd.f32 %v2856_v32, %v2855_v20 }
 0x18a   : > { %v2878_v58 = vadd.f32 %v2877_v34, %v2876_v26 }
 0x18b   : > { %v2858_v44 = vrot.slane %v2857_v38, 4 }
 0x18c   : > { %v2879_v39 = vrot.slane %v2878_v58, 4 }
 0x18d   : > { %v2859_v40 = vadd.f32 %v2858_v44, %v2857_v38 }
 0x18e   : > { %v2880_v13 = vadd.f32 %v2879_v39, %v2878_v58 }
 0x18f   : > { %v2860_v5 = vrot.slane %v2859_v40, 2 }
 0x190   : > { %v2881_v7 = vrot.slane %v2880_v13, 2 }
 0x191   : > { %v2861_v17 = vadd.f32 %v2860_v5, %v2859_v40 }
 0x192   : > { %v2882_v63 = vadd.f32 %v2881_v7, %v2880_v13 }
 0x193   : > { %v2862_v46 = vrot.slane %v2861_v17, 1 }
 0x194   : > { %v2883_v43 = vrot.slane %v2882_v63, 1 }
 0x195   : > { %v2863_v22 = vadd.f32 %v2862_v46, %v2861_v17 }
 0x196   : > { %v2884_v29 = vadd.f32 %v2883_v43, %v2882_v63 }
 0x198   : > { %v2885_v18 = vadd.f32 %v2884_v29, %v2863_v22 }
 0x19a   : > { %v2886_v41 = vmul.f32 0.0078125, %v2885_v18 }
 0x19c   : > { %v11076_v45 = vsub.f32 %v11026_v10, %v2886_v41  ;;  %v11079_v48 = vsub.f32 %v11020_v54, %v2886_v41  ;;  %v11082_v37 = vsub.f32 %v11046_v12, %v2886_v41  ;;  %v11085_v19 = vsub.f32 %v11040_v27, %v2886_v41 }
 0x19d   : > { %v11087_v49 = vsub.f32 %v2824_v4, %v2886_v41  ;;  %v11089_v30 = vsub.f32 %v2826_v51, %v2886_v41  ;;  %v11092_v42 = vsub.f32 %v11023_v59, %v2886_v41  ;;  %v11095_v47 = vsub.f32 %v11043_v2, %v2886_v41 }
 0x19e   : > { %v11097_v10 = vsub.f32 %v2823_v35, %v2886_v41  ;;  %v11100_v54 = vsub.f32 %v11029_v3, %v2886_v41  ;;  %v11102_v12 = vsub.f32 %v2840_v62, %v2886_v41  ;;  %v11104_v36 = vsub.f32 %v2842_v57, %v2886_v41 }
 0x19f   : > { %v11107_v27 = vsub.f32 %v11049_v14, %v2886_v41  ;;  %v2903_v4 = vmul.f32 %v11076_v45, %v11076_v45  ;;  %v2904_v59 = vmul.f32 %v11079_v48, %v11079_v48  ;;  %v2905_v2 = vmul.f32 %v11082_v37, %v11082_v37 }
 0x1a0   : > { %v2906_v3 = vmul.f32 %v11085_v19, %v11085_v19  ;;  %v11119_v1 = vsub.f32 %v2825_v52, %v2886_v41  ;;  %v11121_v14 = vsub.f32 %v2839_v55, %v2886_v41  ;;  %v2907_v15 = vmul.f32 %v11097_v10, %v11097_v10 }
 0x1a1   : > { %v2911_v62 = vsel %vm400_vm1, %v2903_v4, 0.0  ;;  %v2912_v35 = vsel %vm400_vm1, %v2904_v59, 0.0  ;;  %v2914_v24 = vsel %vm400_vm1, %v2905_v2, 0.0  ;;  %v2932_v31 = vmul.f32 %v11100_v54, %v11100_v54 }
 0x1a2   : > { %v2913_v16 = vadd.f32 %v2912_v35, %v2911_v62  ;;  %v2933_v33 = vmul.f32 %v11092_v42, %v11092_v42  ;;  %v2934_v11 = vmul.f32 %v11107_v27, %v11107_v27  ;;  %v2908_v60 = vmul.f32 %v11087_v49, %v11087_v49 }
 0x1a3   : > { %v2916_v50 = vsel %vm400_vm1, %v2906_v3, 0.0  ;;  %v2935_v23 = vmul.f32 %v11095_v47, %v11095_v47  ;;  %v2940_v56 = vsel %vm400_vm1, %v2932_v31, 0.0  ;;  %v11139_v57 = vsub.f32 %v2841_v53, %v2886_v41 }
 0x1a4   : > { %v2915_v55 = vadd.f32 %v2914_v24, %v2913_v16  ;;  %v2941_v51 = vsel %vm400_vm1, %v2933_v33, 0.0  ;;  %v2909_v9 = vmul.f32 %v11119_v1, %v11119_v1  ;;  %v2918_v0 = vsel %vm400_vm1, %v2907_v15, 0.0 }
 0x1a5   : > { %v2942_v8 = vadd.f32 %v2941_v51, %v2940_v56  ;;  %v2936_v28 = vmul.f32 %v11121_v14, %v11121_v14  ;;  %v2943_v20 = vsel %vm400_vm1, %v2934_v11, 0.0  ;;  %v2910_v34 = vmul.f32 %v11089_v30, %v11089_v30 }
 0x1a6   : > { %v2917_v52 = vadd.f32 %v2916_v50, %v2915_v55  ;;  %v2920_v53 = vsel %vm400_vm1, %v2908_v60, 0.0  ;;  %v2937_v38 = vmul.f32 %v11102_v12, %v11102_v12  ;;  %v2945_v58 = vsel %vm400_vm1, %v2935_v23, 0.0 }
 0x1a7   : > { %v2944_v32 = vadd.f32 %v2943_v20, %v2942_v8  ;;  %v2922_v40 = vsel %vm400_vm1, %v2909_v9, 0.0  ;;  %v2938_v13 = vmul.f32 %v11139_v57, %v11139_v57  ;;  %v2947_v5 = vsel %vm400_vm1, %v2936_v28, 0.0 }
 0x1a8   : > { %v2919_v26 = vadd.f32 %v2918_v0, %v2917_v52  ;;  %v2924_v63 = vsel %vm400_vm1, %v2910_v34, 0.0  ;;  %v2939_v46 = vmul.f32 %v11104_v36, %v11104_v36  ;;  %v2949_v43 = vsel %vm400_vm1, %v2937_v38, 0.0  ;;  %v11166_v52 = vld [vmem:[%s12529_s3] ss:$0 sm:$0xff] }
 0x1a9   : > { %v2946_v39 = vadd.f32 %v2945_v58, %v2944_v32  ;;  %v2951_v18 = vsel %vm400_vm1, %v2938_v13, 0.0 }
 0x1aa   : > { %v2921_v44 = vadd.f32 %v2920_v53, %v2919_v26  ;;  %v2953_v59 = vsel %vm400_vm1, %v2939_v46, 0.0 }
 0x1ab   : > { %v2948_v17 = vadd.f32 %v2947_v5, %v2946_v39 }
 0x1ac   : > { %v2923_v7 = vadd.f32 %v2922_v40, %v2921_v44 }
 0x1ad   : > { %v2950_v29 = vadd.f32 %v2949_v43, %v2948_v17 }
 0x1ae   : > { %v2925_v22 = vadd.f32 %v2924_v63, %v2923_v7  ;;  %v8450_v7 = vld [vmem:[%s12530_s4 + $0x1] ss:$0 sm:$0xff] }
 0x1af   : > { %v2952_v4 = vadd.f32 %v2951_v18, %v2950_v29 }
 0x1b0   : > { %v2926_v41 = vrot.slane %v2925_v22, 4 }
 0x1b1   : > { %v2954_v3 = vadd.f32 %v2953_v59, %v2952_v4 }
 0x1b2   : > { %v2927_v2 = vadd.f32 %v2926_v41, %v2925_v22 }
 0x1b3   : > { %v2955_v35 = vrot.slane %v2954_v3, 4 }
 0x1b4   : > { %v2928_v62 = vrot.slane %v2927_v2, 2 }
 0x1b5   : > { %v2956_v16 = vadd.f32 %v2955_v35, %v2954_v3 }
 0x1b6   : > { %v2929_v15 = vadd.f32 %v2928_v62, %v2927_v2 }
 0x1b7   : > { %v2957_v31 = vrot.slane %v2956_v16, 2 }
 0x1b8   : > { %v2930_v24 = vrot.slane %v2929_v15, 1 }
 0x1b9   : > { %v2958_v33 = vadd.f32 %v2957_v31, %v2956_v16 }
 0x1ba   : > { %v2931_v11 = vadd.f32 %v2930_v24, %v2929_v15 }
 0x1bb   : > { %v2959_v60 = vrot.slane %v2958_v33, 1 }
 0x1bd   : > { %v2960_v55 = vadd.f32 %v2959_v60, %v2958_v33 }
 0x1bf   : > { %v2961_v50 = vadd.f32 %v2960_v55, %v2931_v11 }
 0x1c1   : > { %v2962_v23 = vmul.f32 0.0078125, %v2961_v50 }
 0x1c3   : > { %v2963_v56 = vadd.f32 1e-05, %v2962_v23 }
 0x1c5   : > { %10082 = vrsqrt.f32 %v2963_v56 }
 0x1d2   : > { %v10083_v51 = vpop.eup %10082 }
 0x1d3   : > { %v2965_v8 = vmul.f32 %v10083_v51, %v11076_v45  ;;  %v2966_v9 = vmul.f32 %v10083_v51, %v11079_v48  ;;  %v2967_v0 = vmul.f32 %v10083_v51, %v11082_v37  ;;  %v2968_v28 = vmul.f32 %v10083_v51, %v11085_v19  ;;  %v8446_v45 = vld [vmem:[%s12530_s4] ss:$0 sm:$0xff] }
 0x1d4   : > { %v2969_v20 = vmul.f32 %v10083_v51, %v11097_v10  ;;  %v2970_v26 = vmul.f32 %v10083_v51, %v11087_v49  ;;  %v2971_v32 = vmul.f32 %v10083_v51, %v11119_v1  ;;  %v2972_v34 = vmul.f32 %v10083_v51, %v11089_v30  ;;  %v8448_v1 = vld [vmem:[%s12529_s3 + $0x1] ss:$0 sm:$0xff] }
 0x1d5   : > { %v2980_v53 = vmul.f32 %v11166_v52, %v2965_v8  ;;  %v2983_v38 = vmul.f32 %v11166_v52, %v2968_v28  ;;  %v3011_v48 = vmul.f32 %v10083_v51, %v11100_v54  ;;  %v3012_v37 = vmul.f32 %v10083_v51, %v11092_v42 }
 0x1d6   : > { %v2984_v19 = vmul.f32 %v11166_v52, %v2969_v20  ;;  %v2985_v49 = vmul.f32 %v11166_v52, %v2970_v26  ;;  %v2986_v10 = vmul.f32 %v11166_v52, %v2971_v32  ;;  %v2987_v30 = vmul.f32 %v11166_v52, %v2972_v34 }
 0x1d7   : > { %v3013_v58 = vmul.f32 %v10083_v51, %v11107_v27  ;;  %v3014_v44 = vmul.f32 %v10083_v51, %v11095_v47  ;;  %v3015_v54 = vmul.f32 %v10083_v51, %v11121_v14  ;;  %v3016_v42 = vmul.f32 %v10083_v51, %v11102_v12 }
 0x1d8   : > { %v3000_v39 = vadd.f32 %v8446_v45, %v2985_v49  ;;  %v3001_v40 = vadd.f32 %v8446_v45, %v2986_v10  ;;  %v3002_v13 = vadd.f32 %v8446_v45, %v2987_v30  ;;  %v3017_v5 = vmul.f32 %v10083_v51, %v11139_v57 }
 0x1d9   : > { %v3018_v17 = vmul.f32 %v10083_v51, %v11104_v36  ;;  %v3027_v63 = vmul.f32 %v8448_v1, %v3011_v48  ;;  %v3028_v46 = vmul.f32 %v8448_v1, %v3012_v37  ;;  %v3029_v27 = vmul.f32 %v8448_v1, %v3013_v58  ;;  %v8500_v37 = vld [vmem:[%s12531_s5 + $0x4c] sm:$0xf] }
 0x1da   : > { %v3009_v43 = vmax.f32 %v3001_v40, 0.0  ;;  %v3010_v47 = vmax.f32 %v3002_v13, 0.0  ;;  %v3030_v22 = vmul.f32 %v8448_v1, %v3014_v44  ;;  %v3031_v14 = vmul.f32 %v8448_v1, %v3015_v54  ;;  %v8530_v13 = vld [vmem:[%s12531_s5 + $0x8] sm:$0xf] }
 0x1db   : > { %v3032_v29 = vmul.f32 %v8448_v1, %v3016_v42  ;;  %v3033_v12 = vmul.f32 %v8448_v1, %v3017_v5  ;;  %v3034_v18 = vmul.f32 %v8448_v1, %v3018_v17  ;;  %v3043_v41 = vadd.f32 %v8450_v7, %v3027_v63  ;;  %v8510_v42 = vld [vmem:[%s12531_s5 + $0x28] sm:$0xf]  ;;  %v8540_v63 = vld [vmem:[%s12531_s5 + $0x50] sm:$0xf] }
 0x1dc   : > { %v3044_v4 = vadd.f32 %v8450_v7, %v3028_v46  ;;  %v3045_v59 = vadd.f32 %v8450_v7, %v3029_v27  ;;  %v3046_v57 = vadd.f32 %v8450_v7, %v3030_v22  ;;  %v3047_v2 = vadd.f32 %v8450_v7, %v3031_v14  ;;  %3106 = vst.msk [vmem:[#allocation3 + $0x71] sm:$0xff] %vm400_vm1, %v3009_v43 }
 0x1dd   : > { %3107 = vst.msk [vmem:[#allocation3 + $0x81] sm:$0xff] %vm400_vm1, %v3010_v47  ;;  %v3048_v36 = vadd.f32 %v8450_v7, %v3032_v29  ;;  %v3049_v3 = vadd.f32 %v8450_v7, %v3033_v12  ;;  %v3050_v62 = vadd.f32 %v8450_v7, %v3034_v18  ;;  %v3051_v35 = vmax.f32 %v3043_v41, 0.0 }
 0x1de   : > { %v3052_v15 = vmax.f32 %v3044_v4, 0.0  ;;  %v3053_v16 = vmax.f32 %v3045_v59, 0.0  ;;  %v3054_v24 = vmax.f32 %v3046_v57, 0.0  ;;  %v3055_v31 = vmax.f32 %v3047_v2, 0.0  ;;  %v8550_v4 = vld [vmem:[%s12531_s5 + $0x2c] sm:$0xf] }
 0x1df   : > { %v3056_v33 = vmax.f32 %v3048_v36, 0.0  ;;  %v3057_v11 = vmax.f32 %v3049_v3, 0.0  ;;  %v3058_v60 = vmax.f32 %v3050_v62, 0.0  ;;  %3109 = vst.msk [vmem:[#allocation3 + $0xb1] sm:$0xff] %vm400_vm1, %v3051_v35  ;;  %v2995_v55 = vadd.f32 %v8446_v45, %v2980_v53  ;;  %v8490_v53 = vld [vmem:[%s12531_s5 + $0x4] sm:$0xf] }
 0x1e0   : > { %3113 = vst.msk [vmem:[#allocation3 + $0xf1] sm:$0xff] %vm400_vm1, %v3055_v31  ;;  %3110 = vst.msk [vmem:[#allocation3 + $0xc1] sm:$0xff] %vm400_vm1, %v3052_v15  ;;  %v2981_v50 = vmul.f32 %v11166_v52, %v2966_v9  ;;  %v2982_v23 = vmul.f32 %v11166_v52, %v2967_v0  ;;  %v2998_v56 = vadd.f32 %v8446_v45, %v2983_v38  ;;  %v3008_v28 = vmax.f32 %v3000_v39, 0.0  ;;  %v3629_v39 = vld [vmem:[#allocation3 + $0xa1] sm:$0xff]  ;;  %v8560_v59 = vld [vmem:[%s12531_s5 + $0x74] sm:$0xf] }
 0x1e1   : > { %3111 = vst.msk [vmem:[#allocation3 + $0xd1] sm:$0xff] %vm400_vm1, %v3053_v16  ;;  %3112 = vst.msk [vmem:[#allocation3 + $0xe1] sm:$0xff] %vm400_vm1, %v3054_v24  ;;  %v2999_v51 = vadd.f32 %v8446_v45, %v2984_v19  ;;  %v3003_v8 = vmax.f32 %v2995_v55, 0.0  ;;  %v4157_v57 = vld [vmem:[#allocation3 + $0x2] sm:$0xff]  ;;  %v8570_v3 = vld [vmem:[%s12531_s5 + $0xc] sm:$0xf] }
 0x1e2   : > { %3114 = vst.msk [vmem:[#allocation3 + $0x101] sm:$0xff] %vm400_vm1, %v3056_v33  ;;  %3115 = vst.msk [vmem:[#allocation3 + $0x111] sm:$0xff] %vm400_vm1, %v3057_v11  ;;  %v2996_v20 = vadd.f32 %v8446_v45, %v2981_v50  ;;  %v2997_v26 = vadd.f32 %v8446_v45, %v2982_v23  ;;  %v3006_v32 = vmax.f32 %v2998_v56, 0.0  ;;  %v4165_v2 = vld [vmem:[#allocation3 + $0xa2] sm:$0xff]  ;;  %v8580_v16 = vld [vmem:[%s12531_s5 + $0x54] sm:$0xf] }
 0x1e3   : > { %3116 = vst.msk [vmem:[#allocation3 + $0x121] sm:$0xff] %vm400_vm1, %v3058_v60  ;;  %v3007_v34 = vmax.f32 %v2999_v51, 0.0  ;;  %3100 = vst.msk [vmem:[#allocation3 + $0x11] sm:$0xff] %vm400_vm1, %v3003_v8  ;;  %v11283_v54 = vld [vmem:[#allocation3 + $0x70] sm:$0xff] }
 0x1e4   : > { %3105 = vst.msk [vmem:[#allocation3 + $0x61] sm:$0xff] %vm400_vm1, %v3008_v28  ;;  %v3004_v9 = vmax.f32 %v2996_v20, 0.0  ;;  %v3005_v52 = vmax.f32 %v2997_v26, 0.0  ;;  %3103 = vst.msk [vmem:[#allocation3 + $0x41] sm:$0xff] %vm400_vm1, %v3006_v32  ;;  %v11381_v12 = vld [vmem:[#allocation3 + $0x71] sm:$0xff]  ;;  %v11577_v32 = vld [vmem:[#allocation3 + $0x80] sm:$0xff] }
 0x1e5   : > { %3104 = vst.msk [vmem:[#allocation3 + $0x51] sm:$0xff] %vm400_vm1, %v3007_v34  ;;  %v11489_v23 = vld [vmem:[#allocation3 + $0x72] sm:$0xff] }
 0x1e6   : > { %v11215_v0 = vld [vmem:[#allocation3 + $0xb0] sm:$0xff]  ;;  %3101 = vst.msk [vmem:[#allocation3 + $0x21] sm:$0xff] %vm400_vm1, %v3004_v9  ;;  %3102 = vst.msk [vmem:[#allocation3 + $0x31] sm:$0xff] %vm400_vm1, %v3005_v52  ;;  %v8600_v28 = vld [vmem:[%s12531_s5 + $0x78] sm:$0xf] }
 0x1e7   : > { %9572 = vmatmul.mubr.msk.f32.vlgmr.msra.gmra.mxu0 %vm400_vm1, %v11215_v0  ;;  %v11224_v38 = vld [vmem:[#allocation3 + $0xc0] sm:$0xff]  ;;  %v11255_v10 = vld [vmem:[#allocation3 + $0xf0] sm:$0xff]  ;;  %v8620_v26 = vld [vmem:[%s12531_s5 + $0x58] sm:$0xf] }
 0x1e8   : > { %9598 = vmatpush3.msk.msra.mxu0 %vm476_vm0, %v10906_v25  ;;  %9574 = vmatprep.mubr.msk.f32.mxu0 %vm400_vm1, %v11224_v38  ;;  %v11233_v48 = vld [vmem:[#allocation3 + $0xd0] sm:$0xff]  ;;  %v11242_v25 = vld [vmem:[#allocation3 + $0xe0] sm:$0xff]  ;;  %v8640_v52 = vld [vmem:[%s12531_s5 + $0x7c] sm:$0xf] }
 0x1e9   : > { %9625 = vmatprep.subr.msk.mxu0 %vm476_vm0, %v8490_v53  ;;  %v11271_v58 = vld [vmem:[#allocation3 + $0x110] sm:$0xff]  ;;  %v11351_v46 = vld [vmem:[#allocation3 + $0xc1] sm:$0xff] }
 0x1ea   : > { %v11231_v45 = vld [vmem:[#allocation3 + $0x10] sm:$0xff]  ;;  %v11369_v22 = vld [vmem:[#allocation3 + $0xe1] sm:$0xff] }
 0x1eb   : > { %9586 = vmatmul.mubr.msk.f32.vlgmr.msra.gmra.mxu1 %vm400_vm1, %v11231_v45  ;;  %9575 = vmatmul.mubr.msk.f32.gmra.mxu0 %vm400_vm1, %v11233_v48  ;;  %v11259_v30 = vld [vmem:[#allocation3 + $0x40] sm:$0xff]  ;;  %v11326_v40 = vld [vmem:[#allocation3 + $0x11] sm:$0xff] }
 0x1ec   : > { %9612 = vmatpush3.msk.msra.mxu1 %vm476_vm0, %v10985_v61  ;;  %9577 = vmatprep.mubr.msk.f32.mxu0 %vm400_vm1, %v11242_v25  ;;  %v11263_v61 = vld [vmem:[#allocation3 + $0x100] sm:$0xff]  ;;  %v11269_v1 = vld [vmem:[#allocation3 + $0x50] sm:$0xff] }
 0x1ed   : > { %v11248_v19 = vld [vmem:[#allocation3 + $0x20] sm:$0xff]  ;;  %9639 = vmatprep.subr.msk.mxu1 %vm476_vm0, %v8500_v37  ;;  %v11253_v49 = vld [vmem:[#allocation3 + $0x30] sm:$0xff] }
 0x1ee   : > { %9588 = vmatprep.mubr.msk.f32.mxu1 %vm400_vm1, %v11248_v19  ;;  %v11275_v44 = vld [vmem:[#allocation3 + $0x60] sm:$0xff]  ;;  %v11342_v7 = vld [vmem:[#allocation3 + $0xb1] sm:$0xff] }
 0x1ef   : > { %9589 = vmatmul.mubr.msk.f32.gmra.mxu1 %vm400_vm1, %v11253_v49  ;;  %9578 = vmatmul.mubr.msk.f32.gmra.mxu0 %vm400_vm1, %v11255_v10  ;;  %v11337_v5 = vld [vmem:[#allocation3 + $0x21] sm:$0xff]  ;;  %v11344_v17 = vld [vmem:[#allocation3 + $0x31] sm:$0xff] }
 0x1f0   : > { %9591 = vmatprep.mubr.msk.f32.mxu1 %vm400_vm1, %v11259_v30  ;;  %9580 = vmatprep.mubr.msk.f32.mxu0 %vm400_vm1, %v11263_v61  ;;  %v11358_v27 = vld [vmem:[#allocation3 + $0x41] sm:$0xff]  ;;  %v11363_v43 = vld [vmem:[#allocation3 + $0xd1] sm:$0xff] }
 0x1f1   : > { %v11365_v47 = vld [vmem:[#allocation3 + $0x51] sm:$0xff]  ;;  %v11373_v14 = vld [vmem:[#allocation3 + $0x61] sm:$0xff] }
 0x1f2   : > { %v11379_v29 = vld [vmem:[#allocation3 + $0xf1] sm:$0xff]  ;;  %v11385_v18 = vld [vmem:[#allocation3 + $0x101] sm:$0xff] }
 0x1f3   : > { %9592 = vmatmul.mubr.msk.f32.gmra.mxu1 %vm400_vm1, %v11269_v1  ;;  %9581 = vmatmul.mubr.msk.f32.gmra.mxu0 %vm400_vm1, %v11271_v58  ;;  %v11392_v41 = vld [vmem:[#allocation3 + $0x111] sm:$0xff]  ;;  %v11445_v62 = vld [vmem:[#allocation3 + $0x22] sm:$0xff] }
 0x1f4   : > { %9594 = vmatprep.mubr.msk.f32.mxu1 %vm400_vm1, %v11275_v44  ;;  %9599 = vmatprep.mubr.msk.f32.mxu0 %vm400_vm1, %v10894_v6  ;;  %v8520_v6 = vld [vmem:[%s12531_s5 + $0x70] sm:$0xf]  ;;  %v11459_v24 = vld [vmem:[#allocation3 + $0xc2] sm:$0xff]  ;;  %v8630_v9 = vld [vmem:[%s12531_s5 + $0x34] sm:$0xf] }
 0x1f5   : > { %v11434_v36 = vld [vmem:[#allocation3 + $0x12] sm:$0xff]  ;;  %v11466_v31 = vld [vmem:[#allocation3 + $0x42] sm:$0xff] }
 0x1f6   : > { %v11450_v35 = vld [vmem:[#allocation3 + $0xb2] sm:$0xff]  ;;  %v11477_v60 = vld [vmem:[#allocation3 + $0xe2] sm:$0xff] }
 0x1f7   : > { %9595 = vmatmul.mubr.msk.f32.gmra.mxu1 %vm400_vm1, %v11283_v54  ;;  %9600 = vmatmul.mubr.msk.f32.vlgmr.msra.gmra.mxu0 %vm400_vm1, %v11215_v0  ;;  %v11452_v15 = vld [vmem:[#allocation3 + $0x32] sm:$0xff]  ;;  %v11481_v55 = vld [vmem:[#allocation3 + $0x62] sm:$0xff] }
 0x1f8   : > { %9613 = vmatprep.mubr.msk.f32.mxu1 %vm400_vm1, %v10901_v21  ;;  %9626 = vmatpush3.msk.msra.mxu0 %vm476_vm0, %v8490_v53  ;;  %v3621_v21 = vld [vmem:[#allocation3 + $0x1] sm:$0xff]  ;;  %v11471_v33 = vld [vmem:[#allocation3 + $0xd2] sm:$0xff]  ;;  %v8660_v53 = vld [vmem:[%s12531_s5 + $0x5c] sm:$0xf] }
 0x1f9   : > { %9602 = vmatprep.mubr.msk.f32.mxu0 %vm400_vm1, %v11224_v38  ;;  %9653 = vmatprep.subr.msk.mxu0 %vm476_vm0, %v8510_v42  ;;  %v11473_v11 = vld [vmem:[#allocation3 + $0x52] sm:$0xff]  ;;  %v11493_v56 = vld [vmem:[#allocation3 + $0x102] sm:$0xff] }
 0x1fa   : > { %v11487_v50 = vld [vmem:[#allocation3 + $0xf2] sm:$0xff]  ;;  %v11587_v34 = vld [vmem:[#allocation3 + $0x120] sm:$0xff] }
 0x1fb   : > { %9614 = vmatmul.mubr.msk.f32.vlgmr.msra.gmra.mxu1 %vm400_vm1, %v11231_v45  ;;  %9603 = vmatmul.mubr.msk.f32.gmra.mxu0 %vm400_vm1, %v11233_v48  ;;  %v11500_v51 = vld [vmem:[#allocation3 + $0x112] sm:$0xff] }
 0x1fc   : > { %9616 = vmatprep.mubr.msk.f32.mxu1 %vm400_vm1, %v11248_v19  ;;  %9640 = vmatpush3.msk.msra.mxu1 %vm476_vm0, %v8500_v37  ;;  %v8590_v8 = vld [vmem:[%s12531_s5 + $0x30] sm:$0xf]  ;;  %v11675_v37 = vld [vmem:[#allocation3 + $0x121] sm:$0xff] }
 0x1fd   : > { %9605 = vmatprep.mubr.msk.f32.mxu0 %vm400_vm1, %v11242_v25  ;;  %9667 = vmatprep.subr.msk.mxu1 %vm476_vm0, %v8520_v6  ;;  %v8610_v20 = vld [vmem:[%s12531_s5 + $0x10] sm:$0xf] }
 0x1ff   : > { %9617 = vmatmul.mubr.msk.f32.gmra.mxu1 %vm400_vm1, %v11253_v49  ;;  %9606 = vmatmul.mubr.msk.f32.gmra.mxu0 %vm400_vm1, %v11255_v10 }
 0x200   : > { %9619 = vmatprep.mubr.msk.f32.mxu1 %vm400_vm1, %v11259_v30  ;;  %9608 = vmatprep.mubr.msk.f32.mxu0 %vm400_vm1, %v11263_v61 }
 0x203   : > { %9620 = vmatmul.mubr.msk.f32.gmra.mxu1 %vm400_vm1, %v11269_v1  ;;  %9609 = vmatmul.mubr.msk.f32.gmra.mxu0 %vm400_vm1, %v11271_v58 }
 0x204   : > { %9622 = vmatprep.mubr.msk.f32.mxu1 %vm400_vm1, %v11275_v44  ;;  %9627 = vmatprep.mubr.msk.f32.mxu0 %vm400_vm1, %v3621_v21 }
 0x207   : > { %9623 = vmatmul.mubr.msk.f32.gmra.mxu1 %vm400_vm1, %v11283_v54  ;;  %9628 = vmatmul.mubr.msk.f32.vlgmr.msra.gmra.mxu0 %vm400_vm1, %v11326_v40 }
 0x208   : > { %9641 = vmatprep.mubr.msk.f32.mxu1 %vm400_vm1, %v3629_v39  ;;  %9654 = vmatpush3.msk.msra.mxu0 %vm476_vm0, %v8510_v42  ;;  %v8670_v42 = vld [vmem:[%s12531_s5 + $0x38] sm:$0xf] }
 0x209   : > { %9630 = vmatprep.mubr.msk.f32.mxu0 %vm400_vm1, %v11337_v5  ;;  %9681 = vmatprep.subr.msk.mxu0 %vm476_vm0, %v8530_v13 }
 0x20b   : > { %9642 = vmatmul.mubr.msk.f32.vlgmr.msra.gmra.mxu1 %vm400_vm1, %v11342_v7  ;;  %9631 = vmatmul.mubr.msk.f32.gmra.mxu0 %vm400_vm1, %v11344_v17 }
 0x20c   : > { %9644 = vmatprep.mubr.msk.f32.mxu1 %vm400_vm1, %v11351_v46  ;;  %9668 = vmatpush3.msk.msra.mxu1 %vm476_vm0, %v8520_v6  ;;  %v8680_v6 = vld [vmem:[%s12531_s5 + $0x80] sm:$0xf] }
 0x20d   : > { %9633 = vmatprep.mubr.msk.f32.mxu0 %vm400_vm1, %v11358_v27  ;;  %9695 = vmatprep.subr.msk.mxu1 %vm476_vm0, %v8540_v63 }
 0x20f   : > { %9645 = vmatmul.mubr.msk.f32.gmra.mxu1 %vm400_vm1, %v11363_v43  ;;  %9634 = vmatmul.mubr.msk.f32.gmra.mxu0 %vm400_vm1, %v11365_v47 }
 0x210   : > { %9647 = vmatprep.mubr.msk.f32.mxu1 %vm400_vm1, %v11369_v22  ;;  %9636 = vmatprep.mubr.msk.f32.mxu0 %vm400_vm1, %v11373_v14 }
 0x213   : > { %9648 = vmatmul.mubr.msk.f32.gmra.mxu1 %vm400_vm1, %v11379_v29  ;;  %9637 = vmatmul.mubr.msk.f32.gmra.mxu0 %vm400_vm1, %v11381_v12 }
 0x214   : > { %9650 = vmatprep.mubr.msk.f32.mxu1 %vm400_vm1, %v11385_v18  ;;  %9655 = vmatprep.mubr.msk.f32.mxu0 %vm400_vm1, %v3621_v21  ;;  %v8690_v21 = vld [vmem:[%s12531_s5 + $0x18] sm:$0xf] }
 0x217   : > { %9651 = vmatmul.mubr.msk.f32.gmra.mxu1 %vm400_vm1, %v11392_v41  ;;  %9656 = vmatmul.mubr.msk.f32.vlgmr.msra.gmra.mxu0 %vm400_vm1, %v11326_v40 }
 0x218   : > { %9669 = vmatprep.mubr.msk.f32.mxu1 %vm400_vm1, %v3629_v39  ;;  %9682 = vmatpush3.msk.msra.mxu0 %vm476_vm0, %v8530_v13  ;;  %v8700_v39 = vld [vmem:[%s12531_s5 + $0x60] sm:$0xf] }
 0x219   : > { %9658 = vmatprep.mubr.msk.f32.mxu0 %vm400_vm1, %v11337_v5  ;;  %9709 = vmatprep.subr.msk.mxu0 %vm476_vm0, %v8550_v4  ;;  %v11763_v13 = vld [vmem:[#allocation3 + $0x122] sm:$0xff] }
 0x21b   : > { %9670 = vmatmul.mubr.msk.f32.vlgmr.msra.gmra.mxu1 %vm400_vm1, %v11342_v7  ;;  %9659 = vmatmul.mubr.msk.f32.gmra.mxu0 %vm400_vm1, %v11344_v17 }
 0x21c   : > { %9672 = vmatprep.mubr.msk.f32.mxu1 %vm400_vm1, %v11351_v46  ;;  %9696 = vmatpush3.msk.msra.mxu1 %vm476_vm0, %v8540_v63  ;;  %v8720_v63 = vld [vmem:[%s12531_s5 + $0x84] sm:$0xf] }
 0x21d   : > { %9661 = vmatprep.mubr.msk.f32.mxu0 %vm400_vm1, %v11358_v27  ;;  %9723 = vmatprep.subr.msk.mxu1 %vm476_vm0, %v8560_v59 }
 0x21f   : > { %9673 = vmatmul.mubr.msk.f32.gmra.mxu1 %vm400_vm1, %v11363_v43  ;;  %9662 = vmatmul.mubr.msk.f32.gmra.mxu0 %vm400_vm1, %v11365_v47 }
 0x220   : > { %9675 = vmatprep.mubr.msk.f32.mxu1 %vm400_vm1, %v11369_v22  ;;  %9664 = vmatprep.mubr.msk.f32.mxu0 %vm400_vm1, %v11373_v14 }
 0x223   : > { %9676 = vmatmul.mubr.msk.f32.gmra.mxu1 %vm400_vm1, %v11379_v29  ;;  %9665 = vmatmul.mubr.msk.f32.gmra.mxu0 %vm400_vm1, %v11381_v12 }
 0x224   : > { %9678 = vmatprep.mubr.msk.f32.mxu1 %vm400_vm1, %v11385_v18  ;;  %9683 = vmatprep.mubr.msk.f32.mxu0 %vm400_vm1, %v4157_v57 }
 0x227   : > { %9679 = vmatmul.mubr.msk.f32.gmra.mxu1 %vm400_vm1, %v11392_v41  ;;  %9684 = vmatmul.mubr.msk.f32.vlgmr.msra.gmra.mxu0 %vm400_vm1, %v11434_v36 }
 0x228   : > { %9697 = vmatprep.mubr.msk.f32.mxu1 %vm400_vm1, %v4165_v2  ;;  %9710 = vmatpush3.msk.msra.mxu0 %vm476_vm0, %v8550_v4  ;;  %v8730_v4 = vld [vmem:[%s12531_s5 + $0x1c] sm:$0xf] }
 0x229   : > { %9686 = vmatprep.mubr.msk.f32.mxu0 %vm400_vm1, %v11445_v62  ;;  %9737 = vmatprep.subr.msk.mxu0 %vm476_vm0, %v8570_v3 }
 0x22b   : > { %9698 = vmatmul.mubr.msk.f32.vlgmr.msra.gmra.mxu1 %vm400_vm1, %v11450_v35  ;;  %9687 = vmatmul.mubr.msk.f32.gmra.mxu0 %vm400_vm1, %v11452_v15 }
 0x22c   : > { %9700 = vmatprep.mubr.msk.f32.mxu1 %vm400_vm1, %v11459_v24  ;;  %9724 = vmatpush3.msk.msra.mxu1 %vm476_vm0, %v8560_v59 }
 0x22d   : > { %9689 = vmatprep.mubr.msk.f32.mxu0 %vm400_vm1, %v11466_v31  ;;  %9751 = vmatprep.subr.msk.mxu1 %vm476_vm0, %v8580_v16 }
 0x22f   : > { %9701 = vmatmul.mubr.msk.f32.gmra.mxu1 %vm400_vm1, %v11471_v33  ;;  %9690 = vmatmul.mubr.msk.f32.gmra.mxu0 %vm400_vm1, %v11473_v11 }
 0x230   : > { %9703 = vmatprep.mubr.msk.f32.mxu1 %vm400_vm1, %v11477_v60  ;;  %9692 = vmatprep.mubr.msk.f32.mxu0 %vm400_vm1, %v11481_v55 }
 0x233   : > { %9704 = vmatmul.mubr.msk.f32.gmra.mxu1 %vm400_vm1, %v11487_v50  ;;  %9693 = vmatmul.mubr.msk.f32.gmra.mxu0 %vm400_vm1, %v11489_v23 }
 0x234   : > { %9706 = vmatprep.mubr.msk.f32.mxu1 %vm400_vm1, %v11493_v56  ;;  %9711 = vmatprep.mubr.msk.f32.mxu0 %vm400_vm1, %v4157_v57 }
 0x237   : > { %9707 = vmatmul.mubr.msk.f32.gmra.mxu1 %vm400_vm1, %v11500_v51  ;;  %9712 = vmatmul.mubr.msk.f32.vlgmr.msra.gmra.mxu0 %vm400_vm1, %v11434_v36 }
 0x238   : > { %9725 = vmatprep.mubr.msk.f32.mxu1 %vm400_vm1, %v4165_v2  ;;  %9738 = vmatpush3.msk.msra.mxu0 %vm476_vm0, %v8570_v3  ;;  %v8740_v2 = vld [vmem:[%s12531_s5 + $0x64] sm:$0xf] }
 0x239   : > { %9714 = vmatprep.mubr.msk.f32.mxu0 %vm400_vm1, %v11445_v62  ;;  %9765 = vmatprep.subr.msk.mxu0 %vm476_vm0, %v8590_v8 }
 0x23b   : > { %9726 = vmatmul.mubr.msk.f32.vlgmr.msra.gmra.mxu1 %vm400_vm1, %v11450_v35  ;;  %9715 = vmatmul.mubr.msk.f32.gmra.mxu0 %vm400_vm1, %v11452_v15 }
 0x23c   : > { %9728 = vmatprep.mubr.msk.f32.mxu1 %vm400_vm1, %v11459_v24  ;;  %9752 = vmatpush3.msk.msra.mxu1 %vm476_vm0, %v8580_v16 }
 0x23d   : > { %9717 = vmatprep.mubr.msk.f32.mxu0 %vm400_vm1, %v11466_v31  ;;  %9779 = vmatprep.subr.msk.mxu1 %vm476_vm0, %v8600_v28 }
 0x23f   : > { %9729 = vmatmul.mubr.msk.f32.gmra.mxu1 %vm400_vm1, %v11471_v33  ;;  %9718 = vmatmul.mubr.msk.f32.gmra.mxu0 %vm400_vm1, %v11473_v11 }
 0x240   : > { %9731 = vmatprep.mubr.msk.f32.mxu1 %vm400_vm1, %v11477_v60  ;;  %9720 = vmatprep.mubr.msk.f32.mxu0 %vm400_vm1, %v11481_v55 }
 0x243   : > { %9732 = vmatmul.mubr.msk.f32.gmra.mxu1 %vm400_vm1, %v11487_v50  ;;  %9721 = vmatmul.mubr.msk.f32.gmra.mxu0 %vm400_vm1, %v11489_v23 }
 0x244   : > { %9734 = vmatprep.mubr.msk.f32.mxu1 %vm400_vm1, %v11493_v56  ;;  %9739 = vmatprep.mubr.msk.f32.mxu0 %vm400_vm1, %v11231_v45 }
 0x247   : > { %9735 = vmatmul.mubr.msk.f32.gmra.mxu1 %vm400_vm1, %v11500_v51  ;;  %9740 = vmatmul.mubr.msk.f32.vlgmr.msra.gmra.mxu0 %vm400_vm1, %v11248_v19 }
 0x248   : > { %9753 = vmatprep.mubr.msk.f32.mxu1 %vm400_vm1, %v11215_v0  ;;  %9766 = vmatpush3.msk.msra.mxu0 %vm476_vm0, %v8590_v8 }
 0x249   : > { %9742 = vmatprep.mubr.msk.f32.mxu0 %vm400_vm1, %v11253_v49  ;;  %9793 = vmatprep.subr.msk.mxu0 %vm476_vm0, %v8610_v20 }
 0x24b   : > { %9754 = vmatmul.mubr.msk.f32.vlgmr.msra.gmra.mxu1 %vm400_vm1, %v11224_v38  ;;  %9743 = vmatmul.mubr.msk.f32.gmra.mxu0 %vm400_vm1, %v11259_v30 }
 0x24c   : > { %9756 = vmatprep.mubr.msk.f32.mxu1 %vm400_vm1, %v11233_v48  ;;  %9780 = vmatpush3.msk.msra.mxu1 %vm476_vm0, %v8600_v28 }
 0x24d   : > { %9745 = vmatprep.mubr.msk.f32.mxu0 %vm400_vm1, %v11269_v1  ;;  %9807 = vmatprep.subr.msk.mxu1 %vm476_vm0, %v8620_v26 }
 0x24f   : > { %9757 = vmatmul.mubr.msk.f32.gmra.mxu1 %vm400_vm1, %v11242_v25  ;;  %9746 = vmatmul.mubr.msk.f32.gmra.mxu0 %vm400_vm1, %v11275_v44 }
 0x250   : > { %9759 = vmatprep.mubr.msk.f32.mxu1 %vm400_vm1, %v11255_v10  ;;  %9748 = vmatprep.mubr.msk.f32.mxu0 %vm400_vm1, %v11283_v54 }
 0x253   : > { %9760 = vmatmul.mubr.msk.f32.gmra.mxu1 %vm400_vm1, %v11263_v61  ;;  %9749 = vmatmul.mubr.msk.f32.gmra.mxu0 %vm400_vm1, %v11577_v32 }
 0x254   : > { %9762 = vmatprep.mubr.msk.f32.mxu1 %vm400_vm1, %v11271_v58  ;;  %9767 = vmatprep.mubr.msk.f32.mxu0 %vm400_vm1, %v11231_v45  ;;  %v11665_v45 = vld [vmem:[#allocation3 + $0x81] sm:$0xff] }
 0x257   : > { %9763 = vmatmul.mubr.msk.f32.gmra.mxu1 %vm400_vm1, %v11587_v34  ;;  %9768 = vmatmul.mubr.msk.f32.vlgmr.msra.gmra.mxu0 %vm400_vm1, %v11248_v19 }
 0x258   : > { %9781 = vmatprep.mubr.msk.f32.mxu1 %vm400_vm1, %v11215_v0  ;;  %9794 = vmatpush3.msk.msra.mxu0 %vm476_vm0, %v8610_v20  ;;  %v8650_v0 = vld [vmem:[%s12531_s5 + $0x14] sm:$0xf] }
 0x259   : > { %9770 = vmatprep.mubr.msk.f32.mxu0 %vm400_vm1, %v11253_v49  ;;  %9821 = vmatprep.subr.msk.mxu0 %vm476_vm0, %v8630_v9 }
 0x25b   : > { %9782 = vmatmul.mubr.msk.f32.vlgmr.msra.gmra.mxu1 %vm400_vm1, %v11224_v38  ;;  %9771 = vmatmul.mubr.msk.f32.gmra.mxu0 %vm400_vm1, %v11259_v30 }
 0x25c   : > { %9784 = vmatprep.mubr.msk.f32.mxu1 %vm400_vm1, %v11233_v48  ;;  %9808 = vmatpush3.msk.msra.mxu1 %vm476_vm0, %v8620_v26 }
 0x25d   : > { %9773 = vmatprep.mubr.msk.f32.mxu0 %vm400_vm1, %v11269_v1  ;;  %9835 = vmatprep.subr.msk.mxu1 %vm476_vm0, %v8640_v52 }
 0x25f   : > { %9785 = vmatmul.mubr.msk.f32.gmra.mxu1 %vm400_vm1, %v11242_v25  ;;  %9774 = vmatmul.mubr.msk.f32.gmra.mxu0 %vm400_vm1, %v11275_v44 }
 0x260   : > { %9787 = vmatprep.mubr.msk.f32.mxu1 %vm400_vm1, %v11255_v10  ;;  %9776 = vmatprep.mubr.msk.f32.mxu0 %vm400_vm1, %v11283_v54 }
 0x263   : > { %9788 = vmatmul.mubr.msk.f32.gmra.mxu1 %vm400_vm1, %v11263_v61  ;;  %9777 = vmatmul.mubr.msk.f32.gmra.mxu0 %vm400_vm1, %v11577_v32 }
 0x264   : > { %9790 = vmatprep.mubr.msk.f32.mxu1 %vm400_vm1, %v11271_v58  ;;  %9795 = vmatprep.mubr.msk.f32.mxu0 %vm400_vm1, %v11326_v40 }
 0x267   : > { %9791 = vmatmul.mubr.msk.f32.gmra.mxu1 %vm400_vm1, %v11587_v34  ;;  %9796 = vmatmul.mubr.msk.f32.vlgmr.msra.gmra.mxu0 %vm400_vm1, %v11337_v5 }
 0x268   : > { %9809 = vmatprep.mubr.msk.f32.mxu1 %vm400_vm1, %v11342_v7  ;;  %9822 = vmatpush3.msk.msra.mxu0 %vm476_vm0, %v8630_v9 }
 0x269   : > { %9798 = vmatprep.mubr.msk.f32.mxu0 %vm400_vm1, %v11344_v17  ;;  %9849 = vmatprep.subr.msk.mxu0 %vm476_vm0, %v8650_v0 }
 0x26b   : > { %9810 = vmatmul.mubr.msk.f32.vlgmr.msra.gmra.mxu1 %vm400_vm1, %v11351_v46  ;;  %9799 = vmatmul.mubr.msk.f32.gmra.mxu0 %vm400_vm1, %v11358_v27 }
 0x26c   : > { %9812 = vmatprep.mubr.msk.f32.mxu1 %vm400_vm1, %v11363_v43  ;;  %9836 = vmatpush3.msk.msra.mxu1 %vm476_vm0, %v8640_v52  ;;  %v6309_v52 = vld [vmem:[#allocation3 + $0x90] sm:$0xff] }
 0x26d   : > { %9801 = vmatprep.mubr.msk.f32.mxu0 %vm400_vm1, %v11365_v47  ;;  %9863 = vmatprep.subr.msk.mxu1 %vm476_vm0, %v8660_v53 }
 0x26f   : > { %9813 = vmatmul.mubr.msk.f32.gmra.mxu1 %vm400_vm1, %v11369_v22  ;;  %9802 = vmatmul.mubr.msk.f32.gmra.mxu0 %vm400_vm1, %v11373_v14 }
 0x270   : > { %9815 = vmatprep.mubr.msk.f32.mxu1 %vm400_vm1, %v11379_v29  ;;  %9804 = vmatprep.mubr.msk.f32.mxu0 %vm400_vm1, %v11381_v12 }
 0x273   : > { %9816 = vmatmul.mubr.msk.f32.gmra.mxu1 %vm400_vm1, %v11385_v18  ;;  %9805 = vmatmul.mubr.msk.f32.gmra.mxu0 %vm400_vm1, %v11665_v45 }
 0x274   : > { %9818 = vmatprep.mubr.msk.f32.mxu1 %vm400_vm1, %v11392_v41  ;;  %9823 = vmatprep.mubr.msk.f32.mxu0 %vm400_vm1, %v11326_v40  ;;  %v11753_v40 = vld [vmem:[#allocation3 + $0x82] sm:$0xff] }
 0x277   : > { %9819 = vmatmul.mubr.msk.f32.gmra.mxu1 %vm400_vm1, %v11675_v37  ;;  %9824 = vmatmul.mubr.msk.f32.vlgmr.msra.gmra.mxu0 %vm400_vm1, %v11337_v5 }
 0x278   : > { %9837 = vmatprep.mubr.msk.f32.mxu1 %vm400_vm1, %v11342_v7  ;;  %9850 = vmatpush3.msk.msra.mxu0 %vm476_vm0, %v8650_v0  ;;  %v8710_v7 = vld [vmem:[%s12531_s5 + $0x3c] sm:$0xf] }
 0x279   : > { %9826 = vmatprep.mubr.msk.f32.mxu0 %vm400_vm1, %v11344_v17  ;;  %9877 = vmatprep.subr.msk.mxu0 %vm476_vm0, %v8670_v42 }
 0x27b   : > { %9838 = vmatmul.mubr.msk.f32.vlgmr.msra.gmra.mxu1 %vm400_vm1, %v11351_v46  ;;  %9827 = vmatmul.mubr.msk.f32.gmra.mxu0 %vm400_vm1, %v11358_v27 }
 0x27c   : > { %9840 = vmatprep.mubr.msk.f32.mxu1 %vm400_vm1, %v11363_v43  ;;  %9864 = vmatpush3.msk.msra.mxu1 %vm476_vm0, %v8660_v53 }
 0x27d   : > { %9829 = vmatprep.mubr.msk.f32.mxu0 %vm400_vm1, %v11365_v47  ;;  %9891 = vmatprep.subr.msk.mxu1 %vm476_vm0, %v8680_v6 }
 0x27f   : > { %9841 = vmatmul.mubr.msk.f32.gmra.mxu1 %vm400_vm1, %v11369_v22  ;;  %9830 = vmatmul.mubr.msk.f32.gmra.mxu0 %vm400_vm1, %v11373_v14 }
 0x280   : > { %9843 = vmatprep.mubr.msk.f32.mxu1 %vm400_vm1, %v11379_v29  ;;  %9832 = vmatprep.mubr.msk.f32.mxu0 %vm400_vm1, %v11381_v12 }
 0x283   : > { %9844 = vmatmul.mubr.msk.f32.gmra.mxu1 %vm400_vm1, %v11385_v18  ;;  %9833 = vmatmul.mubr.msk.f32.gmra.mxu0 %vm400_vm1, %v11665_v45 }
 0x284   : > { %9846 = vmatprep.mubr.msk.f32.mxu1 %vm400_vm1, %v11392_v41  ;;  %9851 = vmatprep.mubr.msk.f32.mxu0 %vm400_vm1, %v11434_v36 }
 0x287   : > { %9847 = vmatmul.mubr.msk.f32.gmra.mxu1 %vm400_vm1, %v11675_v37  ;;  %9852 = vmatmul.mubr.msk.f32.vlgmr.msra.gmra.mxu0 %vm400_vm1, %v11445_v62 }
 0x288   : > { %9865 = vmatprep.mubr.msk.f32.mxu1 %vm400_vm1, %v11450_v35  ;;  %9878 = vmatpush3.msk.msra.mxu0 %vm476_vm0, %v8670_v42 }
 0x289   : > { %9854 = vmatprep.mubr.msk.f32.mxu0 %vm400_vm1, %v11452_v15  ;;  %9905 = vmatprep.subr.msk.mxu0 %vm476_vm0, %v8690_v21 }
 0x28b   : > { %9866 = vmatmul.mubr.msk.f32.vlgmr.msra.gmra.mxu1 %vm400_vm1, %v11459_v24  ;;  %9855 = vmatmul.mubr.msk.f32.gmra.mxu0 %vm400_vm1, %v11466_v31 }
 0x28c   : > { %9868 = vmatprep.mubr.msk.f32.mxu1 %vm400_vm1, %v11471_v33  ;;  %9892 = vmatpush3.msk.msra.mxu1 %vm476_vm0, %v8680_v6 }
 0x28d   : > { %9857 = vmatprep.mubr.msk.f32.mxu0 %vm400_vm1, %v11473_v11  ;;  %9919 = vmatprep.subr.msk.mxu1 %vm476_vm0, %v8700_v39 }
 0x28f   : > { %9869 = vmatmul.mubr.msk.f32.gmra.mxu1 %vm400_vm1, %v11477_v60  ;;  %9858 = vmatmul.mubr.msk.f32.gmra.mxu0 %vm400_vm1, %v11481_v55 }
 0x290   : > { %9871 = vmatprep.mubr.msk.f32.mxu1 %vm400_vm1, %v11487_v50  ;;  %9860 = vmatprep.mubr.msk.f32.mxu0 %vm400_vm1, %v11489_v23 }
 0x293   : > { %9872 = vmatmul.mubr.msk.f32.gmra.mxu1 %vm400_vm1, %v11493_v56  ;;  %9861 = vmatmul.mubr.msk.f32.gmra.mxu0 %vm400_vm1, %v11753_v40 }
 0x294   : > { %9874 = vmatprep.mubr.msk.f32.mxu1 %vm400_vm1, %v11500_v51  ;;  %9879 = vmatprep.mubr.msk.f32.mxu0 %vm400_vm1, %v11434_v36 }
 0x297   : > { %9875 = vmatmul.mubr.msk.f32.gmra.mxu1 %vm400_vm1, %v11763_v13  ;;  %9880 = vmatmul.mubr.msk.f32.vlgmr.msra.gmra.mxu0 %vm400_vm1, %v11445_v62 }
 0x298   : > { %9893 = vmatprep.mubr.msk.f32.mxu1 %vm400_vm1, %v11450_v35  ;;  %9906 = vmatpush3.msk.msra.mxu0 %vm476_vm0, %v8690_v21 }
 0x299   : > { %9882 = vmatprep.mubr.msk.f32.mxu0 %vm400_vm1, %v11452_v15  ;;  %9933 = vmatprep.subr.msk.mxu0 %vm476_vm0, %v8710_v7 }
 0x29b   : > { %9894 = vmatmul.mubr.msk.f32.vlgmr.msra.gmra.mxu1 %vm400_vm1, %v11459_v24  ;;  %9883 = vmatmul.mubr.msk.f32.gmra.mxu0 %vm400_vm1, %v11466_v31 }
 0x29c   : > { %9896 = vmatprep.mubr.msk.f32.mxu1 %vm400_vm1, %v11471_v33  ;;  %9920 = vmatpush3.msk.msra.mxu1 %vm476_vm0, %v8700_v39 }
 0x29d   : > { %9885 = vmatprep.mubr.msk.f32.mxu0 %vm400_vm1, %v11473_v11  ;;  %9947 = vmatprep.subr.msk.mxu1 %vm476_vm0, %v8720_v63 }
 0x29f   : > { %9897 = vmatmul.mubr.msk.f32.gmra.mxu1 %vm400_vm1, %v11477_v60  ;;  %9886 = vmatmul.mubr.msk.f32.gmra.mxu0 %vm400_vm1, %v11481_v55 }
 0x2a0   : > { %9899 = vmatprep.mubr.msk.f32.mxu1 %vm400_vm1, %v11487_v50  ;;  %9888 = vmatprep.mubr.msk.f32.mxu0 %vm400_vm1, %v11489_v23 }
 0x2a3   : > { %9900 = vmatmul.mubr.msk.f32.gmra.mxu1 %vm400_vm1, %v11493_v56  ;;  %9889 = vmatmul.mubr.msk.f32.gmra.mxu0 %vm400_vm1, %v11753_v40 }
 0x2a4   : > { %9902 = vmatprep.mubr.msk.f32.mxu1 %vm400_vm1, %v11500_v51  ;;  %9907 = vmatprep.mubr.msk.f32.mxu0 %vm400_vm1, %v11248_v19 }
 0x2a7   : > { %9903 = vmatmul.mubr.msk.f32.gmra.mxu1 %vm400_vm1, %v11763_v13  ;;  %v9573_v59 = vpop.f32.mrf.mxu0  ;;  %9908 = vmatmul.mubr.msk.f32.vlgmr.msra.gmra.mxu0 %vm400_vm1, %v11253_v49 }
 0x2a8   : > { %9921 = vmatprep.mubr.msk.f32.mxu1 %vm400_vm1, %v11224_v38  ;;  %9934 = vmatpush3.msk.msra.mxu0 %vm476_vm0, %v8710_v7  ;;  %v6318_v7 = vld [vmem:[#allocation3 + $0x130] sm:$0xff] }
 0x2a9   : > { %9910 = vmatprep.mubr.msk.f32.mxu0 %vm400_vm1, %v11259_v30  ;;  %v3230_v57 = vpop.f32.mrf.mxu0  ;;  %9961 = vmatprep.subr.msk.mxu0 %vm476_vm0, %v8730_v4 }
 0x2ab   : > { %v9587_v36 = vpop.f32.mrf.mxu1  ;;  %9922 = vmatmul.mubr.msk.f32.vlgmr.msra.gmra.mxu1 %vm400_vm1, %v11233_v48  ;;  %v9576_v3 = vpop.f32.mrf.mxu0  ;;  %9911 = vmatmul.mubr.msk.f32.gmra.mxu0 %vm400_vm1, %v11269_v1 }
 0x2ac   : > { %v11827_v35 = vadd.f32 %v9587_v36, %v9573_v59  ;;  %9924 = vmatprep.mubr.msk.f32.mxu1 %vm400_vm1, %v11242_v25  ;;  %9948 = vmatpush3.msk.msra.mxu1 %vm476_vm0, %v8720_v63  ;;  %v8750_v36 = vld [vmem:[%s12531_s5 + $0x40] sm:$0xf] }
 0x2ad   : > { %v3362_v16 = vpop.f32.mrf.mxu1  ;;  %9913 = vmatprep.mubr.msk.f32.mxu0 %vm400_vm1, %v11275_v44  ;;  %v3240_v8 = vpop.f32.mrf.mxu0  ;;  %9975 = vmatprep.subr.msk.mxu1 %vm476_vm0, %v8740_v2 }
 0x2ae   : > { %v11835_v28 = vadd.f32 %v3362_v16, %v3230_v57 }
 0x2af   : > { %v9590_v20 = vpop.f32.mrf.mxu1  ;;  %9925 = vmatmul.mubr.msk.f32.gmra.mxu1 %vm400_vm1, %v11255_v10  ;;  %v9579_v26 = vpop.f32.mrf.mxu0  ;;  %9914 = vmatmul.mubr.msk.f32.gmra.mxu0 %vm400_vm1, %v11283_v54 }
 0x2b0   : > { %v11841_v9 = vadd.f32 %v9590_v20, %v9576_v3  ;;  %9927 = vmatprep.mubr.msk.f32.mxu1 %vm400_vm1, %v11263_v61  ;;  %9916 = vmatprep.mubr.msk.f32.mxu0 %vm400_vm1, %v11577_v32 }
 0x2b1   : > { %v3372_v0 = vpop.f32.mrf.mxu1  ;;  %v3250_v53 = vpop.f32.mrf.mxu0 }
 0x2b2   : > { %v11847_v42 = vadd.f32 %v3372_v0, %v3240_v8 }
 0x2b3   : > { %v9593_v6 = vpop.f32.mrf.mxu1  ;;  %9928 = vmatmul.mubr.msk.f32.gmra.mxu1 %vm400_vm1, %v11271_v58  ;;  %v9582_v21 = vpop.f32.mrf.mxu0  ;;  %9917 = vmatmul.mubr.msk.f32.gmra.mxu0 %vm400_vm1, %v6309_v52 }
 0x2b4   : > { %v11852_v39 = vadd.f32 %v9593_v6, %v9579_v26  ;;  %9930 = vmatprep.mubr.msk.f32.mxu1 %vm400_vm1, %v11587_v34  ;;  %9935 = vmatprep.mubr.msk.f32.mxu0 %vm400_vm1, %v11248_v19 }
 0x2b5   : > { %v3382_v63 = vpop.f32.mrf.mxu1  ;;  %v3260_v59 = vpop.f32.mrf.mxu0 }
 0x2b6   : > { %v11858_v57 = vadd.f32 %v3382_v63, %v3250_v53 }
 0x2b7   : > { %v9596_v3 = vpop.f32.mrf.mxu1  ;;  %9931 = vmatmul.mubr.msk.f32.gmra.mxu1 %vm400_vm1, %v6318_v7  ;;  %v9601_v16 = vpop.f32.mrf.mxu0  ;;  %9936 = vmatmul.mubr.msk.f32.vlgmr.msra.gmra.mxu0 %vm400_vm1, %v11253_v49  ;;  %v8760_v49 = vld [vmem:[%s12531_s5 + $0x88] sm:$0xf] }
 0x2b8   : > { %v11866_v8 = vadd.f32 %v9596_v3, %v9582_v21  ;;  %9949 = vmatprep.mubr.msk.f32.mxu1 %vm400_vm1, %v11224_v38  ;;  %9962 = vmatpush3.msk.msra.mxu0 %vm476_vm0, %v8730_v4  ;;  %v11919_v3 = vld [vmem:[%s12531_s5 + $0x20] sm:$0xf] }
 0x2b9   : > { %v3392_v19 = vpop.f32.mrf.mxu1  ;;  %9938 = vmatprep.mubr.msk.f32.mxu0 %vm400_vm1, %v11259_v30  ;;  %v3474_v20 = vpop.f32.mrf.mxu0  ;;  %9989 = vmatprep.subr.msk.mxu0 %vm476_vm0, %v8750_v36 }
 0x2ba   : > { %v11874_v26 = vadd.f32 %v3392_v19, %v3260_v59 }
 0x2bb   : > { %v9615_v0 = vpop.f32.mrf.mxu1  ;;  %9950 = vmatmul.mubr.msk.f32.vlgmr.msra.gmra.mxu1 %vm400_vm1, %v11233_v48  ;;  %v9604_v38 = vpop.f32.mrf.mxu0  ;;  %9939 = vmatmul.mubr.msk.f32.gmra.mxu0 %vm400_vm1, %v11269_v1 }
 0x2bc   : > { %v11883_v4 = vadd.f32 %v9615_v0, %v9601_v16  ;;  %9952 = vmatprep.mubr.msk.f32.mxu1 %vm400_vm1, %v11242_v25  ;;  %9976 = vmatpush3.msk.msra.mxu1 %vm476_vm0, %v8740_v2 }
 0x2bd   : > { %v3582_v30 = vpop.f32.mrf.mxu1  ;;  %9941 = vmatprep.mubr.msk.f32.mxu0 %vm400_vm1, %v11275_v44  ;;  %v3484_v53 = vpop.f32.mrf.mxu0  ;;  %10003 = vmatprep.subr.msk.mxu1 %vm476_vm0, %v8760_v49 }
 0x2be   : > { %v11891_v6 = vadd.f32 %v3582_v30, %v3474_v20 }
 0x2bf   : > { %v9618_v48 = vpop.f32.mrf.mxu1  ;;  %9953 = vmatmul.mubr.msk.f32.gmra.mxu1 %vm400_vm1, %v11255_v10  ;;  %v9607_v1 = vpop.f32.mrf.mxu0  ;;  %9942 = vmatmul.mubr.msk.f32.gmra.mxu0 %vm400_vm1, %v11283_v54 }
 0x2c0   : > { %v11897_v25 = vadd.f32 %v9618_v48, %v9604_v38  ;;  %9955 = vmatprep.mubr.msk.f32.mxu1 %vm400_vm1, %v11263_v61  ;;  %9944 = vmatprep.mubr.msk.f32.mxu0 %vm400_vm1, %v11577_v32  ;;  %v11940_v38 = vld [vmem:[%s12531_s5 + $0x68] sm:$0xf] }
 0x2c1   : > { %v3592_v44 = vpop.f32.mrf.mxu1  ;;  %v3494_v2 = vpop.f32.mrf.mxu0 }
 0x2c2   : > { %v11903_v21 = vadd.f32 %v3592_v44, %v3484_v53 }
 0x2c3   : > { %v9621_v63 = vpop.f32.mrf.mxu1  ;;  %9956 = vmatmul.mubr.msk.f32.gmra.mxu1 %vm400_vm1, %v11271_v58  ;;  %v9610_v10 = vpop.f32.mrf.mxu0  ;;  %9945 = vmatmul.mubr.msk.f32.gmra.mxu0 %vm400_vm1, %v6309_v52 }
 0x2c4   : > { %v11908_v54 = vadd.f32 %v9621_v63, %v9607_v1  ;;  %9958 = vmatprep.mubr.msk.f32.mxu1 %vm400_vm1, %v11587_v34  ;;  %9963 = vmatprep.mubr.msk.f32.mxu0 %vm400_vm1, %v11337_v5 }
 0x2c5   : > { %v3602_v61 = vpop.f32.mrf.mxu1  ;;  %v3504_v32 = vpop.f32.mrf.mxu0 }
 0x2c6   : > { %v11914_v59 = vadd.f32 %v3602_v61, %v3494_v2 }
 0x2c7   : > { %v9624_v58 = vpop.f32.mrf.mxu1  ;;  %9959 = vmatmul.mubr.msk.f32.gmra.mxu1 %vm400_vm1, %v6318_v7  ;;  %v9629_v52 = vpop.f32.mrf.mxu0  ;;  %9964 = vmatmul.mubr.msk.f32.vlgmr.msra.gmra.mxu0 %vm400_vm1, %v11344_v17 }
 0x2c8   : > { %v11924_v34 = vadd.f32 %v9624_v58, %v9610_v10  ;;  %9977 = vmatprep.mubr.msk.f32.mxu1 %vm400_vm1, %v11351_v46  ;;  %v3772_v16 = vadd.f32 %v9629_v52, %v11827_v35  ;;  %9990 = vmatpush3.msk.msra.mxu0 %vm476_vm0, %v8750_v36  ;;  %v11970_v10 = vld [vmem:[#allocation3 + $0x91] sm:$0xff] }
 0x2c9   : > { %v3612_v19 = vpop.f32.mrf.mxu1  ;;  %9966 = vmatprep.mubr.msk.f32.mxu0 %vm400_vm1, %v11358_v27  ;;  %v3732_v20 = vpop.f32.mrf.mxu0  ;;  %10017 = vmatprep.subr.msk.mxu0 %vm476_vm0, %v11919_v3 }
 0x2ca   : > { %v11934_v7 = vadd.f32 %v3612_v19, %v3504_v32  ;;  %v3771_v0 = vadd.f32 %v3732_v20, %v11835_v28  ;;  %v6854_v20 = vld [vmem:[#allocation3 + $0x131] sm:$0xff] }
 0x2cb   : > { %v9643_v35 = vpop.f32.mrf.mxu1  ;;  %9978 = vmatmul.mubr.msk.f32.vlgmr.msra.gmra.mxu1 %vm400_vm1, %v11363_v43  ;;  %v9632_v36 = vpop.f32.mrf.mxu0  ;;  %9967 = vmatmul.mubr.msk.f32.gmra.mxu0 %vm400_vm1, %v11365_v47 }
 0x2cc   : > { %v11946_v30 = vadd.f32 %v9643_v35, %v3772_v16  ;;  %9980 = vmatprep.mubr.msk.f32.mxu1 %vm400_vm1, %v11369_v22  ;;  %10004 = vmatpush3.msk.msra.mxu1 %vm476_vm0, %v8760_v49  ;;  %v3774_v28 = vadd.f32 %v9632_v36, %v11841_v9 }
 0x2cd   : > { %v3874_v53 = vpop.f32.mrf.mxu1  ;;  %9969 = vmatprep.mubr.msk.f32.mxu0 %vm400_vm1, %v11373_v14  ;;  %v3742_v48 = vpop.f32.mrf.mxu0  ;;  %10031 = vmatprep.subr.msk.mxu1 %vm476_vm0, %v11940_v38 }
 0x2ce   : > { %v11956_v1 = vadd.f32 %v3874_v53, %v3771_v0  ;;  %v3773_v44 = vadd.f32 %v3742_v48, %v11847_v42 }
 0x2cf   : > { %v9646_v2 = vpop.f32.mrf.mxu1  ;;  %9981 = vmatmul.mubr.msk.f32.gmra.mxu1 %vm400_vm1, %v11379_v29  ;;  %v9635_v63 = vpop.f32.mrf.mxu0  ;;  %9970 = vmatmul.mubr.msk.f32.gmra.mxu0 %vm400_vm1, %v11381_v12 }
 0x2d0   : > { %v11963_v9 = vadd.f32 %v9646_v2, %v3774_v28  ;;  %9983 = vmatprep.mubr.msk.f32.mxu1 %vm400_vm1, %v11385_v18  ;;  %v3776_v49 = vadd.f32 %v9635_v63, %v11852_v39  ;;  %9972 = vmatprep.mubr.msk.f32.mxu0 %vm400_vm1, %v11665_v45  ;;  %v8790_v28 = vld [vmem:[%s12531_s5 + $0x44] sm:$0xf] }
 0x2d1   : > { %v3884_v42 = vpop.f32.mrf.mxu1  ;;  %v3752_v61 = vpop.f32.mrf.mxu0 }
 0x2d2   : > { %v11972_v32 = vadd.f32 %v3884_v42, %v3773_v44  ;;  %v3775_v58 = vadd.f32 %v3752_v61, %v11858_v57 }
 0x2d3   : > { %v9649_v52 = vpop.f32.mrf.mxu1  ;;  %9984 = vmatmul.mubr.msk.f32.gmra.mxu1 %vm400_vm1, %v11392_v41  ;;  %v9638_v16 = vpop.f32.mrf.mxu0  ;;  %9973 = vmatmul.mubr.msk.f32.gmra.mxu0 %vm400_vm1, %v11970_v10 }
 0x2d4   : > { %v11979_v39 = vadd.f32 %v9649_v52, %v3776_v49  ;;  %9986 = vmatprep.mubr.msk.f32.mxu1 %vm400_vm1, %v11675_v37  ;;  %v3778_v19 = vadd.f32 %v9638_v16, %v11866_v8  ;;  %9991 = vmatprep.mubr.msk.f32.mxu0 %vm400_vm1, %v11337_v5 }
 0x2d5   : > { %v3894_v57 = vpop.f32.mrf.mxu1  ;;  %v3762_v0 = vpop.f32.mrf.mxu0 }
 0x2d6   : > { %v11986_v35 = vadd.f32 %v3894_v57, %v3775_v58  ;;  %v3777_v36 = vadd.f32 %v3762_v0, %v11874_v26 }
 0x2d7   : > { %v9652_v53 = vpop.f32.mrf.mxu1  ;;  %9987 = vmatmul.mubr.msk.f32.gmra.mxu1 %vm400_vm1, %v6854_v20  ;;  %v9657_v48 = vpop.f32.mrf.mxu0  ;;  %9992 = vmatmul.mubr.msk.f32.vlgmr.msra.gmra.mxu0 %vm400_vm1, %v11344_v17 }
 0x2d8   : > { %v11995_v8 = vadd.f32 %v9652_v53, %v3778_v19  ;;  %10005 = vmatprep.mubr.msk.f32.mxu1 %vm400_vm1, %v11351_v46  ;;  %v4032_v5 = vadd.f32 %v9657_v48, %v11883_v4  ;;  %10018 = vmatpush3.msk.msra.mxu0 %vm476_vm0, %v11919_v3  ;;  %v8800_v46 = vld [vmem:[%s12531_s5 + $0x8c] sm:$0xf] }
 0x2d9   : > { %v3904_v26 = vpop.f32.mrf.mxu1  ;;  %9994 = vmatprep.mubr.msk.f32.mxu0 %vm400_vm1, %v11358_v27  ;;  %v3992_v44 = vpop.f32.mrf.mxu0  ;;  %10045 = vmatprep.subr.msk.mxu0 %vm476_vm0, %v8790_v28 }
 0x2da   : > { %v12005_v2 = vadd.f32 %v3904_v26, %v3777_v36  ;;  %v4031_v17 = vadd.f32 %v3992_v44, %v11891_v6 }
 0x2db   : > { %v9671_v63 = vpop.f32.mrf.mxu1  ;;  %10006 = vmatmul.mubr.msk.f32.vlgmr.msra.gmra.mxu1 %vm400_vm1, %v11363_v43  ;;  %v9660_v4 = vpop.f32.mrf.mxu0  ;;  %9995 = vmatmul.mubr.msk.f32.gmra.mxu0 %vm400_vm1, %v11365_v47 }
 0x2dc   : > { %v12015_v27 = vadd.f32 %v9671_v63, %v4032_v5  ;;  %10008 = vmatprep.mubr.msk.f32.mxu1 %vm400_vm1, %v11369_v22  ;;  %10032 = vmatpush3.msk.msra.mxu1 %vm476_vm0, %v11940_v38  ;;  %v4034_v6 = vadd.f32 %v9660_v4, %v11897_v25 }
 0x2dd   : > { %v4110_v3 = vpop.f32.mrf.mxu1  ;;  %9997 = vmatprep.mubr.msk.f32.mxu0 %vm400_vm1, %v11373_v14  ;;  %v4002_v49 = vpop.f32.mrf.mxu0  ;;  %10059 = vmatprep.subr.msk.mxu1 %vm476_vm0, %v8800_v46 }
 0x2de   : > { %v12025_v43 = vadd.f32 %v4110_v3, %v4031_v17  ;;  %v4033_v47 = vadd.f32 %v4002_v49, %v11903_v21 }
 0x2df   : > { %v9674_v42 = vpop.f32.mrf.mxu1  ;;  %10009 = vmatmul.mubr.msk.f32.gmra.mxu1 %vm400_vm1, %v11379_v29  ;;  %v9663_v22 = vpop.f32.mrf.mxu0  ;;  %9998 = vmatmul.mubr.msk.f32.gmra.mxu0 %vm400_vm1, %v11381_v12 }
 0x2e0   : > { %v12032_v25 = vadd.f32 %v9674_v42, %v4034_v6  ;;  %10011 = vmatprep.mubr.msk.f32.mxu1 %vm400_vm1, %v11385_v18  ;;  %v4036_v14 = vadd.f32 %v9663_v22, %v11908_v54  ;;  %10000 = vmatprep.mubr.msk.f32.mxu0 %vm400_vm1, %v11665_v45  ;;  %v7390_v42 = vld [vmem:[#allocation3 + $0x132] sm:$0xff] }
 0x2e1   : > { %v4120_v38 = vpop.f32.mrf.mxu1  ;;  %v4012_v21 = vpop.f32.mrf.mxu0 }
 0x2e2   : > { %v12039_v61 = vadd.f32 %v4120_v38, %v4033_v47  ;;  %v4035_v29 = vadd.f32 %v4012_v21, %v11914_v59 }
 0x2e3   : > { %v9677_v58 = vpop.f32.mrf.mxu1  ;;  %10012 = vmatmul.mubr.msk.f32.gmra.mxu1 %vm400_vm1, %v11392_v41  ;;  %v9666_v12 = vpop.f32.mrf.mxu0  ;;  %10001 = vmatmul.mubr.msk.f32.gmra.mxu0 %vm400_vm1, %v11970_v10 }
 0x2e4   : > { %v12046_v18 = vadd.f32 %v9677_v58, %v4036_v14  ;;  %10014 = vmatprep.mubr.msk.f32.mxu1 %vm400_vm1, %v11675_v37  ;;  %v4038_v45 = vadd.f32 %v9666_v12, %v11924_v34  ;;  %10019 = vmatprep.mubr.msk.f32.mxu0 %vm400_vm1, %v11445_v62 }
 0x2e5   : > { %v4130_v54 = vpop.f32.mrf.mxu1  ;;  %v4022_v59 = vpop.f32.mrf.mxu0 }
 0x2e6   : > { %v12053_v52 = vadd.f32 %v4130_v54, %v4035_v29  ;;  %v4037_v41 = vadd.f32 %v4022_v59, %v11934_v7 }
 0x2e7   : > { %v9680_v16 = vpop.f32.mrf.mxu1  ;;  %10015 = vmatmul.mubr.msk.f32.gmra.mxu1 %vm400_vm1, %v6854_v20  ;;  %v9685_v10 = vpop.f32.mrf.mxu0  ;;  %10020 = vmatmul.mubr.msk.f32.vlgmr.msra.gmra.mxu0 %vm400_vm1, %v11452_v15 }
 0x2e8   : > { %v12059_v19 = vadd.f32 %v9680_v16, %v4038_v45  ;;  %10033 = vmatprep.mubr.msk.f32.mxu1 %vm400_vm1, %v11459_v24  ;;  %v4308_v37 = vadd.f32 %v9685_v10, %v11946_v30  ;;  %10046 = vmatpush3.msk.msra.mxu0 %vm476_vm0, %v8790_v28 }
 0x2e9   : > { %v4140_v34 = vpop.f32.mrf.mxu1  ;;  %10022 = vmatprep.mubr.msk.f32.mxu0 %vm400_vm1, %v11466_v31  ;;  %v4268_v7 = vpop.f32.mrf.mxu0 }
 0x2ea   : > { %v12067_v57 = vadd.f32 %v4140_v34, %v4037_v41  ;;  %v4307_v20 = vadd.f32 %v4268_v7, %v11956_v1 }
 0x2eb   : > { %v9699_v0 = vpop.f32.mrf.mxu1  ;;  %10034 = vmatmul.mubr.msk.f32.vlgmr.msra.gmra.mxu1 %vm400_vm1, %v11471_v33  ;;  %v9688_v36 = vpop.f32.mrf.mxu0  ;;  %10023 = vmatmul.mubr.msk.f32.gmra.mxu0 %vm400_vm1, %v11473_v11 }
 0x2ec   : > { %v12074_v30 = vadd.f32 %v9699_v0, %v4308_v37  ;;  %10036 = vmatprep.mubr.msk.f32.mxu1 %vm400_vm1, %v11477_v60  ;;  %10060 = vmatpush3.msk.msra.mxu1 %vm476_vm0, %v8800_v46  ;;  %v4310_v28 = vadd.f32 %v9688_v36, %v11963_v9  ;;  %v7382_v46 = vld [vmem:[#allocation3 + $0x92] sm:$0xff] }
 0x2ed   : > { %v4410_v53 = vpop.f32.mrf.mxu1  ;;  %10025 = vmatprep.mubr.msk.f32.mxu0 %vm400_vm1, %v11481_v55  ;;  %v4278_v1 = vpop.f32.mrf.mxu0 }
 0x2ee   : > { %v12082_v48 = vadd.f32 %v4410_v53, %v4307_v20  ;;  %v4309_v5 = vadd.f32 %v4278_v1, %v11972_v32 }
 0x2ef   : > { %v9702_v26 = vpop.f32.mrf.mxu1  ;;  %10037 = vmatmul.mubr.msk.f32.gmra.mxu1 %vm400_vm1, %v11487_v50  ;;  %v9691_v44 = vpop.f32.mrf.mxu0  ;;  %10026 = vmatmul.mubr.msk.f32.gmra.mxu0 %vm400_vm1, %v11489_v23 }
 0x2f0   : > { %v12089_v17 = vadd.f32 %v9702_v26, %v4310_v28  ;;  %10039 = vmatprep.mubr.msk.f32.mxu1 %vm400_vm1, %v11493_v56  ;;  %v4312_v9 = vadd.f32 %v9691_v44, %v11979_v39  ;;  %10028 = vmatprep.mubr.msk.f32.mxu0 %vm400_vm1, %v11753_v40 }
 0x2f1   : > { %v4420_v32 = vpop.f32.mrf.mxu1  ;;  %v4288_v63 = vpop.f32.mrf.mxu0 }
 0x2f2   : > { %v12096_v4 = vadd.f32 %v4420_v32, %v4309_v5  ;;  %v4311_v6 = vadd.f32 %v4288_v63, %v11986_v35 }
 0x2f3   : > { %v9705_v3 = vpop.f32.mrf.mxu1  ;;  %10040 = vmatmul.mubr.msk.f32.gmra.mxu1 %vm400_vm1, %v11500_v51  ;;  %v9694_v49 = vpop.f32.mrf.mxu0  ;;  %10029 = vmatmul.mubr.msk.f32.gmra.mxu0 %vm400_vm1, %v7382_v46 }
 0x2f4   : > { %v12102_v47 = vadd.f32 %v9705_v3, %v4312_v9  ;;  %10042 = vmatprep.mubr.msk.f32.mxu1 %vm400_vm1, %v11763_v13  ;;  %v4314_v39 = vadd.f32 %v9694_v49, %v11995_v8  ;;  %10047 = vmatprep.mubr.msk.f32.mxu0 %vm400_vm1, %v11445_v62 }
 0x2f5   : > { %v4430_v22 = vpop.f32.mrf.mxu1  ;;  %v4298_v35 = vpop.f32.mrf.mxu0 }
 0x2f6   : > { %v12109_v14 = vadd.f32 %v4430_v22, %v4311_v6  ;;  %v4313_v38 = vadd.f32 %v4298_v35, %v12005_v2 }
 0x2f7   : > { %v9708_v21 = vpop.f32.mrf.mxu1  ;;  %10043 = vmatmul.mubr.msk.f32.gmra.mxu1 %vm400_vm1, %v7390_v42  ;;  %v9713_v29 = vpop.f32.mrf.mxu0  ;;  %10048 = vmatmul.mubr.msk.f32.vlgmr.msra.gmra.mxu0 %vm400_vm1, %v11452_v15 }
 0x2f8   : > { %v12115_v58 = vadd.f32 %v9708_v21, %v4314_v39  ;;  %10061 = vmatprep.mubr.msk.f32.mxu1 %vm400_vm1, %v11459_v24  ;;  %v4568_v62 = vadd.f32 %v9713_v29, %v12015_v27  ;;  %10050 = vmatprep.mubr.msk.f32.mxu0 %vm400_vm1, %v11466_v31 }
 0x2f9   : > { %v4440_v8 = vpop.f32.mrf.mxu1  ;;  %v4528_v12 = vpop.f32.mrf.mxu0 }
 0x2fa   : > { %v12122_v2 = vadd.f32 %v4440_v8, %v4313_v38  ;;  %v4567_v45 = vadd.f32 %v4528_v12, %v12025_v43 }
 0x2fb   : > { %v9727_v54 = vpop.f32.mrf.mxu1  ;;  %10062 = vmatmul.mubr.msk.f32.vlgmr.msra.gmra.mxu1 %vm400_vm1, %v11471_v33  ;;  %v9716_v15 = vpop.f32.mrf.mxu0  ;;  %10051 = vmatmul.mubr.msk.f32.gmra.mxu0 %vm400_vm1, %v11473_v11 }
 0x2fc   : > { %v12129_v24 = vadd.f32 %v9727_v54, %v4568_v62  ;;  %10064 = vmatprep.mubr.msk.f32.mxu1 %vm400_vm1, %v11477_v60  ;;  %v4570_v31 = vadd.f32 %v9716_v15, %v12032_v25  ;;  %10053 = vmatprep.mubr.msk.f32.mxu0 %vm400_vm1, %v11481_v55 }
 0x2fd   : > { %v4646_v27 = vpop.f32.mrf.mxu1  ;;  %v4538_v43 = vpop.f32.mrf.mxu0 }
 0x2fe   : > { %v12136_v59 = vadd.f32 %v4646_v27, %v4567_v45  ;;  %v4569_v33 = vadd.f32 %v4538_v43, %v12039_v61 }
 0x2ff   : > { %v9730_v41 = vpop.f32.mrf.mxu1  ;;  %10065 = vmatmul.mubr.msk.f32.gmra.mxu1 %vm400_vm1, %v11487_v50  ;;  %v9719_v11 = vpop.f32.mrf.mxu0  ;;  %10054 = vmatmul.mubr.msk.f32.gmra.mxu0 %vm400_vm1, %v11489_v23 }
 0x300   : > { %v12143_v60 = vadd.f32 %v9730_v41, %v4570_v31  ;;  %10067 = vmatprep.mubr.msk.f32.mxu1 %vm400_vm1, %v11493_v56  ;;  %v4572_v55 = vadd.f32 %v9719_v11, %v12046_v18  ;;  %10056 = vmatprep.mubr.msk.f32.mxu0 %vm400_vm1, %v11753_v40 }
 0x301   : > { %v4656_v25 = vpop.f32.mrf.mxu1  ;;  %v4548_v61 = vpop.f32.mrf.mxu0 }
 0x302   : > { %v4687_v16 = vadd.f32 %v4656_v25, %v4569_v33  ;;  %v4571_v10 = vadd.f32 %v4548_v61, %v12053_v52 }
 0x303   : > { %v9733_v50 = vpop.f32.mrf.mxu1  ;;  %10068 = vmatmul.mubr.msk.f32.gmra.mxu1 %vm400_vm1, %v11500_v51  ;;  %v9722_v23 = vpop.f32.mrf.mxu0  ;;  %10057 = vmatmul.mubr.msk.f32.gmra.mxu0 %vm400_vm1, %v7382_v46 }
 0x304   : > { %v4690_v37 = vadd.f32 %v9733_v50, %v4572_v55  ;;  %10070 = vmatprep.mubr.msk.f32.mxu1 %vm400_vm1, %v11763_v13  ;;  %v4574_v56 = vadd.f32 %v9722_v23, %v12059_v19 }
 0x305   : > { %v4666_v18 = vpop.f32.mrf.mxu1  ;;  %v4558_v40 = vpop.f32.mrf.mxu0 }
 0x306   : > { %v4689_v34 = vadd.f32 %v4666_v18, %v4571_v10  ;;  %v4573_v7 = vadd.f32 %v4558_v40, %v12067_v57 }
 0x307   : > { %v9736_v20 = vpop.f32.mrf.mxu1  ;;  %10071 = vmatmul.mubr.msk.f32.gmra.mxu1 %vm400_vm1, %v7390_v42  ;;  %v9741_v52 = vpop.f32.mrf.mxu0 }
 0x308   : > { %v4692_v0 = vadd.f32 %v9736_v20, %v4574_v56  ;;  %v4844_v51 = vadd.f32 %v9741_v52, %v12074_v30 }
 0x309   : > { %v4676_v36 = vpop.f32.mrf.mxu1  ;;  %v4804_v28 = vpop.f32.mrf.mxu0 }
 0x30a   : > { %v4691_v53 = vadd.f32 %v4676_v36, %v4573_v7  ;;  %v4843_v1 = vadd.f32 %v4804_v28, %v12082_v48 }
 0x30b   : > { %v9755_v13 = vpop.f32.mrf.mxu1  ;;  %v9744_v5 = vpop.f32.mrf.mxu0 }
 0x30c   : > { %v4986_v19 = vadd.f32 %v9755_v13, %v4844_v51  ;;  %v4846_v26 = vadd.f32 %v9744_v5, %v12089_v17 }
 0x30d   : > { %v4946_v44 = vpop.f32.mrf.mxu1  ;;  %v4814_v9 = vpop.f32.mrf.mxu0 }
 0x30e   : > { %v4985_v57 = vadd.f32 %v4946_v44, %v4843_v1  ;;  %v4845_v46 = vadd.f32 %v4814_v9, %v12096_v4 }
 0x30f   : > { %v9758_v32 = vpop.f32.mrf.mxu1  ;;  %v9747_v63 = vpop.f32.mrf.mxu0 }
 0x310   : > { %v4988_v6 = vadd.f32 %v9758_v32, %v4846_v26  ;;  %v4848_v30 = vadd.f32 %v9747_v63, %v12102_v47 }
 0x311   : > { %v4956_v3 = vpop.f32.mrf.mxu1  ;;  %v4824_v49 = vpop.f32.mrf.mxu0 }
 0x312   : > { %v4987_v39 = vadd.f32 %v4956_v3, %v4845_v46  ;;  %v4847_v48 = vadd.f32 %v4824_v49, %v12109_v14 }
 0x313   : > { %v9761_v42 = vpop.f32.mrf.mxu1  ;;  %v9750_v22 = vpop.f32.mrf.mxu0 }
 0x314   : > { %v4990_v35 = vadd.f32 %v9761_v42, %v4848_v30  ;;  %v4850_v17 = vadd.f32 %v9750_v22, %v12115_v58 }
 0x315   : > { %v4966_v38 = vpop.f32.mrf.mxu1  ;;  %v4834_v21 = vpop.f32.mrf.mxu0 }
 0x316   : > { %v4989_v29 = vadd.f32 %v4966_v38, %v4847_v48  ;;  %v4849_v4 = vadd.f32 %v4834_v21, %v12122_v2 }
 0x317   : > { %v9764_v62 = vpop.f32.mrf.mxu1  ;;  %v9769_v8 = vpop.f32.mrf.mxu0 }
 0x318   : > { %v4992_v12 = vadd.f32 %v9764_v62, %v4850_v17  ;;  %v5104_v47 = vadd.f32 %v9769_v8, %v12129_v24 }
 0x319   : > { %v4976_v45 = vpop.f32.mrf.mxu1  ;;  %v5064_v54 = vpop.f32.mrf.mxu0 }
 0x31a   : > { %v4991_v15 = vadd.f32 %v4976_v45, %v4849_v4  ;;  %v5103_v14 = vadd.f32 %v5064_v54, %v12136_v59 }
 0x31b   : > { %v9783_v31 = vpop.f32.mrf.mxu1  ;;  %v9772_v27 = vpop.f32.mrf.mxu0 }
 0x31c   : > { %v5222_v43 = vadd.f32 %v9783_v31, %v5104_v47  ;;  %v5106_v58 = vadd.f32 %v9772_v27, %v12143_v60 }
 0x31d   : > { %v5182_v33 = vpop.f32.mrf.mxu1  ;;  %v5074_v41 = vpop.f32.mrf.mxu0 }
 0x31e   : > { %v5221_v11 = vadd.f32 %v5182_v33, %v5103_v14  ;;  %v5105_v55 = vadd.f32 %v5074_v41, %v4687_v16 }
 0x31f   : > { %v9786_v2 = vpop.f32.mrf.mxu1  ;;  %v9775_v25 = vpop.f32.mrf.mxu0 }
 0x320   : > { %v5224_v61 = vadd.f32 %v9786_v2, %v5106_v58  ;;  %v5108_v10 = vadd.f32 %v9775_v25, %v4690_v37 }
 0x321   : > { %v5192_v50 = vpop.f32.mrf.mxu1  ;;  %v5084_v24 = vpop.f32.mrf.mxu0 }
 0x322   : > { %v5223_v23 = vadd.f32 %v5192_v50, %v5105_v55  ;;  %v5107_v56 = vadd.f32 %v5084_v24, %v4689_v34 }
 0x323   : > { %v9789_v18 = vpop.f32.mrf.mxu1  ;;  %v9778_v40 = vpop.f32.mrf.mxu0 }
 0x324   : > { %v5226_v59 = vadd.f32 %v9789_v18, %v5108_v10  ;;  %v5110_v7 = vadd.f32 %v9778_v40, %v4692_v0 }
 0x325   : > { %v5202_v20 = vpop.f32.mrf.mxu1  ;;  %v5094_v52 = vpop.f32.mrf.mxu0 }
 0x326   : > { %v5225_v51 = vadd.f32 %v5202_v20, %v5107_v56  ;;  %v5109_v60 = vadd.f32 %v5094_v52, %v4691_v53 }
 0x327   : > { %v9792_v36 = vpop.f32.mrf.mxu1  ;;  %v9797_v28 = vpop.f32.mrf.mxu0 }
 0x328   : > { %v5228_v1 = vadd.f32 %v9792_v36, %v5110_v7  ;;  %v5380_v16 = vadd.f32 %v9797_v28, %v4986_v19 }
 0x329   : > { %v5212_v13 = vpop.f32.mrf.mxu1  ;;  %v5340_v5 = vpop.f32.mrf.mxu0 }
 0x32a   : > { %v5227_v26 = vadd.f32 %v5212_v13, %v5109_v60  ;;  %v5379_v37 = vadd.f32 %v5340_v5, %v4985_v57 }
 0x32b   : > { %v9811_v44 = vpop.f32.mrf.mxu1  ;;  %v9800_v9 = vpop.f32.mrf.mxu0 }
 0x32c   : > { %v5522_v46 = vadd.f32 %v9811_v44, %v5380_v16  ;;  %v5382_v34 = vadd.f32 %v9800_v9, %v4988_v6 }
 0x32d   : > { %v5482_v32 = vpop.f32.mrf.mxu1  ;;  %v5350_v63 = vpop.f32.mrf.mxu0 }
 0x32e   : > { %v5521_v30 = vadd.f32 %v5482_v32, %v5379_v37  ;;  %v5381_v0 = vadd.f32 %v5350_v63, %v4987_v39 }
 0x32f   : > { %v9814_v3 = vpop.f32.mrf.mxu1  ;;  %v9803_v49 = vpop.f32.mrf.mxu0 }
 0x330   : > { %v5524_v48 = vadd.f32 %v9814_v3, %v5382_v34  ;;  %v5384_v53 = vadd.f32 %v9803_v49, %v4990_v35 }
 0x331   : > { %v5492_v42 = vpop.f32.mrf.mxu1  ;;  %v5360_v22 = vpop.f32.mrf.mxu0 }
 0x332   : > { %v5523_v17 = vadd.f32 %v5492_v42, %v5381_v0  ;;  %v5383_v19 = vadd.f32 %v5360_v22, %v4989_v29 }
 0x333   : > { %v9817_v38 = vpop.f32.mrf.mxu1  ;;  %v9806_v21 = vpop.f32.mrf.mxu0 }
 0x334   : > { %v5526_v4 = vadd.f32 %v9817_v38, %v5384_v53  ;;  %v5386_v57 = vadd.f32 %v9806_v21, %v4992_v12 }
 0x335   : > { %v5502_v62 = vpop.f32.mrf.mxu1  ;;  %v5370_v8 = vpop.f32.mrf.mxu0 }
 0x336   : > { %v5525_v47 = vadd.f32 %v5502_v62, %v5383_v19  ;;  %v5385_v6 = vadd.f32 %v5370_v8, %v4991_v15 }
 0x337   : > { %v9820_v45 = vpop.f32.mrf.mxu1  ;;  %v9825_v54 = vpop.f32.mrf.mxu0 }
 0x338   : > { %v5528_v14 = vadd.f32 %v9820_v45, %v5386_v57  ;;  %v5640_v39 = vadd.f32 %v9825_v54, %v5222_v43 }
 0x339   : > { %v5512_v31 = vpop.f32.mrf.mxu1  ;;  %v5600_v27 = vpop.f32.mrf.mxu0 }
 0x33a   : > { %v5527_v58 = vadd.f32 %v5512_v31, %v5385_v6  ;;  %v5639_v35 = vadd.f32 %v5600_v27, %v5221_v11 }
 0x33b   : > { %v9839_v33 = vpop.f32.mrf.mxu1  ;;  %v9828_v41 = vpop.f32.mrf.mxu0 }
 0x33c   : > { %v5758_v55 = vadd.f32 %v9839_v33, %v5640_v39  ;;  %v5642_v29 = vadd.f32 %v9828_v41, %v5224_v61 }
 0x33d   : > { %v5718_v2 = vpop.f32.mrf.mxu1  ;;  %v5610_v25 = vpop.f32.mrf.mxu0 }
 0x33e   : > { %v5757_v10 = vadd.f32 %v5718_v2, %v5639_v35  ;;  %v5641_v12 = vadd.f32 %v5610_v25, %v5223_v23 }
 0x33f   : > { %v9842_v50 = vpop.f32.mrf.mxu1  ;;  %v9831_v24 = vpop.f32.mrf.mxu0 }
 0x340   : > { %v5760_v56 = vadd.f32 %v9842_v50, %v5642_v29  ;;  %v5644_v15 = vadd.f32 %v9831_v24, %v5226_v59 }
 0x341   : > { %v5728_v18 = vpop.f32.mrf.mxu1  ;;  %v5620_v40 = vpop.f32.mrf.mxu0 }
 0x342   : > { %v5759_v7 = vadd.f32 %v5728_v18, %v5641_v12  ;;  %v5643_v43 = vadd.f32 %v5620_v40, %v5225_v51 }
 0x343   : > { %v9845_v20 = vpop.f32.mrf.mxu1  ;;  %v9834_v52 = vpop.f32.mrf.mxu0 }
 0x344   : > { %v5762_v60 = vadd.f32 %v9845_v20, %v5644_v15  ;;  %v5646_v11 = vadd.f32 %v9834_v52, %v5228_v1 }
 0x345   : > { %v5738_v36 = vpop.f32.mrf.mxu1  ;;  %v5630_v28 = vpop.f32.mrf.mxu0 }
 0x346   : > { %v5761_v16 = vadd.f32 %v5738_v36, %v5643_v43  ;;  %v5645_v61 = vadd.f32 %v5630_v28, %v5227_v26 }
 0x347   : > { %v9848_v13 = vpop.f32.mrf.mxu1  ;;  %v9853_v5 = vpop.f32.mrf.mxu0 }
 0x348   : > { %v5764_v37 = vadd.f32 %v9848_v13, %v5646_v11  ;;  %v5916_v23 = vadd.f32 %v9853_v5, %v5522_v46 }
 0x349   : > { %v5748_v44 = vpop.f32.mrf.mxu1  ;;  %v5876_v9 = vpop.f32.mrf.mxu0 }
 0x34a   : > { %v5763_v34 = vadd.f32 %v5748_v44, %v5645_v61  ;;  %v5915_v59 = vadd.f32 %v5876_v9, %v5521_v30 }
 0x34b   : > { %v9867_v32 = vpop.f32.mrf.mxu1  ;;  %v9856_v63 = vpop.f32.mrf.mxu0 }
 0x34c   : > { %v6058_v0 = vadd.f32 %v9867_v32, %v5916_v23  ;;  %v5918_v51 = vadd.f32 %v9856_v63, %v5524_v48 }
 0x34d   : > { %v6018_v3 = vpop.f32.mrf.mxu1  ;;  %v5886_v49 = vpop.f32.mrf.mxu0 }
 0x34e   : > { %v6057_v53 = vadd.f32 %v6018_v3, %v5915_v59  ;;  %v5917_v1 = vadd.f32 %v5886_v49, %v5523_v17 }
 0x34f   : > { %v9870_v42 = vpop.f32.mrf.mxu1  ;;  %v9859_v22 = vpop.f32.mrf.mxu0 }
 0x350   : > { %v6060_v19 = vadd.f32 %v9870_v42, %v5918_v51  ;;  %v5920_v26 = vadd.f32 %v9859_v22, %v5526_v4 }
 0x351   : > { %v6028_v38 = vpop.f32.mrf.mxu1  ;;  %v5896_v21 = vpop.f32.mrf.mxu0 }
 0x352   : > { %v6059_v57 = vadd.f32 %v6028_v38, %v5917_v1  ;;  %v5919_v46 = vadd.f32 %v5896_v21, %v5525_v47 }
 0x353   : > { %v9873_v62 = vpop.f32.mrf.mxu1  ;;  %v9862_v8 = vpop.f32.mrf.mxu0 }
 0x354   : > { %v6062_v6 = vadd.f32 %v9873_v62, %v5920_v26  ;;  %v5922_v30 = vadd.f32 %v9862_v8, %v5528_v14 }
 0x355   : > { %v6038_v45 = vpop.f32.mrf.mxu1  ;;  %v5906_v54 = vpop.f32.mrf.mxu0 }
 0x356   : > { %v6061_v39 = vadd.f32 %v6038_v45, %v5919_v46  ;;  %v5921_v48 = vadd.f32 %v5906_v54, %v5527_v58 }
 0x357   : > { %v9876_v31 = vpop.f32.mrf.mxu1  ;;  %v9881_v27 = vpop.f32.mrf.mxu0 }
 0x358   : > { %v6064_v35 = vadd.f32 %v9876_v31, %v5922_v30  ;;  %v6176_v17 = vadd.f32 %v9881_v27, %v5758_v55 }
 0x359   : > { %v6048_v33 = vpop.f32.mrf.mxu1  ;;  %v6136_v41 = vpop.f32.mrf.mxu0 }
 0x35a   : > { %v6063_v29 = vadd.f32 %v6048_v33, %v5921_v48  ;;  %v6175_v4 = vadd.f32 %v6136_v41, %v5757_v10 }
 0x35b   : > { %v9895_v2 = vpop.f32.mrf.mxu1  ;;  %v9884_v25 = vpop.f32.mrf.mxu0 }
 0x35c   : > { %v12170_v12 = vadd.f32 %v9895_v2, %v6176_v17  ;;  %v6178_v47 = vadd.f32 %v9884_v25, %v5760_v56 }
 0x35d   : > { %v6254_v50 = vpop.f32.mrf.mxu1  ;;  %v6146_v24 = vpop.f32.mrf.mxu0 }
 0x35e   : > { %v12172_v14 = vadd.f32 %v6254_v50, %v6175_v4  ;;  %v6177_v15 = vadd.f32 %v6146_v24, %v5759_v7 }
 0x35f   : > { %v9898_v18 = vpop.f32.mrf.mxu1  ;;  %v9887_v58 = vpop.f32.mrf.mxu0 }
 0x360   : > { %v12174_v40 = vadd.f32 %v9898_v18, %v6178_v47  ;;  %v6180_v43 = vadd.f32 %v9887_v58, %v5762_v60 }
 0x361   : > { %v6264_v55 = vpop.f32.mrf.mxu1  ;;  %v6156_v20 = vpop.f32.mrf.mxu0 }
 0x362   : > { %v12176_v52 = vadd.f32 %v6264_v55, %v6177_v15  ;;  %v6179_v10 = vadd.f32 %v6156_v20, %v5761_v16 }
 0x363   : > { %v9901_v11 = vpop.f32.mrf.mxu1  ;;  %v9890_v36 = vpop.f32.mrf.mxu0 }
 0x364   : > { %v12178_v28 = vadd.f32 %v9901_v11, %v6180_v43  ;;  %v6182_v56 = vadd.f32 %v9890_v36, %v5764_v37 }
 0x365   : > { %v6274_v61 = vpop.f32.mrf.mxu1  ;;  %v6166_v13 = vpop.f32.mrf.mxu0 }
 0x366   : > { %v12180_v5 = vadd.f32 %v6274_v61, %v6179_v10  ;;  %v6181_v7 = vadd.f32 %v6166_v13, %v5763_v34 }
 0x367   : > { %v9904_v23 = vpop.f32.mrf.mxu1  ;;  %v9909_v44 = vpop.f32.mrf.mxu0 }
 0x368   : > { %v12182_v9 = vadd.f32 %v9904_v23, %v6182_v56  ;;  %v6454_v60 = vadd.f32 %v9909_v44, %v6058_v0 }
 0x369   : > { %v6284_v59 = vpop.f32.mrf.mxu1  ;;  %v6414_v32 = vpop.f32.mrf.mxu0 }
 0x36a   : > { %v12184_v63 = vadd.f32 %v6284_v59, %v6181_v7  ;;  %v6453_v16 = vadd.f32 %v6414_v32, %v6057_v53 }
 0x36b   : > { %v9923_v51 = vpop.f32.mrf.mxu1  ;;  %v9912_v3 = vpop.f32.mrf.mxu0 }
 0x36c   : > { %v12186_v49 = vadd.f32 %v9923_v51, %v6454_v60  ;;  %v6456_v37 = vadd.f32 %v9912_v3, %v6060_v19 }
 0x36d   : > { %v6556_v1 = vpop.f32.mrf.mxu1  ;;  %v6424_v42 = vpop.f32.mrf.mxu0 }
 0x36e   : > { %v12188_v22 = vadd.f32 %v6556_v1, %v6453_v16  ;;  %v6455_v34 = vadd.f32 %v6424_v42, %v6059_v57 }
 0x36f   : > { %v9926_v26 = vpop.f32.mrf.mxu1  ;;  %v9915_v38 = vpop.f32.mrf.mxu0 }
 0x370   : > { %v12190_v21 = vadd.f32 %v9926_v26, %v6456_v37  ;;  %v6458_v0 = vadd.f32 %v9915_v38, %v6062_v6 }
 0x371   : > { %v6566_v46 = vpop.f32.mrf.mxu1  ;;  %v6434_v62 = vpop.f32.mrf.mxu0 }
 0x372   : > { %v12192_v8 = vadd.f32 %v6566_v46, %v6455_v34  ;;  %v6457_v53 = vadd.f32 %v6434_v62, %v6061_v39 }
 0x373   : > { %v9929_v30 = vpop.f32.mrf.mxu1  ;;  %v9918_v45 = vpop.f32.mrf.mxu0 }
 0x374   : > { %v12194_v54 = vadd.f32 %v9929_v30, %v6458_v0  ;;  %v6460_v19 = vadd.f32 %v9918_v45, %v6064_v35 }
 0x375   : > { %v6576_v48 = vpop.f32.mrf.mxu1  ;;  %v6444_v31 = vpop.f32.mrf.mxu0 }
 0x376   : > { %v12196_v27 = vadd.f32 %v6576_v48, %v6457_v53  ;;  %v6459_v57 = vadd.f32 %v6444_v31, %v6063_v29 }
 0x377   : > { %v9932_v17 = vpop.f32.mrf.mxu1  ;;  %v9937_v33 = vpop.f32.mrf.mxu0 }
 0x378   : > { %v12198_v41 = vadd.f32 %v9932_v17, %v6460_v19 }
 0x379   : > { %v6586_v6 = vpop.f32.mrf.mxu1  ;;  %v6674_v4 = vpop.f32.mrf.mxu0 }
 0x37a   : > { %v12200_v2 = vadd.f32 %v6586_v6, %v6459_v57 }
 0x37b   : > { %v12202_v25 = vpop.f32.mrf.mxu1  ;;  %v9940_v39 = vpop.f32.mrf.mxu0 }
 0x37d   : > { %v12204_v47 = vpop.f32.mrf.mxu1  ;;  %v12206_v50 = vpop.f32.mrf.mxu0 }
 0x37f   : > { %v12208_v35 = vpop.f32.mrf.mxu1  ;;  %v12210_v24 = vpop.f32.mrf.mxu0 }
 0x381   : > { %v12212_v29 = vpop.f32.mrf.mxu1  ;;  %v12214_v15 = vpop.f32.mrf.mxu0 }
 0x383   : > { %v12216_v18 = vpop.f32.mrf.mxu1  ;;  %v12218_v58 = vpop.f32.mrf.mxu0 }
 0x385   : > { %v12220_v43 = vpop.f32.mrf.mxu1  ;;  %v12222_v55 = vpop.f32.mrf.mxu0 }
 0x386   : > { %12596 = vst [vmem:[#allocation4_spill] sm:$0xff] %v12222_v55 }
 0x387   : > { %v12224_v20 = vpop.f32.mrf.mxu1  ;;  %v9965_v10 = vpop.f32.mrf.mxu0 }
 0x388   : > { %v6990_v19 = vadd.f32 %v9965_v10, %v12186_v49  ;;  %v6714_v10 = vadd.f32 %v9937_v33, %v12170_v12 }
 0x389   : > { %v12226_v11 = vpop.f32.mrf.mxu1  ;;  %v6950_v36 = vpop.f32.mrf.mxu0 }
 0x38a   : > { %12597 = vst [vmem:[#allocation5_spill] sm:$0xff] %v12226_v11  ;;  %v6989_v57 = vadd.f32 %v6950_v36, %v12188_v22 }
 0x38b   : > { %v9979_v56 = vpop.f32.mrf.mxu1  ;;  %v9968_v61 = vpop.f32.mrf.mxu0 }
 0x38c   : > { %v7132_v11 = vadd.f32 %v9979_v56, %v6990_v19  ;;  %v6713_v56 = vadd.f32 %v6674_v4, %v12172_v14  ;;  %v6718_v19 = vadd.f32 %v12210_v24, %v12178_v28 }
 0x38d   : > { %v7092_v13 = vpop.f32.mrf.mxu1  ;;  %v6960_v7 = vpop.f32.mrf.mxu0 }
 0x38e   : > { %v7131_v55 = vadd.f32 %v7092_v13, %v6989_v57  ;;  %v12271_v13 = vld [vmem:[%s12532_s6] ss:$0 sm:$0xff] }
 0x38f   : > { %v9982_v23 = vpop.f32.mrf.mxu1  ;;  %v9971_v44 = vpop.f32.mrf.mxu0 }
 0x390   : > { %v6994_v36 = vadd.f32 %v9971_v44, %v12194_v54 }
 0x391   : > { %v7102_v60 = vpop.f32.mrf.mxu1  ;;  %v6970_v59 = vpop.f32.mrf.mxu0 }
 0x392   : > { %v6993_v12 = vadd.f32 %v6970_v59, %v12196_v27  ;;  %v6715_v27 = vadd.f32 %v12206_v50, %v12176_v52 }
 0x393   : > { %v9985_v32 = vpop.f32.mrf.mxu1  ;;  %v9974_v16 = vpop.f32.mrf.mxu0 }
 0x394   : > { %v6996_v54 = vadd.f32 %v9974_v16, %v12198_v41  ;;  %v7136_v4 = vadd.f32 %v9985_v32, %v6994_v36  ;;  %v6836_v36 = vadd.f32 %v12216_v18, %v6718_v19 }
 0x395   : > { %v7112_v51 = vpop.f32.mrf.mxu1  ;;  %v6980_v3 = vpop.f32.mrf.mxu0 }
 0x396   : > { %v6995_v59 = vadd.f32 %v6980_v3, %v12200_v2  ;;  %v7135_v41 = vadd.f32 %v7112_v51, %v6993_v12 }
 0x397   : > { %v9988_v37 = vpop.f32.mrf.mxu1  ;;  %v9993_v1 = vpop.f32.mrf.mxu0 }
 0x399   : > { %v12228_v42 = vpop.f32.mrf.mxu1  ;;  %v12230_v34 = vpop.f32.mrf.mxu0 }
 0x39b   : > { %v12232_v26 = vpop.f32.mrf.mxu1  ;;  %v12234_v38 = vpop.f32.mrf.mxu0 }
 0x39d   : > { %v12236_v0 = vpop.f32.mrf.mxu1  ;;  %v12238_v46 = vpop.f32.mrf.mxu0 }
 0x39f   : > { %v12240_v62 = vpop.f32.mrf.mxu1  ;;  %v12242_v53 = vpop.f32.mrf.mxu0 }
 0x3a0   : > { %12598 = vst [vmem:[#allocation6_spill] sm:$0xff] %v12240_v62  ;;  %12599 = vst [vmem:[#allocation7_spill] sm:$0xff] %v12242_v53  ;;  %v6992_v62 = vadd.f32 %v9968_v61, %v12190_v21  ;;  %v6716_v21 = vadd.f32 %v9940_v39, %v12174_v40 }
 0x3a1   : > { %v12244_v30 = vpop.f32.mrf.mxu1  ;;  %v12246_v45 = vpop.f32.mrf.mxu0 }
 0x3a2   : > { %12600 = vst [vmem:[#allocation8_spill] sm:$0xff] %v12244_v30  ;;  %12601 = vst [vmem:[#allocation9_spill] sm:$0xff] %v12246_v45  ;;  %v6991_v45 = vadd.f32 %v6960_v7, %v12192_v8  ;;  %v7134_v22 = vadd.f32 %v9982_v23, %v6992_v62  ;;  %v6832_v23 = vadd.f32 %v12202_v25, %v6714_v10 }
 0x3a3   : > { %v12249_v48 = vpop.f32.mrf.mxu1  ;;  %v12251_v31 = vpop.f32.mrf.mxu0  ;;  %v6831_v62 = vadd.f32 %v12204_v47, %v6713_v56  ;;  %v6717_v47 = vadd.f32 %v12214_v15, %v12180_v5 }
 0x3a4   : > { %12602 = vst [vmem:[#allocation10_spill] sm:$0xff] %v12249_v48  ;;  %12603 = vst [vmem:[#allocation11_spill] sm:$0xff] %v12251_v31 }
 0x3a5   : > { %v12254_v17 = vpop.f32.mrf.mxu1  ;;  %v12256_v6 = vpop.f32.mrf.mxu0  ;;  %v7249_v28 = vadd.f32 %v12230_v34, %v6831_v62  ;;  %v6835_v56 = vadd.f32 %v12220_v43, %v6717_v47 }
 0x3a6   : > { %12604 = vst [vmem:[#allocation12_spill] sm:$0xff] %v12254_v17 }
 0x3a7   : > { %v12259_v53 = vpop.f32.mrf.mxu1  ;;  %v10021_v30 = vpop.f32.mrf.mxu0 }
 0x3a8   : > { %v7526_v49 = vadd.f32 %v10021_v30, %v7132_v11  ;;  %v7133_v11 = vadd.f32 %v7102_v60, %v6991_v45  ;;  %v6834_v60 = vadd.f32 %v12208_v35, %v6716_v21  ;;  %v7138_v35 = vadd.f32 %v9988_v37, %v6996_v54 }
 0x3a9   : > { %v12263_v48 = vpop.f32.mrf.mxu1  ;;  %v7486_v31 = vpop.f32.mrf.mxu0 }
 0x3aa   : > { %v7525_v17 = vadd.f32 %v7486_v31, %v7131_v55  ;;  %v7250_v31 = vadd.f32 %v9993_v1, %v6832_v23 }
 0x3ab   : > { %v10035_v61 = vpop.f32.mrf.mxu1  ;;  %v10024_v8 = vpop.f32.mrf.mxu0 }
 0x3ac   : > { %v7668_v33 = vadd.f32 %v10035_v61, %v7526_v49  ;;  %v7528_v7 = vadd.f32 %v10024_v8, %v7134_v22  ;;  %v7137_v49 = vadd.f32 %v12228_v42, %v6995_v59  ;;  %v7368_v42 = vadd.f32 %v12232_v26, %v7250_v31 }
 0x3ad   : > { %v7628_v55 = vpop.f32.mrf.mxu1  ;;  %v7496_v14 = vpop.f32.mrf.mxu0  ;;  %v7252_v61 = vadd.f32 %v12234_v38, %v6834_v60  ;;  %v12607_v60 = vld [vmem:[#allocation6_spill] sm:$0xff] }
 0x3ae   : > { %v12277_v40 = vadd.f32 %v12271_v13, %v7668_v33  ;;  %v7667_v39 = vadd.f32 %v7628_v55, %v7525_v17  ;;  %v7527_v44 = vadd.f32 %v7496_v14, %v7133_v11  ;;  %v6833_v17 = vadd.f32 %v12212_v29, %v6715_v27 }
 0x3af   : > { %v10038_v25 = vpop.f32.mrf.mxu1  ;;  %v10027_v30 = vpop.f32.mrf.mxu0  ;;  %v6720_v29 = vadd.f32 %v12218_v58, %v12182_v9  ;;  %v7367_v33 = vadd.f32 %v12236_v0, %v7249_v28  ;;  %v12605_v0 = vld [vmem:[#allocation4_spill] sm:$0xff]  ;;  %v7370_v27 = vadd.f32 %v12607_v60, %v7252_v61  ;;  %v12612_v28 = vld [vmem:[#allocation11_spill] sm:$0xff] }
 0x3b0   : > { %v12285_v16 = vadd.f32 %v12271_v13, %v7667_v39  ;;  %v7670_v32 = vadd.f32 %v10038_v25, %v7528_v7  ;;  %v7530_v45 = vadd.f32 %v10027_v30, %v7136_v4  ;;  %v7943_v2 = vsel %vm400_vm1, %v12277_v40, 0.0 }
 0x3b1   : > { %v7638_v57 = vpop.f32.mrf.mxu1  ;;  %v7506_v52 = vpop.f32.mrf.mxu0  ;;  %v7251_v18 = vadd.f32 %v12238_v46, %v6833_v17  ;;  %v6838_v55 = vadd.f32 %v12224_v20, %v6720_v29  ;;  %v6719_v14 = vadd.f32 %v12605_v0, %v12184_v63  ;;  %v12606_v46 = vld [vmem:[#allocation7_spill] sm:$0xff]  ;;  %v12611_v17 = vld [vmem:[#allocation10_spill] sm:$0xff] }
 0x3b2   : > { %v7942_v50 = vsel %vm400_vm1, %v12285_v16, 0.0  ;;  %v7669_v51 = vadd.f32 %v7638_v57, %v7527_v44  ;;  %v7529_v3 = vadd.f32 %v7506_v52, %v7135_v41  ;;  %v12299_v37 = vadd.f32 %v12271_v13, %v7670_v32  ;;  %v12608_v41 = vld [vmem:[#allocation8_spill] sm:$0xff] }
 0x3b3   : > { %v7944_v24 = vadd.f32 %v7943_v2, %v7942_v50  ;;  %v10041_v5 = vpop.f32.mrf.mxu1  ;;  %v10030_v15 = vpop.f32.mrf.mxu0  ;;  %v7254_v4 = vadd.f32 %v12606_v46, %v6836_v36  ;;  %v7369_v32 = vadd.f32 %v12608_v41, %v7251_v18 }
 0x3b4   : > { %v12302_v1 = vadd.f32 %v12271_v13, %v7669_v51  ;;  %v7672_v10 = vadd.f32 %v10041_v5, %v7530_v45  ;;  %v7532_v22 = vadd.f32 %v10030_v15, %v7138_v35  ;;  %v7947_v26 = vsel %vm400_vm1, %v12299_v37, 0.0  ;;  %v12609_v45 = vld [vmem:[#allocation9_spill] sm:$0xff]  ;;  %v8812_v35 = vld [vmem:[%s12532_s6 + $0x1] ss:$0 sm:$0xff] }
 0x3b5   : > { %v7648_v34 = vpop.f32.mrf.mxu1  ;;  %v7516_v21 = vpop.f32.mrf.mxu0  ;;  %v7253_v19 = vadd.f32 %v12609_v45, %v6835_v56  ;;  %v12610_v51 = vld [vmem:[#allocation5_spill] sm:$0xff] }
 0x3b6   : > { %v7945_v8 = vsel %vm400_vm1, %v12302_v1, 0.0  ;;  %v7671_v11 = vadd.f32 %v7648_v34, %v7529_v3  ;;  %v7531_v12 = vadd.f32 %v7516_v21, %v7137_v49  ;;  %v12315_v43 = vadd.f32 %v12271_v13, %v7672_v10 }
 0x3b7   : > { %v7946_v7 = vadd.f32 %v7945_v8, %v7944_v24  ;;  %v10044_v9 = vpop.f32.mrf.mxu1  ;;  %v10049_v58 = vpop.f32.mrf.mxu0  ;;  %v6837_v3 = vadd.f32 %v12610_v51, %v6719_v14  ;;  %v7372_v49 = vadd.f32 %v12611_v17, %v7254_v4  ;;  %v7256_v24 = vadd.f32 %v12612_v28, %v6838_v55 }
 0x3b8   : > { %v12320_v38 = vadd.f32 %v12271_v13, %v7671_v11  ;;  %v7674_v23 = vadd.f32 %v10044_v9, %v7532_v22  ;;  %v7786_v54 = vadd.f32 %v10049_v58, %v7368_v42  ;;  %v7951_v20 = vsel %vm400_vm1, %v12315_v43, 0.0 }
 0x3b9   : > { %v7948_v39 = vadd.f32 %v7947_v26, %v7946_v7  ;;  %v7658_v44 = vpop.f32.mrf.mxu1  ;;  %v7746_v62 = vpop.f32.mrf.mxu0  ;;  %v7255_v34 = vadd.f32 %v12256_v6, %v6837_v3  ;;  %v7374_v7 = vadd.f32 %v12259_v53, %v7256_v24 }
 0x3ba   : > { %v7949_v59 = vsel %vm400_vm1, %v12320_v38, 0.0  ;;  %v7673_v25 = vadd.f32 %v7658_v44, %v7531_v12  ;;  %v7785_v30 = vadd.f32 %v7746_v62, %v7367_v33  ;;  %v12337_v57 = vadd.f32 %v12271_v13, %v7674_v23 }
 0x3bb   : > { %v7950_v63 = vadd.f32 %v7949_v59, %v7948_v39  ;;  %v10063_v47 = vpop.f32.mrf.mxu1  ;;  %v10052_v31 = vpop.f32.mrf.mxu0  ;;  %v7373_v0 = vadd.f32 %v12263_v48, %v7255_v34 }
 0x3bc   : > { %v12340_v52 = vadd.f32 %v12271_v13, %v7673_v25  ;;  %v7904_v2 = vadd.f32 %v10063_v47, %v7786_v54  ;;  %v7788_v50 = vadd.f32 %v10052_v31, %v7370_v27  ;;  %v12613_v13 = vld [vmem:[#allocation12_spill] sm:$0xff]  ;;  %v7955_v11 = vsel %vm400_vm1, %v12337_v57, 0.0 }
 0x3bd   : > { %v7952_v5 = vadd.f32 %v7951_v20, %v7950_v63  ;;  %v7864_v15 = vpop.f32.mrf.mxu1  ;;  %v7756_v10 = vpop.f32.mrf.mxu0  ;;  %v7371_v42 = vadd.f32 %v12613_v13, %v7253_v19 }
 0x3be   : > { %v7953_v22 = vsel %vm400_vm1, %v12340_v52, 0.0  ;;  %v12347_v36 = vadd.f32 %v8812_v35, %v7904_v2  ;;  %v7903_v56 = vadd.f32 %v7864_v15, %v7785_v30  ;;  %v7787_v29 = vadd.f32 %v7756_v10, %v7369_v32 }
 0x3bf   : > { %v7954_v21 = vadd.f32 %v7953_v22, %v7952_v5  ;;  %v10066_v61 = vpop.f32.mrf.mxu1  ;;  %v10055_v8 = vpop.f32.mrf.mxu0 }
 0x3c0   : > { %v12353_v12 = vadd.f32 %v8812_v35, %v7903_v56  ;;  %v7906_v33 = vadd.f32 %v10066_v61, %v7788_v50  ;;  %v7790_v18 = vadd.f32 %v10055_v8, %v7372_v49  ;;  %v7964_v23 = vsel %vm400_vm1, %v12347_v36, 0.0 }
 0x3c1   : > { %v7956_v9 = vadd.f32 %v7955_v11, %v7954_v21  ;;  %v7874_v58 = vpop.f32.mrf.mxu1  ;;  %v7766_v26 = vpop.f32.mrf.mxu0 }
 0x3c2   : > { %v7963_v6 = vsel %vm400_vm1, %v12353_v12, 0.0  ;;  %v7905_v54 = vadd.f32 %v7874_v58, %v7787_v29  ;;  %v7789_v55 = vadd.f32 %v7766_v26, %v7371_v42  ;;  %v7937_v39 = vadd.f32 %v8812_v35, %v7906_v33 }
 0x3c3   : > { %v7965_v14 = vadd.f32 %v7964_v23, %v7963_v6  ;;  %v10069_v46 = vpop.f32.mrf.mxu1  ;;  %v10058_v4 = vpop.f32.mrf.mxu0  ;;  %v7957_v63 = vrot.slane %v7956_v9, 4 }
 0x3c4   : > { %v7936_v44 = vadd.f32 %v8812_v35, %v7905_v54  ;;  %v7908_v62 = vadd.f32 %v10069_v46, %v7790_v18  ;;  %v7792_v53 = vadd.f32 %v10058_v4, %v7374_v7  ;;  %v7968_v45 = vsel %vm400_vm1, %v7937_v39, 0.0 }
 0x3c5   : > { %v7884_v60 = vpop.f32.mrf.mxu1  ;;  %v7776_v27 = vpop.f32.mrf.mxu0  ;;  %v7958_v28 = vadd.f32 %v7957_v63, %v7956_v9 }
 0x3c6   : > { %v7966_v59 = vsel %vm400_vm1, %v7936_v44, 0.0  ;;  %v7907_v25 = vadd.f32 %v7884_v60, %v7789_v55  ;;  %v7791_v30 = vadd.f32 %v7776_v27, %v7373_v0  ;;  %v7939_v19 = vadd.f32 %v8812_v35, %v7908_v62 }
 0x3c7   : > { %v7967_v41 = vadd.f32 %v7966_v59, %v7965_v14  ;;  %v10072_v32 = vpop.f32.mrf.mxu1  ;;  %v7959_v22 = vrot.slane %v7958_v28, 2 }
 0x3c8   : > { %v7938_v20 = vadd.f32 %v8812_v35, %v7907_v25  ;;  %v7910_v48 = vadd.f32 %v10072_v32, %v7792_v53  ;;  %v7972_v3 = vsel %vm400_vm1, %v7939_v19, 0.0 }
 0x3c9   : > { %v7969_v47 = vadd.f32 %v7968_v45, %v7967_v41  ;;  %v7894_v31 = vpop.f32.mrf.mxu1  ;;  %v7960_v13 = vadd.f32 %v7959_v22, %v7958_v28 }
 0x3ca   : > { %v7970_v2 = vsel %vm400_vm1, %v7938_v20, 0.0  ;;  %v7909_v50 = vadd.f32 %v7894_v31, %v7791_v30  ;;  %v7941_v17 = vadd.f32 %v8812_v35, %v7910_v48 }
 0x3cb   : > { %v7971_v51 = vadd.f32 %v7970_v2, %v7969_v47  ;;  %v7961_v21 = vrot.slane %v7960_v13, 1 }
 0x3cc   : > { %v7940_v49 = vadd.f32 %v8812_v35, %v7909_v50  ;;  %v7976_v10 = vsel %vm400_vm1, %v7941_v17, 0.0 }
 0x3cd   : > { %v7973_v24 = vadd.f32 %v7972_v3, %v7971_v51  ;;  %v7962_v11 = vadd.f32 %v7961_v21, %v7960_v13 }
 0x3ce   : > { %v7974_v5 = vsel %vm400_vm1, %v7940_v49, 0.0 }
 0x3cf   : > { %v7975_v15 = vadd.f32 %v7974_v5, %v7973_v24 }
 0x3d1   : > { %v7977_v56 = vadd.f32 %v7976_v10, %v7975_v15 }
 0x3d3   : > { %v7978_v29 = vrot.slane %v7977_v56, 4 }
 0x3d5   : > { %v7979_v42 = vadd.f32 %v7978_v29, %v7977_v56 }
 0x3d7   : > { %v7980_v34 = vrot.slane %v7979_v42, 2 }
 0x3d9   : > { %v7981_v61 = vadd.f32 %v7980_v34, %v7979_v42 }
 0x3db   : > { %v7982_v8 = vrot.slane %v7981_v61, 1 }
 0x3dd   : > { %v7983_v33 = vadd.f32 %v7982_v8, %v7981_v61 }
 0x3df   : > { %v7984_v18 = vadd.f32 %v7983_v33, %v7962_v11 }
 0x3e1   : > { %v7985_v35 = vmul.f32 0.0078125, %v7984_v18 }
 0x3e3   : > { %v12368_v7 = vsub.f32 %v12285_v16, %v7985_v35  ;;  %v12371_v9 = vsub.f32 %v12277_v40, %v7985_v35  ;;  %v12374_v58 = vsub.f32 %v12302_v1, %v7985_v35  ;;  %v12377_v26 = vsub.f32 %v12299_v37, %v7985_v35 }
 0x3e4   : > { %v12380_v23 = vsub.f32 %v12320_v38, %v7985_v35  ;;  %v12383_v6 = vsub.f32 %v12315_v43, %v7985_v35  ;;  %v12386_v54 = vsub.f32 %v12340_v52, %v7985_v35  ;;  %v12389_v16 = vsub.f32 %v12337_v57, %v7985_v35 }
 0x3e5   : > { %v12392_v40 = vsub.f32 %v12353_v12, %v7985_v35  ;;  %v12395_v1 = vsub.f32 %v12347_v36, %v7985_v35  ;;  %v12397_v37 = vsub.f32 %v7936_v44, %v7985_v35  ;;  %v12399_v55 = vsub.f32 %v7937_v39, %v7985_v35 }
 0x3e6   : > { %v12401_v38 = vsub.f32 %v7938_v20, %v7985_v35  ;;  %v12403_v43 = vsub.f32 %v7939_v19, %v7985_v35  ;;  %v12405_v0 = vsub.f32 %v7940_v49, %v7985_v35  ;;  %v12407_v52 = vsub.f32 %v7941_v17, %v7985_v35 }
 0x3e7   : > { %v8002_v57 = vmul.f32 %v12368_v7, %v12368_v7  ;;  %v8003_v12 = vmul.f32 %v12371_v9, %v12371_v9  ;;  %v8004_v36 = vmul.f32 %v12374_v58, %v12374_v58  ;;  %v8005_v14 = vmul.f32 %v12377_v26, %v12377_v26 }
 0x3e8   : > { %v8006_v39 = vmul.f32 %v12380_v23, %v12380_v23  ;;  %v8031_v53 = vmul.f32 %v12392_v40, %v12392_v40  ;;  %v8032_v60 = vmul.f32 %v12395_v1, %v12395_v1  ;;  %v8033_v27 = vmul.f32 %v12397_v37, %v12397_v37 }
 0x3e9   : > { %v8010_v46 = vsel %vm400_vm1, %v8002_v57, 0.0  ;;  %v8011_v4 = vsel %vm400_vm1, %v8003_v12, 0.0  ;;  %v8013_v62 = vsel %vm400_vm1, %v8004_v36, 0.0  ;;  %v8007_v59 = vmul.f32 %v12383_v6, %v12383_v6 }
 0x3ea   : > { %v8012_v44 = vadd.f32 %v8011_v4, %v8010_v46  ;;  %v8015_v30 = vsel %vm400_vm1, %v8005_v14, 0.0  ;;  %v8034_v41 = vmul.f32 %v12399_v55, %v12399_v55  ;;  %v8039_v32 = vsel %vm400_vm1, %v8031_v53, 0.0 }
 0x3eb   : > { %v8040_v45 = vsel %vm400_vm1, %v8032_v60, 0.0  ;;  %v8008_v48 = vmul.f32 %v12386_v54, %v12386_v54  ;;  %v8017_v63 = vsel %vm400_vm1, %v8006_v39, 0.0  ;;  %v8035_v47 = vmul.f32 %v12401_v38, %v12401_v38 }
 0x3ec   : > { %v8014_v25 = vadd.f32 %v8013_v62, %v8012_v44  ;;  %v8041_v20 = vadd.f32 %v8040_v45, %v8039_v32  ;;  %v8042_v31 = vsel %vm400_vm1, %v8033_v27, 0.0  ;;  %v8009_v51 = vmul.f32 %v12389_v16, %v12389_v16 }
 0x3ed   : > { %v8019_v3 = vsel %vm400_vm1, %v8007_v59, 0.0  ;;  %v8036_v17 = vmul.f32 %v12403_v43, %v12403_v43  ;;  %v8044_v49 = vsel %vm400_vm1, %v8034_v41, 0.0  ;;  %v8021_v5 = vsel %vm400_vm1, %v8008_v48, 0.0 }
 0x3ee   : > { %v8016_v19 = vadd.f32 %v8015_v30, %v8014_v25  ;;  %v8043_v50 = vadd.f32 %v8042_v31, %v8041_v20  ;;  %v8037_v15 = vmul.f32 %v12405_v0, %v12405_v0  ;;  %v8046_v10 = vsel %vm400_vm1, %v8035_v47, 0.0  ;;  %v8813_v30 = vld [vmem:[%s12533_s7] ss:$0 sm:$0xff] }
 0x3ef   : > { %v8023_v29 = vsel %vm400_vm1, %v8009_v51, 0.0  ;;  %v8038_v13 = vmul.f32 %v12407_v52, %v12407_v52  ;;  %v8048_v42 = vsel %vm400_vm1, %v8036_v17, 0.0  ;;  %v8814_v31 = vld [vmem:[%s12534_s8] ss:$0 sm:$0xff] }
 0x3f0   : > { %v8018_v2 = vadd.f32 %v8017_v63, %v8016_v19  ;;  %v8045_v24 = vadd.f32 %v8044_v49, %v8043_v50  ;;  %v8050_v61 = vsel %vm400_vm1, %v8037_v15, 0.0 }
 0x3f1   : > { %v8052_v33 = vsel %vm400_vm1, %v8038_v13, 0.0 }
 0x3f2   : > { %v8020_v28 = vadd.f32 %v8019_v3, %v8018_v2  ;;  %v8047_v56 = vadd.f32 %v8046_v10, %v8045_v24 }
 0x3f4   : > { %v8022_v22 = vadd.f32 %v8021_v5, %v8020_v28  ;;  %v8049_v21 = vadd.f32 %v8048_v42, %v8047_v56 }
 0x3f6   : > { %v8024_v34 = vadd.f32 %v8023_v29, %v8022_v22  ;;  %v8051_v11 = vadd.f32 %v8050_v61, %v8049_v21 }
 0x3f8   : > { %v8025_v8 = vrot.slane %v8024_v34, 4  ;;  %v8053_v35 = vadd.f32 %v8052_v33, %v8051_v11 }
 0x3fa   : > { %v8026_v18 = vadd.f32 %v8025_v8, %v8024_v34  ;;  %v8054_v12 = vrot.slane %v8053_v35, 4  ;;  %v8816_v34 = vld [vmem:[%s12533_s7 + $0x1] ss:$0 sm:$0xff] }
 0x3fc   : > { %v8027_v57 = vrot.slane %v8026_v18, 2  ;;  %v8055_v14 = vadd.f32 %v8054_v12, %v8053_v35 }
 0x3fe   : > { %v8028_v36 = vadd.f32 %v8027_v57, %v8026_v18  ;;  %v8056_v4 = vrot.slane %v8055_v14, 2 }
 0x400   : > { %v8029_v46 = vrot.slane %v8028_v36, 1  ;;  %v8057_v39 = vadd.f32 %v8056_v4, %v8055_v14 }
 0x402   : > { %v8030_v44 = vadd.f32 %v8029_v46, %v8028_v36  ;;  %v8058_v62 = vrot.slane %v8057_v39, 1 }
 0x404   : > { %v8059_v53 = vadd.f32 %v8058_v62, %v8057_v39 }
 0x406   : > { %v8060_v60 = vadd.f32 %v8059_v53, %v8030_v44 }
 0x408   : > { %v8061_v27 = vmul.f32 0.0078125, %v8060_v60 }
 0x40a   : > { %v8062_v59 = vadd.f32 1e-05, %v8061_v27 }
 0x40c   : > { %10084 = vrsqrt.f32 %v8062_v59 }
 0x419   : > { %v10085_v25 = vpop.eup %10084 }
 0x41a   : > { %v8064_v41 = vmul.f32 %v10085_v25, %v12368_v7  ;;  %v8065_v32 = vmul.f32 %v10085_v25, %v12371_v9  ;;  %v8066_v45 = vmul.f32 %v10085_v25, %v12374_v58  ;;  %v8067_v19 = vmul.f32 %v10085_v25, %v12377_v26 }
 0x41b   : > { %v8068_v20 = vmul.f32 %v10085_v25, %v12380_v23  ;;  %v8069_v48 = vmul.f32 %v10085_v25, %v12383_v6  ;;  %v8070_v63 = vmul.f32 %v10085_v25, %v12386_v54  ;;  %v8071_v47 = vmul.f32 %v10085_v25, %v12389_v16 }
 0x41c   : > { %v8079_v7 = vmul.f32 %v8813_v30, %v8064_v41  ;;  %v8080_v2 = vmul.f32 %v8813_v30, %v8065_v32  ;;  %v8081_v9 = vmul.f32 %v8813_v30, %v8066_v45  ;;  %v8082_v50 = vmul.f32 %v8813_v30, %v8067_v19 }
 0x41d   : > { %v8083_v58 = vmul.f32 %v8813_v30, %v8068_v20  ;;  %v8084_v51 = vmul.f32 %v8813_v30, %v8069_v48  ;;  %v8085_v26 = vmul.f32 %v8813_v30, %v8070_v63  ;;  %v8086_v3 = vmul.f32 %v8813_v30, %v8071_v47 }
 0x41e   : > { %v8094_v23 = vadd.f32 %v8814_v31, %v8079_v7  ;;  %v8095_v17 = vadd.f32 %v8814_v31, %v8080_v2  ;;  %v8096_v6 = vadd.f32 %v8814_v31, %v8081_v9  ;;  %v8097_v49 = vadd.f32 %v8814_v31, %v8082_v50 }
 0x41f   : > { %v8098_v54 = vadd.f32 %v8814_v31, %v8083_v58  ;;  %v8099_v16 = vadd.f32 %v8814_v31, %v8084_v51  ;;  %v8100_v28 = vadd.f32 %v8814_v31, %v8085_v26  ;;  %v8101_v24 = vadd.f32 %v8814_v31, %v8086_v3 }
 0x420   : > { %v8102_v5 = vmax.f32 %v8094_v23, 0.0  ;;  %v8103_v15 = vmax.f32 %v8095_v17, 0.0  ;;  %v8104_v10 = vmax.f32 %v8096_v6, 0.0  ;;  %v8105_v22 = vmax.f32 %v8097_v49, 0.0 }
 0x421   : > { %v8106_v56 = vmax.f32 %v8098_v54, 0.0  ;;  %v8107_v29 = vmax.f32 %v8099_v16, 0.0  ;;  %v8108_v13 = vmax.f32 %v8100_v28, 0.0  ;;  %v8109_v42 = vmax.f32 %v8101_v24, 0.0 }
 0x422   : > { %v8110_v21 = vmul.f32 %v10085_v25, %v12392_v40  ;;  %v8111_v61 = vmul.f32 %v10085_v25, %v12395_v1  ;;  %v8112_v8 = vmul.f32 %v10085_v25, %v12397_v37  ;;  %v8113_v11 = vmul.f32 %v10085_v25, %v12399_v55  ;;  %8158 = vst.msk [vmem:[%s12475_s13] sm:$0xff] %vm400_vm1, %v8102_v5  ;;  %v8818_v37 = vld [vmem:[%s12534_s8 + $0x1] ss:$0 sm:$0xff] }
 0x423   : > { %8159 = vst.msk [vmem:[%s12475_s13 + $0x8] sm:$0xff] %vm400_vm1, %v8103_v15  ;;  %8160 = vst.msk [vmem:[%s12475_s13 + $0x10] sm:$0xff] %vm400_vm1, %v8104_v10  ;;  %v8114_v33 = vmul.f32 %v10085_v25, %v12401_v38  ;;  %v8115_v18 = vmul.f32 %v10085_v25, %v12403_v43  ;;  %v8116_v40 = vmul.f32 %v10085_v25, %v12405_v0 }
 0x424   : > { %8161 = vst.msk [vmem:[%s12475_s13 + $0x18] sm:$0xff] %vm400_vm1, %v8105_v22  ;;  %v8117_v1 = vmul.f32 %v10085_v25, %v12407_v52  ;;  %8162 = vst.msk [vmem:[%s12475_s13 + $0x20] sm:$0xff] %vm400_vm1, %v8106_v56  ;;  %v8126_v55 = vmul.f32 %v8816_v34, %v8110_v21  ;;  %v8127_v38 = vmul.f32 %v8816_v34, %v8111_v61 }
 0x425   : > { %8163 = vst.msk [vmem:[%s12475_s13 + $0x28] sm:$0xff] %vm400_vm1, %v8107_v29  ;;  %8164 = vst.msk [vmem:[%s12475_s13 + $0x30] sm:$0xff] %vm400_vm1, %v8108_v13  ;;  %v8128_v35 = vmul.f32 %v8816_v34, %v8112_v8  ;;  %v8129_v43 = vmul.f32 %v8816_v34, %v8113_v11  ;;  %v8130_v57 = vmul.f32 %v8816_v34, %v8114_v33 }
 0x426   : > { %8165 = vst.msk [vmem:[%s12475_s13 + $0x38] sm:$0xff] %vm400_vm1, %v8109_v42  ;;  %v8131_v0 = vmul.f32 %v8816_v34, %v8115_v18  ;;  %v8132_v12 = vmul.f32 %v8816_v34, %v8116_v40  ;;  %v8133_v52 = vmul.f32 %v8816_v34, %v8117_v1  ;;  %v8142_v36 = vadd.f32 %v8818_v37, %v8126_v55 }
 0x427   : > { %v8143_v14 = vadd.f32 %v8818_v37, %v8127_v38  ;;  %v8144_v46 = vadd.f32 %v8818_v37, %v8128_v35  ;;  %v8145_v4 = vadd.f32 %v8818_v37, %v8129_v43  ;;  %v8146_v39 = vadd.f32 %v8818_v37, %v8130_v57 }
 0x428   : > { %v8147_v44 = vadd.f32 %v8818_v37, %v8131_v0  ;;  %v8148_v62 = vadd.f32 %v8818_v37, %v8132_v12  ;;  %v8149_v53 = vadd.f32 %v8818_v37, %v8133_v52  ;;  %v8150_v60 = vmax.f32 %v8142_v36, 0.0 }
 0x429   : > { %v8151_v27 = vmax.f32 %v8143_v14, 0.0  ;;  %v8152_v59 = vmax.f32 %v8144_v46, 0.0  ;;  %v8153_v25 = vmax.f32 %v8145_v4, 0.0  ;;  %v8154_v30 = vmax.f32 %v8146_v39, 0.0 }
 0x42a   : > { %v8155_v41 = vmax.f32 %v8147_v44, 0.0  ;;  %v8156_v32 = vmax.f32 %v8148_v62, 0.0  ;;  %v8157_v45 = vmax.f32 %v8149_v53, 0.0  ;;  %8819 = vst.msk [vmem:[%s12475_s13 + $0x40] sm:$0xff] %vm400_vm1, %v8150_v60 }
 0x42b   : > { %8820 = vst.msk [vmem:[%s12475_s13 + $0x48] sm:$0xff] %vm400_vm1, %v8151_v27  ;;  %8821 = vst.msk [vmem:[%s12475_s13 + $0x50] sm:$0xff] %vm400_vm1, %v8152_v59 }
 0x42c   : > { %8822 = vst.msk [vmem:[%s12475_s13 + $0x58] sm:$0xff] %vm400_vm1, %v8153_v25  ;;  %8823 = vst.msk [vmem:[%s12475_s13 + $0x60] sm:$0xff] %vm400_vm1, %v8154_v30 }
 0x42d   : > { %8824 = vst.msk [vmem:[%s12475_s13 + $0x68] sm:$0xff] %vm400_vm1, %v8155_v41  ;;  %8825 = vst.msk [vmem:[%s12475_s13 + $0x70] sm:$0xff] %vm400_vm1, %v8156_v32 }
 0x42e   : > { %8826 = vst.msk [vmem:[%s12475_s13 + $0x78] sm:$0xff] %vm400_vm1, %v8157_v45 }
 0x42f PF: > { %s19_s30 = sadd.s32 1, %s10092_s30  }
 0x430   : > { %p16_p4 = scmp.ge.s32.totalorder %s19_s30, 4  }
 0x432   :  { %18 = sbr.rel (!%p16_p4) target bundleno = 1 (0x1), region = 155 }

</bundles_post_ra>
